<compile_context>
chip_gen: v7x
topology: tpu7x:2x2x1
jax: 0.10.0
libtpu: 0.0.40
codegen_flags: <defaults>
</compile_context>

<pallas_src>
import math
import functools

import jax
import jax.numpy as jnp
from jax.experimental import pallas as pl
from jax.experimental.pallas import tpu as pltpu

_INV_SQRT2 = 1.0 / math.sqrt(2.0)


def _pick_tile(n, target=512):
    """Largest divisor of n that is <= target and a multiple of 8 (sublane),
    falling back to the full extent (a block equal to the full dim is always legal)."""
    target = min(target, n)
    for t in range(target, 7, -1):
        if n % t == 0 and t % 8 == 0:
            return t
    return n


# ----------------------------------------------------------------------------
# Kernel 1: fused 1x1-conv / linear  ==  x @ W + b  (+ optional activation)
#   (only used for the input projection; all other matmuls are fused elsewhere)
# ----------------------------------------------------------------------------
def _matmul_bias_act_kernel(x_ref, w_ref, b_ref, o_ref, *, act):
    y = jnp.dot(x_ref[...], w_ref[...], preferred_element_type=jnp.float32) + b_ref[...]
    if act == "relu":
        y = jnp.maximum(y, 0.0)
    elif act == "silu":
        y = y * jax.nn.sigmoid(y)
    o_ref[...] = y.astype(o_ref.dtype)


def matmul_bias_act(x, w, b, act="none"):
    """x: [M, Cin], w: [Cin, Cout], b: [1, Cout] -> [M, Cout]."""
    M, Cin = x.shape
    Cout = w.shape[1]
    # keep >= 2 grid blocks when possible (v7x has 2 TensorCores)
    tm = _pick_tile(M, target=min(512, max(8, M // 2)))
    grid = (M // tm,)
    return pl.pallas_call(
        functools.partial(_matmul_bias_act_kernel, act=act),
        out_shape=jax.ShapeDtypeStruct((M, Cout), x.dtype),
        grid_spec=pltpu.PrefetchScalarGridSpec(
            num_scalar_prefetch=0,
            grid=grid,
            in_specs=[
                pl.BlockSpec((tm, Cin), lambda i: (i, 0)),
                pl.BlockSpec((Cin, Cout), lambda i: (0, 0)),
                pl.BlockSpec((1, Cout), lambda i: (0, 0)),
            ],
            out_specs=pl.BlockSpec((tm, Cout), lambda i: (i, 0)),
        ),
        compiler_params=pltpu.CompilerParams(dimension_semantics=("parallel",)),
    )(x, w, b)


# ----------------------------------------------------------------------------
# Kernel 2: fused EMA_ResidualBlock hot path (+ in-kernel skip accumulation).
#   y      = x + diff_emb            (mega time/feat layers: identity, see TODO)
#   gate   = y @ Wm_g + cond @ Wc_g + b_g
#   filt   = y @ Wm_f + cond @ Wc_f + b_f
#   g      = sigmoid(gate) * tanh(filt)
#   x_out  = (x + g @ W_res + b_res) / sqrt(2)
#   s_out  = skip_acc + (g @ W_skip + b_skip)       # running skip sum (in-place)
# ----------------------------------------------------------------------------
def _resblock_kernel(x_ref, d_ref, cond_ref, sacc_ref,
                     wmg_ref, wmf_ref, wcg_ref, wcf_ref, bg_ref, bf_ref,
                     wres_ref, wskip_ref, bres_ref, bskip_ref,
                     xout_ref, sout_ref):
    x = x_ref[...]                               # [tkl, C]
    y = x + d_ref[...]                           # broadcast (1, C) diffusion proj
    # TODO(synk): MegaEncoderLayer time/feat layers would transform y here.
    cond = cond_ref[...]                         # [tkl, S]
    gate = (jnp.dot(y, wmg_ref[...], preferred_element_type=jnp.float32)
            + jnp.dot(cond, wcg_ref[...], preferred_element_type=jnp.float32)
            + bg_ref[...])
    filt = (jnp.dot(y, wmf_ref[...], preferred_element_type=jnp.float32)
            + jnp.dot(cond, wcf_ref[...], preferred_element_type=jnp.float32)
            + bf_ref[...])
    g = jax.nn.sigmoid(gate) * jnp.tanh(filt)
    residual = jnp.dot(g, wres_ref[...], preferred_element_type=jnp.float32) + bres_ref[...]
    skip = jnp.dot(g, wskip_ref[...], preferred_element_type=jnp.float32) + bskip_ref[...]
    xout_ref[...] = ((x + residual) * _INV_SQRT2).astype(xout_ref.dtype)
    sout_ref[...] = (sacc_ref[...] + skip).astype(sout_ref.dtype)


def residual_block_apply(x, d, cond, skip_acc, p):
    """x: [B, KL, C], d: [B, C], cond: [B, KL, S], skip_acc: [B, KL, C]."""
    B, KL, C = x.shape
    S = cond.shape[-1]
    d3 = d.reshape(B, 1, C)
    tkl = _pick_tile(KL, target=512)
    grid = (B, KL // tkl)

    row = lambda b, j: (b, j, 0)
    rep2 = lambda b, j: (0, 0)
    wspec_cc = pl.BlockSpec((C, C), rep2)
    wspec_sc = pl.BlockSpec((S, C), rep2)
    bspec = pl.BlockSpec((1, C), rep2)

    out_shapes = (jax.ShapeDtypeStruct((B, KL, C), x.dtype),
                  jax.ShapeDtypeStruct((B, KL, C), x.dtype))
    return pl.pallas_call(
        _resblock_kernel,
        out_shape=out_shapes,
        grid_spec=pltpu.PrefetchScalarGridSpec(
            num_scalar_prefetch=0,
            grid=grid,
            in_specs=[
                pl.BlockSpec((None, tkl, C), row),                  # x
                pl.BlockSpec((None, 1, C), lambda b, j: (b, 0, 0)),  # diff proj [B,1,C]
                pl.BlockSpec((None, tkl, S), row),                  # cond
                pl.BlockSpec((None, tkl, C), row),                  # skip accumulator (in)
                wspec_cc, wspec_cc,                                 # W_mid gate / filt
                wspec_sc, wspec_sc,                                 # W_cond gate / filt
                bspec, bspec,                                       # fused mid+cond biases
                wspec_cc, wspec_cc,                                 # W_out residual / skip
                bspec, bspec,                                       # output biases
            ],
            out_specs=(
                pl.BlockSpec((None, tkl, C), row),                  # x_out
                pl.BlockSpec((None, tkl, C), row),                  # skip accumulator (out)
            ),
        ),
        input_output_aliases={3: 1},   # update the skip accumulator in place
        compiler_params=pltpu.CompilerParams(
            dimension_semantics=("parallel", "parallel")),
    )(x, d3, cond, skip_acc,
      p["wm_g"], p["wm_f"], p["wc_g"], p["wc_f"], p["b_g"], p["b_f"],
      p["w_res"], p["w_skip"], p["b_res"], p["b_skip"])


# ----------------------------------------------------------------------------
# Kernel 3: fused output head.
#   s  = (skip_phase2_sum + skip_phase1_sum @ W_ds + n_p1 * b_ds) / sqrt(layers)
#   h  = relu(s @ W_o1 + b_o1)
#   y  = h @ W_o2 + b_o2                      # [tm, 1]
# ----------------------------------------------------------------------------
def _head_kernel(sp2_ref, sp1_ref, wds_ref, bds_ref, wo1_ref, bo1_ref,
                 wo2_ref, bo2_ref, o_ref, *, scale):
    ds = jnp.dot(sp1_ref[...], wds_ref[...], preferred_element_type=jnp.float32) + bds_ref[...]
    s = (sp2_ref[...] + ds) * scale
    h = jnp.maximum(
        jnp.dot(s, wo1_ref[...], preferred_element_type=jnp.float32) + bo1_ref[...], 0.0)
    y = jnp.dot(h, wo2_ref[...], preferred_element_type=jnp.float32) + bo2_ref[...]
    o_ref[...] = y.astype(o_ref.dtype)


def head_apply(skip_p2, skip_p1, w_ds, b_ds_eff, w_o1, b_o1, w_o2, b_o2, scale):
    """skip_p2, skip_p1: [M, C] -> [M, 1]."""
    M, C = skip_p2.shape
    tm = _pick_tile(M, target=min(512, max(8, M // 2)))
    grid = (M // tm,)
    rep = lambda i: (0, 0)
    return pl.pallas_call(
        functools.partial(_head_kernel, scale=scale),
        out_shape=jax.ShapeDtypeStruct((M, 1), skip_p2.dtype),
        grid_spec=pltpu.PrefetchScalarGridSpec(
            num_scalar_prefetch=0,
            grid=grid,
            in_specs=[
                pl.BlockSpec((tm, C), lambda i: (i, 0)),   # phase-2 skip sum
                pl.BlockSpec((tm, C), lambda i: (i, 0)),   # phase-1 skip sum
                pl.BlockSpec((C, C), rep),                 # W_ds
                pl.BlockSpec((1, C), rep),                 # n_p1 * b_ds
                pl.BlockSpec((C, C), rep),                 # W_o1
                pl.BlockSpec((1, C), rep),                 # b_o1
                pl.BlockSpec((C, 1), rep),                 # W_o2
                pl.BlockSpec((1, 1), rep),                 # b_o2
            ],
            out_specs=pl.BlockSpec((tm, 1), lambda i: (i, 0)),
        ),
        compiler_params=pltpu.CompilerParams(dimension_semantics=("parallel",)),
    )(skip_p2, skip_p1, w_ds, b_ds_eff, w_o1, b_o1, w_o2, b_o2)


# ----------------------------------------------------------------------------
# Parameter init (deterministic, synthetic)
# ----------------------------------------------------------------------------
def _kaiming_conv1x1(key, cin, cout, zero_weight=False):
    kw, kb = jax.random.split(key)
    if zero_weight:
        w = jnp.zeros((cin, cout), jnp.float32)
    else:
        std = math.sqrt(2.0 / cin)                    # kaiming normal, fan_in = cin*1
        w = jax.random.normal(kw, (cin, cout), jnp.float32) * std
    bound = 1.0 / math.sqrt(cin)
    b = jax.random.uniform(kb, (1, cout), jnp.float32, -bound, bound)
    return w, b


def _linear_init(key, cin, cout):
    kw, kb = jax.random.split(key)
    bound = 1.0 / math.sqrt(cin)
    w = jax.random.uniform(kw, (cin, cout), jnp.float32, -bound, bound)
    b = jax.random.uniform(kb, (1, cout), jnp.float32, -bound, bound)
    return w, b


def _init_res_layer(key, side_dim, channels, demb):
    k = jax.random.split(key, 4)
    C = channels
    wd, bd = _linear_init(k[0], demb, C)                  # diffusion_projection
    wc, bc = _kaiming_conv1x1(k[1], side_dim, 2 * C)      # cond_projection
    wm, bm = _kaiming_conv1x1(k[2], C, 2 * C)             # mid_projection
    wo, bo = _kaiming_conv1x1(k[3], C, 2 * C)             # output_projection
    return dict(
        w_diff=wd, b_diff=bd,
        # gate/filter halves pre-split (no in-kernel lane slicing); mid+cond bias folded.
        wm_g=wm[:, :C], wm_f=wm[:, C:],
        wc_g=wc[:, :C], wc_f=wc[:, C:],
        b_g=bm[:, :C] + bc[:, :C], b_f=bm[:, C:] + bc[:, C:],
        # output projection split into residual / skip halves.
        w_res=wo[:, :C], w_skip=wo[:, C:],
        b_res=bo[:, :C], b_skip=bo[:, C:],
    )


class DiffCSDID3M:
    def __init__(self, config, inputdim=2, key=None):
        if key is None:
            key = jax.random.PRNGKey(0)
        self.config = config
        C = config["diffusion"]["channels"]
        D = config["diffusion"]["diffusion_embedding_dim"]
        S = config["diffusion"]["side_dim"]
        self.channels = C
        self.demb_dim = D
        self.side_dim = S
        self.layers = config["diffusion"]["layers"]
        self.half = self.layers // 2
        nres = int(self.layers * 1.5)

        keys = jax.random.split(key, 12 + nres)
        ki = iter(range(12 + nres))

        # DiffusionGFEmbedding
        self.Wg = jax.random.normal(keys[next(ki)], (D // 2,), jnp.float32)  # fixed, scale=1
        self.Wp1, self.bp1 = _linear_init(keys[next(ki)], D, D)
        self.Wp2, self.bp2 = _linear_init(keys[next(ki)], D, D)

        # top-level projections (1x1 convs)
        self.W_in, self.b_in = _kaiming_conv1x1(keys[next(ki)], inputdim, C)
        self.W_o1, self.b_o1 = _kaiming_conv1x1(keys[next(ki)], C, C)
        self.W_o2, self.b_o2 = _kaiming_conv1x1(keys[next(ki)], C, 1, zero_weight=True)
        self.W_o3, self.b_o3 = _kaiming_conv1x1(keys[next(ki)], C, C)
        self.W_o4, self.b_o4 = _kaiming_conv1x1(keys[next(ki)], C, 1, zero_weight=True)
        self.W_ds1, b_ds1 = _kaiming_conv1x1(keys[next(ki)], C, C)   # deal_skip1 (2d 1x1)
        self.W_ds2, b_ds2 = _kaiming_conv1x1(keys[next(ki)], C, C)   # deal_skip2 (2d 1x1)
        # linearity: sum_i deal_skip(skip_i) = W_ds @ (sum_i skip_i) + n_phase1 * b_ds
        self.b_ds1_eff = b_ds1 * float(self.half)
        self.b_ds2_eff = b_ds2 * float(self.half)

        self.res_params = [
            _init_res_layer(keys[next(ki)], S, C, D) for _ in range(nres)
        ]

        self._forward_jit = jax.jit(self._forward)

    # ------------------------------------------------------------------
    def _diffusion_embedding(self, diffusion_step):
        # [B, D]-sized math: plain JAX (a Pallas grid-of-1 launch is pure overhead
        # and cannot use the second TensorCore on v7x).
        xp = diffusion_step[:, None] * self.Wg[None, :] * (2.0 * math.pi)
        emb = jnp.concatenate([jnp.sin(xp), jnp.cos(xp)], axis=-1)   # [B, D]
        emb = jax.nn.silu(emb @ self.Wp1 + self.bp1)
        emb = jax.nn.silu(emb @ self.Wp2 + self.bp2)
        return emb                                                    # [B, D]

    # ------------------------------------------------------------------
    def _forward(self, x, diffusion_step, cond_info):
        B, inputdim, K, L = x.shape
        C = self.channels
        KL = K * L
        M = B * KL
        half = self.half

        # NCL -> token-major [B, KL, ch]
        x_t = x.reshape(B, inputdim, KL).transpose(0, 2, 1)
        cond_dim = cond_info.shape[1]
        cond_t = cond_info.reshape(B, cond_dim, KL).transpose(0, 2, 1)

        # input projection + relu
        x_cur = matmul_bias_act(
            x_t.reshape(M, inputdim), self.W_in, self.b_in, act="relu"
        ).reshape(B, KL, C)

        demb = self._diffusion_embedding(diffusion_step)              # [B, D]

        def diff_proj(p):
            return demb @ p["w_diff"] + p["b_diff"]                   # [B, C] tiny, plain JAX

        # ---- phase 1: accumulate raw skips in-kernel; deal_skip1/2 are applied
        #      once inside the fused output heads (linearity of the 1x1 convs).
        skip_p1 = jnp.zeros((B, KL, C), x_cur.dtype)
        for li in range(half):
            p = self.res_params[li]
            x_cur, skip_p1 = residual_block_apply(x_cur, diff_proj(p), cond_t, skip_p1, p)

        # ---- phase 2: two independent chains, each with its own skip accumulator.
        x1 = x2 = x_cur
        skip1 = jnp.zeros((B, KL, C), x_cur.dtype)
        skip2 = jnp.zeros((B, KL, C), x_cur.dtype)
        for i in range(half):
            p1 = self.res_params[half + 2 * i]
            p2 = self.res_params[half + 2 * i + 1]
            x1, skip1 = residual_block_apply(x1, diff_proj(p1), cond_t, skip1, p1)
            x2, skip2 = residual_block_apply(x2, diff_proj(p2), cond_t, skip2, p2)

        inv_sqrt_layers = 1.0 / math.sqrt(self.layers)
        sp1 = skip_p1.reshape(M, C)

        x1o = head_apply(skip1.reshape(M, C), sp1, self.W_ds1, self.b_ds1_eff,
                         self.W_o1, self.b_o1, self.W_o2, self.b_o2,
                         scale=inv_sqrt_layers)                       # [M, 1]
        x2o = head_apply(skip2.reshape(M, C), sp1, self.W_ds2, self.b_ds2_eff,
                         self.W_o3, self.b_o3, self.W_o4, self.b_o4,
                         scale=inv_sqrt_layers)                       # [M, 1]

        return ((x1o.reshape(B, K, L),), x2o.reshape(B, K, L))

    def __call__(self, x, diffusion_step, cond_info):
        return self._forward_jit(x, diffusion_step, cond_info)


# ----------------------------------------------------------------------------
if __name__ == "__main__":
    config = {
        "diffusion": {
            "channels": 64,
            "diffusion_embedding_dim": 128,
            "side_dim": 16,
            "layers": 2,
        },
        "model": {
            "zdim": 16, "hdim": 32, "ndim": 16, "ffn_embed_dim": 64,
            "dropout": 0.0, "att_dropout": 0.0,
            "activation": "silu", "att_activation": "softmax",
            "chunk_size": -1, "norm_type": "layernorm",
            "prenorm": 1, "norm_affine": 1, "feat_dropout": 0,
            "rel_pos_bias": "simple", "max_positions": 1024,
            "time_move": 1, "feat_move": 1,
        },
    }

    key = jax.random.PRNGKey(0)
    kx, kt, kc, kp = jax.random.split(key, 4)

    B, K, L = 2, 8, 16
    x = jax.random.normal(kx, (B, 2, K, L), jnp.float32)
    diffusion_step = jax.random.uniform(kt, (B,), jnp.float32, 0.0, 1.0)
    cond_info = jax.random.normal(
        kc, (B, config["diffusion"]["side_dim"], K, L), jnp.float32)

    model = DiffCSDID3M(config, inputdim=2, key=kp)
    (x1,), x2 = model(x, diffusion_step, cond_info)
    jax.block_until_ready((x1, x2))

    assert x1.shape == (B, K, L), x1.shape
    assert x2.shape == (B, K, L), x2.shape
    assert jnp.all(jnp.isfinite(x1)) and jnp.all(jnp.isfinite(x2))
    print("KERNEL_OK")
</pallas_src>

<mosaic_0001>
module attributes {stable_mosaic.version = 11 : i64} {
  func.func @_matmul_bias_act_kernel(%arg0: i32, %arg1: memref<128x2xf32, #tpu.memory_space<vmem>>, %arg2: memref<2x64xf32, #tpu.memory_space<vmem>>, %arg3: memref<1x64xf32, #tpu.memory_space<vmem>>, %arg4: memref<128x64xf32, #tpu.memory_space<vmem>>) attributes {dimension_semantics = [#tpu.dimension_semantics<parallel>], iteration_bounds = array<i64: 2>, scalar_prefetch = 0 : i64, scratch_operands = 0 : i64, tpu.core_type = #tpu.core_type<tc>, window_params = [{transform_indices = @transform_0, window_bounds = array<i64: 128, 2>}, {pipeline_mode = #tpu.pipeline_mode<synchronous>, transform_indices = @transform_1, window_bounds = array<i64: 2, 64>}, {pipeline_mode = #tpu.pipeline_mode<synchronous>, transform_indices = @transform_2, window_bounds = array<i64: 1, 64>}, {transform_indices = @transform_3, window_bounds = array<i64: 128, 64>}]} {
    %c0 = arith.constant 0 : index
    %c0_0 = arith.constant 0 : index
    %0 = vector.load %arg1[%c0, %c0_0] : memref<128x2xf32, #tpu.memory_space<vmem>>, vector<128x2xf32>
    %c0_1 = arith.constant 0 : index
    %c0_2 = arith.constant 0 : index
    %1 = vector.load %arg2[%c0_1, %c0_2] : memref<2x64xf32, #tpu.memory_space<vmem>>, vector<2x64xf32>
    %cst = arith.constant dense<0.000000e+00> : vector<128x64xf32>
    %2 = tpu.matmul %0, %1, %cst {dimension_numbers = #tpu.dot_dimension_numbers<[1], [0], [0], [1], [0, 0, 1, 1], [], []>} : vector<128x2xf32>, vector<2x64xf32>, vector<128x64xf32> -> vector<128x64xf32>
    %c0_3 = arith.constant 0 : index
    %c0_4 = arith.constant 0 : index
    %3 = vector.load %arg3[%c0_3, %c0_4] : memref<1x64xf32, #tpu.memory_space<vmem>>, vector<1x64xf32>
    %4 = vector.broadcast %3 : vector<1x64xf32> to vector<128x64xf32>
    %5 = arith.addf %2, %4 : vector<128x64xf32>
    %cst_5 = arith.constant 0.000000e+00 : f32
    %6 = vector.broadcast %cst_5 : f32 to vector<128x64xf32>
    %7 = arith.maximumf %5, %6 : vector<128x64xf32>
    %c0_6 = arith.constant 0 : index
    %c0_7 = arith.constant 0 : index
    %8 = vector.load %arg4[%c0_6, %c0_7] : memref<128x64xf32, #tpu.memory_space<vmem>>, vector<128x64xf32>
    tpu.vector_store %arg4[%c0_6, %c0_7], %7 {strides = array<i32>} : memref<128x64xf32, #tpu.memory_space<vmem>>, vector<128x64xf32>,
    return
  }
  func.func @transform_0(%arg0: i32) -> (i32, i32) {
    %c0_i32 = arith.constant 0 : i32
    %c0_i32_0 = arith.constant 0 : i32
    return %arg0, %c0_i32 : i32, i32
  }
  func.func @transform_1(%arg0: i32) -> (i32, i32) {
    %c0_i32 = arith.constant 0 : i32
    %c0_i32_0 = arith.constant 0 : i32
    %c0_i32_1 = arith.constant 0 : i32
    return %c0_i32, %c0_i32_0 : i32, i32
  }
  func.func @transform_2(%arg0: i32) -> (i32, i32) {
    %c0_i32 = arith.constant 0 : i32
    %c0_i32_0 = arith.constant 0 : i32
    %c0_i32_1 = arith.constant 0 : i32
    return %c0_i32, %c0_i32_0 : i32, i32
  }
  func.func @transform_3(%arg0: i32) -> (i32, i32) {
    %c0_i32 = arith.constant 0 : i32
    %c0_i32_0 = arith.constant 0 : i32
    return %arg0, %c0_i32 : i32, i32
  }
}

module attributes {stable_mosaic.version = 11 : i64} {
  func.func @_resblock_kernel(%arg0: i32, %arg1: i32, %arg2: memref<1x128x64xf32, #tpu.memory_space<vmem>>, %arg3: memref<1x1x64xf32, #tpu.memory_space<vmem>>, %arg4: memref<1x128x16xf32, #tpu.memory_space<vmem>>, %arg5: memref<1x128x64xf32, #tpu.memory_space<vmem>>, %arg6: memref<64x64xf32, #tpu.memory_space<vmem>>, %arg7: memref<64x64xf32, #tpu.memory_space<vmem>>, %arg8: memref<16x64xf32, #tpu.memory_space<vmem>>, %arg9: memref<16x64xf32, #tpu.memory_space<vmem>>, %arg10: memref<1x64xf32, #tpu.memory_space<vmem>>, %arg11: memref<1x64xf32, #tpu.memory_space<vmem>>, %arg12: memref<64x64xf32, #tpu.memory_space<vmem>>, %arg13: memref<64x64xf32, #tpu.memory_space<vmem>>, %arg14: memref<1x64xf32, #tpu.memory_space<vmem>>, %arg15: memref<1x64xf32, #tpu.memory_space<vmem>>, %arg16: memref<1x128x64xf32, #tpu.memory_space<vmem>>, %arg17: memref<1x128x64xf32, #tpu.memory_space<vmem>>) attributes {dimension_semantics = [#tpu.dimension_semantics<parallel>, #tpu.dimension_semantics<parallel>], iteration_bounds = array<i64: 2, 1>, scalar_prefetch = 0 : i64, scratch_operands = 0 : i64, tpu.core_type = #tpu.core_type<tc>, window_params = [{transform_indices = @transform_0, window_bounds = array<i64: 1, 128, 64>}, {transform_indices = @transform_1, window_bounds = array<i64: 1, 1, 64>}, {transform_indices = @transform_2, window_bounds = array<i64: 1, 128, 16>}, {transform_indices = @transform_3, window_bounds = array<i64: 1, 128, 64>}, {pipeline_mode = #tpu.pipeline_mode<synchronous>, transform_indices = @transform_4, window_bounds = array<i64: 64, 64>}, {pipeline_mode = #tpu.pipeline_mode<synchronous>, transform_indices = @transform_5, window_bounds = array<i64: 64, 64>}, {pipeline_mode = #tpu.pipeline_mode<synchronous>, transform_indices = @transform_6, window_bounds = array<i64: 16, 64>}, {pipeline_mode = #tpu.pipeline_mode<synchronous>, transform_indices = @transform_7, window_bounds = array<i64: 16, 64>}, {pipeline_mode = #tpu.pipeline_mode<synchronous>, transform_indices = @transform_8, window_bounds = array<i64: 1, 64>}, {pipeline_mode = #tpu.pipeline_mode<synchronous>, transform_indices = @transform_9, window_bounds = array<i64: 1, 64>}, {pipeline_mode = #tpu.pipeline_mode<synchronous>, transform_indices = @transform_10, window_bounds = array<i64: 64, 64>}, {pipeline_mode = #tpu.pipeline_mode<synchronous>, transform_indices = @transform_11, window_bounds = array<i64: 64, 64>}, {pipeline_mode = #tpu.pipeline_mode<synchronous>, transform_indices = @transform_12, window_bounds = array<i64: 1, 64>}, {pipeline_mode = #tpu.pipeline_mode<synchronous>, transform_indices = @transform_13, window_bounds = array<i64: 1, 64>}, {transform_indices = @transform_14, window_bounds = array<i64: 1, 128, 64>}, {transform_indices = @transform_15, window_bounds = array<i64: 1, 128, 64>}]} {
    %c0 = arith.constant 0 : index
    %c0_0 = arith.constant 0 : index
    %c0_1 = arith.constant 0 : index
    %0 = vector.load %arg2[%c0, %c0_0, %c0_1] : memref<1x128x64xf32, #tpu.memory_space<vmem>>, vector<1x128x64xf32>
    %1 = vector.shape_cast %0 : vector<1x128x64xf32> to vector<128x64xf32>
    %c0_2 = arith.constant 0 : index
    %c0_3 = arith.constant 0 : index
    %c0_4 = arith.constant 0 : index
    %2 = vector.load %arg3[%c0_2, %c0_3, %c0_4] : memref<1x1x64xf32, #tpu.memory_space<vmem>>, vector<1x1x64xf32>
    %3 = vector.shape_cast %2 : vector<1x1x64xf32> to vector<1x64xf32>
    %4 = vector.broadcast %3 : vector<1x64xf32> to vector<128x64xf32>
    %5 = arith.addf %1, %4 : vector<128x64xf32>
    %c0_5 = arith.constant 0 : index
    %c0_6 = arith.constant 0 : index
    %c0_7 = arith.constant 0 : index
    %6 = vector.load %arg4[%c0_5, %c0_6, %c0_7] : memref<1x128x16xf32, #tpu.memory_space<vmem>>, vector<1x128x16xf32>
    %7 = vector.shape_cast %6 : vector<1x128x16xf32> to vector<128x16xf32>
    %c0_8 = arith.constant 0 : index
    %c0_9 = arith.constant 0 : index
    %8 = vector.load %arg6[%c0_8, %c0_9] : memref<64x64xf32, #tpu.memory_space<vmem>>, vector<64x64xf32>
    %cst = arith.constant dense<0.000000e+00> : vector<128x64xf32>
    %9 = tpu.matmul %5, %8, %cst {dimension_numbers = #tpu.dot_dimension_numbers<[1], [0], [0], [1], [0, 0, 1, 1], [], []>} : vector<128x64xf32>, vector<64x64xf32>, vector<128x64xf32> -> vector<128x64xf32>
    %c0_10 = arith.constant 0 : index
    %c0_11 = arith.constant 0 : index
    %10 = vector.load %arg8[%c0_10, %c0_11] : memref<16x64xf32, #tpu.memory_space<vmem>>, vector<16x64xf32>
    %cst_12 = arith.constant dense<0.000000e+00> : vector<128x64xf32>
    %11 = tpu.matmul %7, %10, %cst_12 {dimension_numbers = #tpu.dot_dimension_numbers<[1], [0], [0], [1], [0, 0, 1, 1], [], []>} : vector<128x16xf32>, vector<16x64xf32>, vector<128x64xf32> -> vector<128x64xf32>
    %12 = arith.addf %9, %11 : vector<128x64xf32>
    %c0_13 = arith.constant 0 : index
    %c0_14 = arith.constant 0 : index
    %13 = vector.load %arg10[%c0_13, %c0_14] : memref<1x64xf32, #tpu.memory_space<vmem>>, vector<1x64xf32>
    %14 = vector.broadcast %13 : vector<1x64xf32> to vector<128x64xf32>
    %15 = arith.addf %12, %14 : vector<128x64xf32>
    %c0_15 = arith.constant 0 : index
    %c0_16 = arith.constant 0 : index
    %16 = vector.load %arg7[%c0_15, %c0_16] : memref<64x64xf32, #tpu.memory_space<vmem>>, vector<64x64xf32>
    %cst_17 = arith.constant dense<0.000000e+00> : vector<128x64xf32>
    %17 = tpu.matmul %5, %16, %cst_17 {dimension_numbers = #tpu.dot_dimension_numbers<[1], [0], [0], [1], [0, 0, 1, 1], [], []>} : vector<128x64xf32>, vector<64x64xf32>, vector<128x64xf32> -> vector<128x64xf32>
    %c0_18 = arith.constant 0 : index
    %c0_19 = arith.constant 0 : index
    %18 = vector.load %arg9[%c0_18, %c0_19] : memref<16x64xf32, #tpu.memory_space<vmem>>, vector<16x64xf32>
    %cst_20 = arith.constant dense<0.000000e+00> : vector<128x64xf32>
    %19 = tpu.matmul %7, %18, %cst_20 {dimension_numbers = #tpu.dot_dimension_numbers<[1], [0], [0], [1], [0, 0, 1, 1], [], []>} : vector<128x16xf32>, vector<16x64xf32>, vector<128x64xf32> -> vector<128x64xf32>
    %20 = arith.addf %17, %19 : vector<128x64xf32>
    %c0_21 = arith.constant 0 : index
    %c0_22 = arith.constant 0 : index
    %21 = vector.load %arg11[%c0_21, %c0_22] : memref<1x64xf32, #tpu.memory_space<vmem>>, vector<1x64xf32>
    %22 = vector.broadcast %21 : vector<1x64xf32> to vector<128x64xf32>
    %23 = arith.addf %20, %22 : vector<128x64xf32>
    %24 = arith.negf %15 : vector<128x64xf32>
    %25 = math.exp %24 : vector<128x64xf32>
    %cst_23 = arith.constant 1.000000e+00 : f32
    %26 = vector.broadcast %cst_23 : f32 to vector<128x64xf32>
    %27 = arith.addf %26, %25 : vector<128x64xf32>
    %28 = arith.divf %26, %27 : vector<128x64xf32>
    %29 = math.tanh %23 : vector<128x64xf32>
    %30 = arith.mulf %28, %29 : vector<128x64xf32>
    %c0_24 = arith.constant 0 : index
    %c0_25 = arith.constant 0 : index
    %31 = vector.load %arg12[%c0_24, %c0_25] : memref<64x64xf32, #tpu.memory_space<vmem>>, vector<64x64xf32>
    %cst_26 = arith.constant dense<0.000000e+00> : vector<128x64xf32>
    %32 = tpu.matmul %30, %31, %cst_26 {dimension_numbers = #tpu.dot_dimension_numbers<[1], [0], [0], [1], [0, 0, 1, 1], [], []>} : vector<128x64xf32>, vector<64x64xf32>, vector<128x64xf32> -> vector<128x64xf32>
    %c0_27 = arith.constant 0 : index
    %c0_28 = arith.constant 0 : index
    %33 = vector.load %arg14[%c0_27, %c0_28] : memref<1x64xf32, #tpu.memory_space<vmem>>, vector<1x64xf32>
    %34 = vector.broadcast %33 : vector<1x64xf32> to vector<128x64xf32>
    %35 = arith.addf %32, %34 : vector<128x64xf32>
    %c0_29 = arith.constant 0 : index
    %c0_30 = arith.constant 0 : index
    %36 = vector.load %arg13[%c0_29, %c0_30] : memref<64x64xf32, #tpu.memory_space<vmem>>, vector<64x64xf32>
    %cst_31 = arith.constant dense<0.000000e+00> : vector<128x64xf32>
    %37 = tpu.matmul %30, %36, %cst_31 {dimension_numbers = #tpu.dot_dimension_numbers<[1], [0], [0], [1], [0, 0, 1, 1], [], []>} : vector<128x64xf32>, vector<64x64xf32>, vector<128x64xf32> -> vector<128x64xf32>
    %c0_32 = arith.constant 0 : index
    %c0_33 = arith.constant 0 : index
    %38 = vector.load %arg15[%c0_32, %c0_33] : memref<1x64xf32, #tpu.memory_space<vmem>>, vector<1x64xf32>
    %39 = vector.broadcast %38 : vector<1x64xf32> to vector<128x64xf32>
    %40 = arith.addf %37, %39 : vector<128x64xf32>
    %41 = arith.addf %1, %35 : vector<128x64xf32>
    %cst_34 = arith.constant 0.707106769 : f32
    %42 = vector.broadcast %cst_34 : f32 to vector<128x64xf32>
    %43 = arith.mulf %41, %42 : vector<128x64xf32>
    %c0_35 = arith.constant 0 : index
    %c0_36 = arith.constant 0 : index
    %c0_37 = arith.constant 0 : index
    %44 = vector.load %arg16[%c0_35, %c0_36, %c0_37] : memref<1x128x64xf32, #tpu.memory_space<vmem>>, vector<1x128x64xf32>
    %45 = vector.shape_cast %44 : vector<1x128x64xf32> to vector<128x64xf32>
    %46 = vector.shape_cast %43 : vector<128x64xf32> to vector<1x128x64xf32>
    tpu.vector_store %arg16[%c0_35, %c0_36, %c0_37], %46 {strides = array<i32>} : memref<1x128x64xf32, #tpu.memory_space<vmem>>, vector<1x128x64xf32>,
    %c0_38 = arith.constant 0 : index
    %c0_39 = arith.constant 0 : index
    %c0_40 = arith.constant 0 : index
    %47 = vector.load %arg5[%c0_38, %c0_39, %c0_40] : memref<1x128x64xf32, #tpu.memory_space<vmem>>, vector<1x128x64xf32>
    %48 = vector.shape_cast %47 : vector<1x128x64xf32> to vector<128x64xf32>
    %49 = arith.addf %48, %40 : vector<128x64xf32>
    %c0_41 = arith.constant 0 : index
    %c0_42 = arith.constant 0 : index
    %c0_43 = arith.constant 0 : index
    %50 = vector.load %arg17[%c0_41, %c0_42, %c0_43] : memref<1x128x64xf32, #tpu.memory_space<vmem>>, vector<1x128x64xf32>
    %51 = vector.shape_cast %50 : vector<1x128x64xf32> to vector<128x64xf32>
    %52 = vector.shape_cast %49 : vector<128x64xf32> to vector<1x128x64xf32>
    tpu.vector_store %arg17[%c0_41, %c0_42, %c0_43], %52 {strides = array<i32>} : memref<1x128x64xf32, #tpu.memory_space<vmem>>, vector<1x128x64xf32>,
    return
  }
  func.func @transform_0(%arg0: i32, %arg1: i32) -> (i32, i32, i32) {
    %c0_i32 = arith.constant 0 : i32
    %c0_i32_0 = arith.constant 0 : i32
    return %arg0, %arg1, %c0_i32 : i32, i32, i32
  }
  func.func @transform_1(%arg0: i32, %arg1: i32) -> (i32, i32, i32) {
    %c0_i32 = arith.constant 0 : i32
    %c0_i32_0 = arith.constant 0 : i32
    %c0_i32_1 = arith.constant 0 : i32
    return %arg0, %c0_i32, %c0_i32_0 : i32, i32, i32
  }
  func.func @transform_2(%arg0: i32, %arg1: i32) -> (i32, i32, i32) {
    %c0_i32 = arith.constant 0 : i32
    %c0_i32_0 = arith.constant 0 : i32
    return %arg0, %arg1, %c0_i32 : i32, i32, i32
  }
  func.func @transform_3(%arg0: i32, %arg1: i32) -> (i32, i32, i32) {
    %c0_i32 = arith.constant 0 : i32
    %c0_i32_0 = arith.constant 0 : i32
    return %arg0, %arg1, %c0_i32 : i32, i32, i32
  }
  func.func @transform_4(%arg0: i32, %arg1: i32) -> (i32, i32) {
    %c0_i32 = arith.constant 0 : i32
    %c0_i32_0 = arith.constant 0 : i32
    %c0_i32_1 = arith.constant 0 : i32
    return %c0_i32, %c0_i32_0 : i32, i32
  }
  func.func @transform_5(%arg0: i32, %arg1: i32) -> (i32, i32) {
    %c0_i32 = arith.constant 0 : i32
    %c0_i32_0 = arith.constant 0 : i32
    %c0_i32_1 = arith.constant 0 : i32
    return %c0_i32, %c0_i32_0 : i32, i32
  }
  func.func @transform_6(%arg0: i32, %arg1: i32) -> (i32, i32) {
    %c0_i32 = arith.constant 0 : i32
    %c0_i32_0 = arith.constant 0 : i32
    %c0_i32_1 = arith.constant 0 : i32
    return %c0_i32, %c0_i32_0 : i32, i32
  }
  func.func @transform_7(%arg0: i32, %arg1: i32) -> (i32, i32) {
    %c0_i32 = arith.constant 0 : i32
    %c0_i32_0 = arith.constant 0 : i32
    %c0_i32_1 = arith.constant 0 : i32
    return %c0_i32, %c0_i32_0 : i32, i32
  }
  func.func @transform_8(%arg0: i32, %arg1: i32) -> (i32, i32) {
    %c0_i32 = arith.constant 0 : i32
    %c0_i32_0 = arith.constant 0 : i32
    %c0_i32_1 = arith.constant 0 : i32
    return %c0_i32, %c0_i32_0 : i32, i32
  }
  func.func @transform_9(%arg0: i32, %arg1: i32) -> (i32, i32) {
    %c0_i32 = arith.constant 0 : i32
    %c0_i32_0 = arith.constant 0 : i32
    %c0_i32_1 = arith.constant 0 : i32
    return %c0_i32, %c0_i32_0 : i32, i32
  }
  func.func @transform_10(%arg0: i32, %arg1: i32) -> (i32, i32) {
    %c0_i32 = arith.constant 0 : i32
    %c0_i32_0 = arith.constant 0 : i32
    %c0_i32_1 = arith.constant 0 : i32
    return %c0_i32, %c0_i32_0 : i32, i32
  }
  func.func @transform_11(%arg0: i32, %arg1: i32) -> (i32, i32) {
    %c0_i32 = arith.constant 0 : i32
    %c0_i32_0 = arith.constant 0 : i32
    %c0_i32_1 = arith.constant 0 : i32
    return %c0_i32, %c0_i32_0 : i32, i32
  }
  func.func @transform_12(%arg0: i32, %arg1: i32) -> (i32, i32) {
    %c0_i32 = arith.constant 0 : i32
    %c0_i32_0 = arith.constant 0 : i32
    %c0_i32_1 = arith.constant 0 : i32
    return %c0_i32, %c0_i32_0 : i32, i32
  }
  func.func @transform_13(%arg0: i32, %arg1: i32) -> (i32, i32) {
    %c0_i32 = arith.constant 0 : i32
    %c0_i32_0 = arith.constant 0 : i32
    %c0_i32_1 = arith.constant 0 : i32
    return %c0_i32, %c0_i32_0 : i32, i32
  }
  func.func @transform_14(%arg0: i32, %arg1: i32) -> (i32, i32, i32) {
    %c0_i32 = arith.constant 0 : i32
    %c0_i32_0 = arith.constant 0 : i32
    return %arg0, %arg1, %c0_i32 : i32, i32, i32
  }
  func.func @transform_15(%arg0: i32, %arg1: i32) -> (i32, i32, i32) {
    %c0_i32 = arith.constant 0 : i32
    %c0_i32_0 = arith.constant 0 : i32
    return %arg0, %arg1, %c0_i32 : i32, i32, i32
  }
}

module attributes {stable_mosaic.version = 11 : i64} {
  func.func @_resblock_kernel(%arg0: i32, %arg1: i32, %arg2: memref<1x128x64xf32, #tpu.memory_space<vmem>>, %arg3: memref<1x1x64xf32, #tpu.memory_space<vmem>>, %arg4: memref<1x128x16xf32, #tpu.memory_space<vmem>>, %arg5: memref<1x128x64xf32, #tpu.memory_space<vmem>>, %arg6: memref<64x64xf32, #tpu.memory_space<vmem>>, %arg7: memref<64x64xf32, #tpu.memory_space<vmem>>, %arg8: memref<16x64xf32, #tpu.memory_space<vmem>>, %arg9: memref<16x64xf32, #tpu.memory_space<vmem>>, %arg10: memref<1x64xf32, #tpu.memory_space<vmem>>, %arg11: memref<1x64xf32, #tpu.memory_space<vmem>>, %arg12: memref<64x64xf32, #tpu.memory_space<vmem>>, %arg13: memref<64x64xf32, #tpu.memory_space<vmem>>, %arg14: memref<1x64xf32, #tpu.memory_space<vmem>>, %arg15: memref<1x64xf32, #tpu.memory_space<vmem>>, %arg16: memref<1x128x64xf32, #tpu.memory_space<vmem>>, %arg17: memref<1x128x64xf32, #tpu.memory_space<vmem>>) attributes {dimension_semantics = [#tpu.dimension_semantics<parallel>, #tpu.dimension_semantics<parallel>], iteration_bounds = array<i64: 2, 1>, scalar_prefetch = 0 : i64, scratch_operands = 0 : i64, tpu.core_type = #tpu.core_type<tc>, window_params = [{transform_indices = @transform_0, window_bounds = array<i64: 1, 128, 64>}, {transform_indices = @transform_1, window_bounds = array<i64: 1, 1, 64>}, {transform_indices = @transform_2, window_bounds = array<i64: 1, 128, 16>}, {transform_indices = @transform_3, window_bounds = array<i64: 1, 128, 64>}, {pipeline_mode = #tpu.pipeline_mode<synchronous>, transform_indices = @transform_4, window_bounds = array<i64: 64, 64>}, {pipeline_mode = #tpu.pipeline_mode<synchronous>, transform_indices = @transform_5, window_bounds = array<i64: 64, 64>}, {pipeline_mode = #tpu.pipeline_mode<synchronous>, transform_indices = @transform_6, window_bounds = array<i64: 16, 64>}, {pipeline_mode = #tpu.pipeline_mode<synchronous>, transform_indices = @transform_7, window_bounds = array<i64: 16, 64>}, {pipeline_mode = #tpu.pipeline_mode<synchronous>, transform_indices = @transform_8, window_bounds = array<i64: 1, 64>}, {pipeline_mode = #tpu.pipeline_mode<synchronous>, transform_indices = @transform_9, window_bounds = array<i64: 1, 64>}, {pipeline_mode = #tpu.pipeline_mode<synchronous>, transform_indices = @transform_10, window_bounds = array<i64: 64, 64>}, {pipeline_mode = #tpu.pipeline_mode<synchronous>, transform_indices = @transform_11, window_bounds = array<i64: 64, 64>}, {pipeline_mode = #tpu.pipeline_mode<synchronous>, transform_indices = @transform_12, window_bounds = array<i64: 1, 64>}, {pipeline_mode = #tpu.pipeline_mode<synchronous>, transform_indices = @transform_13, window_bounds = array<i64: 1, 64>}, {transform_indices = @transform_14, window_bounds = array<i64: 1, 128, 64>}, {transform_indices = @transform_15, window_bounds = array<i64: 1, 128, 64>}]} {
    %c0 = arith.constant 0 : index
    %c0_0 = arith.constant 0 : index
    %c0_1 = arith.constant 0 : index
    %0 = vector.load %arg2[%c0, %c0_0, %c0_1] : memref<1x128x64xf32, #tpu.memory_space<vmem>>, vector<1x128x64xf32>
    %1 = vector.shape_cast %0 : vector<1x128x64xf32> to vector<128x64xf32>
    %c0_2 = arith.constant 0 : index
    %c0_3 = arith.constant 0 : index
    %c0_4 = arith.constant 0 : index
    %2 = vector.load %arg3[%c0_2, %c0_3, %c0_4] : memref<1x1x64xf32, #tpu.memory_space<vmem>>, vector<1x1x64xf32>
    %3 = vector.shape_cast %2 : vector<1x1x64xf32> to vector<1x64xf32>
    %4 = vector.broadcast %3 : vector<1x64xf32> to vector<128x64xf32>
    %5 = arith.addf %1, %4 : vector<128x64xf32>
    %c0_5 = arith.constant 0 : index
    %c0_6 = arith.constant 0 : index
    %c0_7 = arith.constant 0 : index
    %6 = vector.load %arg4[%c0_5, %c0_6, %c0_7] : memref<1x128x16xf32, #tpu.memory_space<vmem>>, vector<1x128x16xf32>
    %7 = vector.shape_cast %6 : vector<1x128x16xf32> to vector<128x16xf32>
    %c0_8 = arith.constant 0 : index
    %c0_9 = arith.constant 0 : index
    %8 = vector.load %arg6[%c0_8, %c0_9] : memref<64x64xf32, #tpu.memory_space<vmem>>, vector<64x64xf32>
    %cst = arith.constant dense<0.000000e+00> : vector<128x64xf32>
    %9 = tpu.matmul %5, %8, %cst {dimension_numbers = #tpu.dot_dimension_numbers<[1], [0], [0], [1], [0, 0, 1, 1], [], []>} : vector<128x64xf32>, vector<64x64xf32>, vector<128x64xf32> -> vector<128x64xf32>
    %c0_10 = arith.constant 0 : index
    %c0_11 = arith.constant 0 : index
    %10 = vector.load %arg8[%c0_10, %c0_11] : memref<16x64xf32, #tpu.memory_space<vmem>>, vector<16x64xf32>
    %cst_12 = arith.constant dense<0.000000e+00> : vector<128x64xf32>
    %11 = tpu.matmul %7, %10, %cst_12 {dimension_numbers = #tpu.dot_dimension_numbers<[1], [0], [0], [1], [0, 0, 1, 1], [], []>} : vector<128x16xf32>, vector<16x64xf32>, vector<128x64xf32> -> vector<128x64xf32>
    %12 = arith.addf %9, %11 : vector<128x64xf32>
    %c0_13 = arith.constant 0 : index
    %c0_14 = arith.constant 0 : index
    %13 = vector.load %arg10[%c0_13, %c0_14] : memref<1x64xf32, #tpu.memory_space<vmem>>, vector<1x64xf32>
    %14 = vector.broadcast %13 : vector<1x64xf32> to vector<128x64xf32>
    %15 = arith.addf %12, %14 : vector<128x64xf32>
    %c0_15 = arith.constant 0 : index
    %c0_16 = arith.constant 0 : index
    %16 = vector.load %arg7[%c0_15, %c0_16] : memref<64x64xf32, #tpu.memory_space<vmem>>, vector<64x64xf32>
    %cst_17 = arith.constant dense<0.000000e+00> : vector<128x64xf32>
    %17 = tpu.matmul %5, %16, %cst_17 {dimension_numbers = #tpu.dot_dimension_numbers<[1], [0], [0], [1], [0, 0, 1, 1], [], []>} : vector<128x64xf32>, vector<64x64xf32>, vector<128x64xf32> -> vector<128x64xf32>
    %c0_18 = arith.constant 0 : index
    %c0_19 = arith.constant 0 : index
    %18 = vector.load %arg9[%c0_18, %c0_19] : memref<16x64xf32, #tpu.memory_space<vmem>>, vector<16x64xf32>
    %cst_20 = arith.constant dense<0.000000e+00> : vector<128x64xf32>
    %19 = tpu.matmul %7, %18, %cst_20 {dimension_numbers = #tpu.dot_dimension_numbers<[1], [0], [0], [1], [0, 0, 1, 1], [], []>} : vector<128x16xf32>, vector<16x64xf32>, vector<128x64xf32> -> vector<128x64xf32>
    %20 = arith.addf %17, %19 : vector<128x64xf32>
    %c0_21 = arith.constant 0 : index
    %c0_22 = arith.constant 0 : index
    %21 = vector.load %arg11[%c0_21, %c0_22] : memref<1x64xf32, #tpu.memory_space<vmem>>, vector<1x64xf32>
    %22 = vector.broadcast %21 : vector<1x64xf32> to vector<128x64xf32>
    %23 = arith.addf %20, %22 : vector<128x64xf32>
    %24 = arith.negf %15 : vector<128x64xf32>
    %25 = math.exp %24 : vector<128x64xf32>
    %cst_23 = arith.constant 1.000000e+00 : f32
    %26 = vector.broadcast %cst_23 : f32 to vector<128x64xf32>
    %27 = arith.addf %26, %25 : vector<128x64xf32>
    %28 = arith.divf %26, %27 : vector<128x64xf32>
    %29 = math.tanh %23 : vector<128x64xf32>
    %30 = arith.mulf %28, %29 : vector<128x64xf32>
    %c0_24 = arith.constant 0 : index
    %c0_25 = arith.constant 0 : index
    %31 = vector.load %arg12[%c0_24, %c0_25] : memref<64x64xf32, #tpu.memory_space<vmem>>, vector<64x64xf32>
    %cst_26 = arith.constant dense<0.000000e+00> : vector<128x64xf32>
    %32 = tpu.matmul %30, %31, %cst_26 {dimension_numbers = #tpu.dot_dimension_numbers<[1], [0], [0], [1], [0, 0, 1, 1], [], []>} : vector<128x64xf32>, vector<64x64xf32>, vector<128x64xf32> -> vector<128x64xf32>
    %c0_27 = arith.constant 0 : index
    %c0_28 = arith.constant 0 : index
    %33 = vector.load %arg14[%c0_27, %c0_28] : memref<1x64xf32, #tpu.memory_space<vmem>>, vector<1x64xf32>
    %34 = vector.broadcast %33 : vector<1x64xf32> to vector<128x64xf32>
    %35 = arith.addf %32, %34 : vector<128x64xf32>
    %c0_29 = arith.constant 0 : index
    %c0_30 = arith.constant 0 : index
    %36 = vector.load %arg13[%c0_29, %c0_30] : memref<64x64xf32, #tpu.memory_space<vmem>>, vector<64x64xf32>
    %cst_31 = arith.constant dense<0.000000e+00> : vector<128x64xf32>
    %37 = tpu.matmul %30, %36, %cst_31 {dimension_numbers = #tpu.dot_dimension_numbers<[1], [0], [0], [1], [0, 0, 1, 1], [], []>} : vector<128x64xf32>, vector<64x64xf32>, vector<128x64xf32> -> vector<128x64xf32>
    %c0_32 = arith.constant 0 : index
    %c0_33 = arith.constant 0 : index
    %38 = vector.load %arg15[%c0_32, %c0_33] : memref<1x64xf32, #tpu.memory_space<vmem>>, vector<1x64xf32>
    %39 = vector.broadcast %38 : vector<1x64xf32> to vector<128x64xf32>
    %40 = arith.addf %37, %39 : vector<128x64xf32>
    %41 = arith.addf %1, %35 : vector<128x64xf32>
    %cst_34 = arith.constant 0.707106769 : f32
    %42 = vector.broadcast %cst_34 : f32 to vector<128x64xf32>
    %43 = arith.mulf %41, %42 : vector<128x64xf32>
    %c0_35 = arith.constant 0 : index
    %c0_36 = arith.constant 0 : index
    %c0_37 = arith.constant 0 : index
    %44 = vector.load %arg16[%c0_35, %c0_36, %c0_37] : memref<1x128x64xf32, #tpu.memory_space<vmem>>, vector<1x128x64xf32>
    %45 = vector.shape_cast %44 : vector<1x128x64xf32> to vector<128x64xf32>
    %46 = vector.shape_cast %43 : vector<128x64xf32> to vector<1x128x64xf32>
    tpu.vector_store %arg16[%c0_35, %c0_36, %c0_37], %46 {strides = array<i32>} : memref<1x128x64xf32, #tpu.memory_space<vmem>>, vector<1x128x64xf32>,
    %c0_38 = arith.constant 0 : index
    %c0_39 = arith.constant 0 : index
    %c0_40 = arith.constant 0 : index
    %47 = vector.load %arg5[%c0_38, %c0_39, %c0_40] : memref<1x128x64xf32, #tpu.memory_space<vmem>>, vector<1x128x64xf32>
    %48 = vector.shape_cast %47 : vector<1x128x64xf32> to vector<128x64xf32>
    %49 = arith.addf %48, %40 : vector<128x64xf32>
    %c0_41 = arith.constant 0 : index
    %c0_42 = arith.constant 0 : index
    %c0_43 = arith.constant 0 : index
    %50 = vector.load %arg17[%c0_41, %c0_42, %c0_43] : memref<1x128x64xf32, #tpu.memory_space<vmem>>, vector<1x128x64xf32>
    %51 = vector.shape_cast %50 : vector<1x128x64xf32> to vector<128x64xf32>
    %52 = vector.shape_cast %49 : vector<128x64xf32> to vector<1x128x64xf32>
    tpu.vector_store %arg17[%c0_41, %c0_42, %c0_43], %52 {strides = array<i32>} : memref<1x128x64xf32, #tpu.memory_space<vmem>>, vector<1x128x64xf32>,
    return
  }
  func.func @transform_0(%arg0: i32, %arg1: i32) -> (i32, i32, i32) {
    %c0_i32 = arith.constant 0 : i32
    %c0_i32_0 = arith.constant 0 : i32
    return %arg0, %arg1, %c0_i32 : i32, i32, i32
  }
  func.func @transform_1(%arg0: i32, %arg1: i32) -> (i32, i32, i32) {
    %c0_i32 = arith.constant 0 : i32
    %c0_i32_0 = arith.constant 0 : i32
    %c0_i32_1 = arith.constant 0 : i32
    return %arg0, %c0_i32, %c0_i32_0 : i32, i32, i32
  }
  func.func @transform_2(%arg0: i32, %arg1: i32) -> (i32, i32, i32) {
    %c0_i32 = arith.constant 0 : i32
    %c0_i32_0 = arith.constant 0 : i32
    return %arg0, %arg1, %c0_i32 : i32, i32, i32
  }
  func.func @transform_3(%arg0: i32, %arg1: i32) -> (i32, i32, i32) {
    %c0_i32 = arith.constant 0 : i32
    %c0_i32_0 = arith.constant 0 : i32
    return %arg0, %arg1, %c0_i32 : i32, i32, i32
  }
  func.func @transform_4(%arg0: i32, %arg1: i32) -> (i32, i32) {
    %c0_i32 = arith.constant 0 : i32
    %c0_i32_0 = arith.constant 0 : i32
    %c0_i32_1 = arith.constant 0 : i32
    return %c0_i32, %c0_i32_0 : i32, i32
  }
  func.func @transform_5(%arg0: i32, %arg1: i32) -> (i32, i32) {
    %c0_i32 = arith.constant 0 : i32
    %c0_i32_0 = arith.constant 0 : i32
    %c0_i32_1 = arith.constant 0 : i32
    return %c0_i32, %c0_i32_0 : i32, i32
  }
  func.func @transform_6(%arg0: i32, %arg1: i32) -> (i32, i32) {
    %c0_i32 = arith.constant 0 : i32
    %c0_i32_0 = arith.constant 0 : i32
    %c0_i32_1 = arith.constant 0 : i32
    return %c0_i32, %c0_i32_0 : i32, i32
  }
  func.func @transform_7(%arg0: i32, %arg1: i32) -> (i32, i32) {
    %c0_i32 = arith.constant 0 : i32
    %c0_i32_0 = arith.constant 0 : i32
    %c0_i32_1 = arith.constant 0 : i32
    return %c0_i32, %c0_i32_0 : i32, i32
  }
  func.func @transform_8(%arg0: i32, %arg1: i32) -> (i32, i32) {
    %c0_i32 = arith.constant 0 : i32
    %c0_i32_0 = arith.constant 0 : i32
    %c0_i32_1 = arith.constant 0 : i32
    return %c0_i32, %c0_i32_0 : i32, i32
  }
  func.func @transform_9(%arg0: i32, %arg1: i32) -> (i32, i32) {
    %c0_i32 = arith.constant 0 : i32
    %c0_i32_0 = arith.constant 0 : i32
    %c0_i32_1 = arith.constant 0 : i32
    return %c0_i32, %c0_i32_0 : i32, i32
  }
  func.func @transform_10(%arg0: i32, %arg1: i32) -> (i32, i32) {
    %c0_i32 = arith.constant 0 : i32
    %c0_i32_0 = arith.constant 0 : i32
    %c0_i32_1 = arith.constant 0 : i32
    return %c0_i32, %c0_i32_0 : i32, i32
  }
  func.func @transform_11(%arg0: i32, %arg1: i32) -> (i32, i32) {
    %c0_i32 = arith.constant 0 : i32
    %c0_i32_0 = arith.constant 0 : i32
    %c0_i32_1 = arith.constant 0 : i32
    return %c0_i32, %c0_i32_0 : i32, i32
  }
  func.func @transform_12(%arg0: i32, %arg1: i32) -> (i32, i32) {
    %c0_i32 = arith.constant 0 : i32
    %c0_i32_0 = arith.constant 0 : i32
    %c0_i32_1 = arith.constant 0 : i32
    return %c0_i32, %c0_i32_0 : i32, i32
  }
  func.func @transform_13(%arg0: i32, %arg1: i32) -> (i32, i32) {
    %c0_i32 = arith.constant 0 : i32
    %c0_i32_0 = arith.constant 0 : i32
    %c0_i32_1 = arith.constant 0 : i32
    return %c0_i32, %c0_i32_0 : i32, i32
  }
  func.func @transform_14(%arg0: i32, %arg1: i32) -> (i32, i32, i32) {
    %c0_i32 = arith.constant 0 : i32
    %c0_i32_0 = arith.constant 0 : i32
    return %arg0, %arg1, %c0_i32 : i32, i32, i32
  }
  func.func @transform_15(%arg0: i32, %arg1: i32) -> (i32, i32, i32) {
    %c0_i32 = arith.constant 0 : i32
    %c0_i32_0 = arith.constant 0 : i32
    return %arg0, %arg1, %c0_i32 : i32, i32, i32
  }
}

module attributes {stable_mosaic.version = 11 : i64} {
  func.func @_head_kernel(%arg0: i32, %arg1: memref<128x64xf32, #tpu.memory_space<vmem>>, %arg2: memref<128x64xf32, #tpu.memory_space<vmem>>, %arg3: memref<64x64xf32, #tpu.memory_space<vmem>>, %arg4: memref<1x64xf32, #tpu.memory_space<vmem>>, %arg5: memref<64x64xf32, #tpu.memory_space<vmem>>, %arg6: memref<1x64xf32, #tpu.memory_space<vmem>>, %arg7: memref<64x1xf32, #tpu.memory_space<vmem>>, %arg8: memref<1x1xf32, #tpu.memory_space<vmem>>, %arg9: memref<128x1xf32, #tpu.memory_space<vmem>>) attributes {dimension_semantics = [#tpu.dimension_semantics<parallel>], iteration_bounds = array<i64: 2>, scalar_prefetch = 0 : i64, scratch_operands = 0 : i64, tpu.core_type = #tpu.core_type<tc>, window_params = [{transform_indices = @transform_0, window_bounds = array<i64: 128, 64>}, {transform_indices = @transform_1, window_bounds = array<i64: 128, 64>}, {pipeline_mode = #tpu.pipeline_mode<synchronous>, transform_indices = @transform_2, window_bounds = array<i64: 64, 64>}, {pipeline_mode = #tpu.pipeline_mode<synchronous>, transform_indices = @transform_3, window_bounds = array<i64: 1, 64>}, {pipeline_mode = #tpu.pipeline_mode<synchronous>, transform_indices = @transform_4, window_bounds = array<i64: 64, 64>}, {pipeline_mode = #tpu.pipeline_mode<synchronous>, transform_indices = @transform_5, window_bounds = array<i64: 1, 64>}, {pipeline_mode = #tpu.pipeline_mode<synchronous>, transform_indices = @transform_6, window_bounds = array<i64: 64, 1>}, {pipeline_mode = #tpu.pipeline_mode<synchronous>, transform_indices = @transform_7, window_bounds = array<i64: 1, 1>}, {transform_indices = @transform_8, window_bounds = array<i64: 128, 1>}]} {
    %c0 = arith.constant 0 : index
    %c0_0 = arith.constant 0 : index
    %0 = vector.load %arg2[%c0, %c0_0] : memref<128x64xf32, #tpu.memory_space<vmem>>, vector<128x64xf32>
    %c0_1 = arith.constant 0 : index
    %c0_2 = arith.constant 0 : index
    %1 = vector.load %arg3[%c0_1, %c0_2] : memref<64x64xf32, #tpu.memory_space<vmem>>, vector<64x64xf32>
    %cst = arith.constant dense<0.000000e+00> : vector<128x64xf32>
    %2 = tpu.matmul %0, %1, %cst {dimension_numbers = #tpu.dot_dimension_numbers<[1], [0], [0], [1], [0, 0, 1, 1], [], []>} : vector<128x64xf32>, vector<64x64xf32>, vector<128x64xf32> -> vector<128x64xf32>
    %c0_3 = arith.constant 0 : index
    %c0_4 = arith.constant 0 : index
    %3 = vector.load %arg4[%c0_3, %c0_4] : memref<1x64xf32, #tpu.memory_space<vmem>>, vector<1x64xf32>
    %4 = vector.broadcast %3 : vector<1x64xf32> to vector<128x64xf32>
    %5 = arith.addf %2, %4 : vector<128x64xf32>
    %c0_5 = arith.constant 0 : index
    %c0_6 = arith.constant 0 : index
    %6 = vector.load %arg1[%c0_5, %c0_6] : memref<128x64xf32, #tpu.memory_space<vmem>>, vector<128x64xf32>
    %7 = arith.addf %6, %5 : vector<128x64xf32>
    %cst_7 = arith.constant 0.707106769 : f32
    %8 = vector.broadcast %cst_7 : f32 to vector<128x64xf32>
    %9 = arith.mulf %7, %8 : vector<128x64xf32>
    %c0_8 = arith.constant 0 : index
    %c0_9 = arith.constant 0 : index
    %10 = vector.load %arg5[%c0_8, %c0_9] : memref<64x64xf32, #tpu.memory_space<vmem>>, vector<64x64xf32>
    %cst_10 = arith.constant dense<0.000000e+00> : vector<128x64xf32>
    %11 = tpu.matmul %9, %10, %cst_10 {dimension_numbers = #tpu.dot_dimension_numbers<[1], [0], [0], [1], [0, 0, 1, 1], [], []>} : vector<128x64xf32>, vector<64x64xf32>, vector<128x64xf32> -> vector<128x64xf32>
    %c0_11 = arith.constant 0 : index
    %c0_12 = arith.constant 0 : index
    %12 = vector.load %arg6[%c0_11, %c0_12] : memref<1x64xf32, #tpu.memory_space<vmem>>, vector<1x64xf32>
    %13 = vector.broadcast %12 : vector<1x64xf32> to vector<128x64xf32>
    %14 = arith.addf %11, %13 : vector<128x64xf32>
    %cst_13 = arith.constant 0.000000e+00 : f32
    %15 = vector.broadcast %cst_13 : f32 to vector<128x64xf32>
    %16 = arith.maximumf %14, %15 : vector<128x64xf32>
    %c0_14 = arith.constant 0 : index
    %c0_15 = arith.constant 0 : index
    %17 = vector.load %arg7[%c0_14, %c0_15] : memref<64x1xf32, #tpu.memory_space<vmem>>, vector<64x1xf32>
    %cst_16 = arith.constant dense<0.000000e+00> : vector<128x1xf32>
    %18 = tpu.matmul %16, %17, %cst_16 {dimension_numbers = #tpu.dot_dimension_numbers<[1], [0], [0], [1], [0, 0, 1, 1], [], []>} : vector<128x64xf32>, vector<64x1xf32>, vector<128x1xf32> -> vector<128x1xf32>
    %c0_17 = arith.constant 0 : index
    %c0_18 = arith.constant 0 : index
    %19 = vector.load %arg8[%c0_17, %c0_18] : memref<1x1xf32, #tpu.memory_space<vmem>>, vector<1x1xf32>
    %20 = vector.broadcast %19 : vector<1x1xf32> to vector<128x1xf32>
    %21 = arith.addf %18, %20 : vector<128x1xf32>
    %c0_19 = arith.constant 0 : index
    %c0_20 = arith.constant 0 : index
    %22 = vector.load %arg9[%c0_19, %c0_20] : memref<128x1xf32, #tpu.memory_space<vmem>>, vector<128x1xf32>
    tpu.vector_store %arg9[%c0_19, %c0_20], %21 {strides = array<i32>} : memref<128x1xf32, #tpu.memory_space<vmem>>, vector<128x1xf32>,
    return
  }
  func.func @transform_0(%arg0: i32) -> (i32, i32) {
    %c0_i32 = arith.constant 0 : i32
    %c0_i32_0 = arith.constant 0 : i32
    return %arg0, %c0_i32 : i32, i32
  }
  func.func @transform_1(%arg0: i32) -> (i32, i32) {
    %c0_i32 = arith.constant 0 : i32
    %c0_i32_0 = arith.constant 0 : i32
    return %arg0, %c0_i32 : i32, i32
  }
  func.func @transform_2(%arg0: i32) -> (i32, i32) {
    %c0_i32 = arith.constant 0 : i32
    %c0_i32_0 = arith.constant 0 : i32
    %c0_i32_1 = arith.constant 0 : i32
    return %c0_i32, %c0_i32_0 : i32, i32
  }
  func.func @transform_3(%arg0: i32) -> (i32, i32) {
    %c0_i32 = arith.constant 0 : i32
    %c0_i32_0 = arith.constant 0 : i32
    %c0_i32_1 = arith.constant 0 : i32
    return %c0_i32, %c0_i32_0 : i32, i32
  }
  func.func @transform_4(%arg0: i32) -> (i32, i32) {
    %c0_i32 = arith.constant 0 : i32
    %c0_i32_0 = arith.constant 0 : i32
    %c0_i32_1 = arith.constant 0 : i32
    return %c0_i32, %c0_i32_0 : i32, i32
  }
  func.func @transform_5(%arg0: i32) -> (i32, i32) {
    %c0_i32 = arith.constant 0 : i32
    %c0_i32_0 = arith.constant 0 : i32
    %c0_i32_1 = arith.constant 0 : i32
    return %c0_i32, %c0_i32_0 : i32, i32
  }
  func.func @transform_6(%arg0: i32) -> (i32, i32) {
    %c0_i32 = arith.constant 0 : i32
    %c0_i32_0 = arith.constant 0 : i32
    %c0_i32_1 = arith.constant 0 : i32
    return %c0_i32, %c0_i32_0 : i32, i32
  }
  func.func @transform_7(%arg0: i32) -> (i32, i32) {
    %c0_i32 = arith.constant 0 : i32
    %c0_i32_0 = arith.constant 0 : i32
    %c0_i32_1 = arith.constant 0 : i32
    return %c0_i32, %c0_i32_0 : i32, i32
  }
  func.func @transform_8(%arg0: i32) -> (i32, i32) {
    %c0_i32 = arith.constant 0 : i32
    %c0_i32_0 = arith.constant 0 : i32
    return %arg0, %c0_i32 : i32, i32
  }
}

</mosaic_0001>

<bundles_post_ra>
// kernel: _forward.6
= control target key start
LH: loop header
LB: loop body
LE: loop exit
PB: predicated region body
PF: predicated region fallthrough
CT: control target
= control target key end

     0   :  { %s595_s12 = smov 0   ;;  %s675_s0 = inlined_call_operand.vmem [shape: f32[256,2], index: 0, kind: input, shape index: {}]   ;;  %s676_s1 = inlined_call_operand.vmem [shape: f32[2,64], index: 1, kind: input, shape index: {}]   ;;  %s677_s2 = inlined_call_operand.vmem [shape: f32[1,64], index: 2, kind: input, shape index: {}]   ;;  %s678_s3 = inlined_call_operand.vmem [shape: f32[256,64], index: 3, kind: output, shape index: {}]  }
   0x1 LB: > { %s485_s13 = sadd.s32 4294967295, %s573_s12   ;;  %p489_p0 = scmp.ge.s32.totalorder %s573_s12, 1  ;;  %s573_s12 = sphi %s595_s12, %s13_s12  }
   0x2   : > { %p138_p1 = scmp.lt.s32.totalorder %s573_s12, 3 }
   0x4   : > { %p139_p2 = pnand %p489_p0, %p138_p1 }
   0x5   : > { %v190_v0 = vld [vmem:[%s676_s1] sm:$0x3] (!%p139_p2)  ;;  %vm247_vm0 = vcmask (!%p139_p2), 1041408   ;;  %s490_s16 = sshll.u32 (!%p139_p2), %s485_s13, 4  ;;  %vm198_vm1 = vcmask (!%p139_p2), 15360   ;;  %vm412_vm2 = vcmask (!%p139_p2), 523264  }
   0x6   : > { %142 = sbr.rel (%p139_p2) target bundleno = 249 (0xf9), region = 32  ;;  %531 = vmatprep.subr.msk.mxu0 (!%p139_p2), %vm247_vm0, %v190_v0  ;;  %557 = vmatprep.subr.msk.mxu1 (!%p139_p2), %vm247_vm0, %v190_v0  ;;  %p163_p3 = scmp.lt.s32.totalorder (!%p139_p2), %s490_s16, 31  ;;  %v494_v17 = vld [vmem:[%s677_s2] ss:$0 sm:$0xff] (!%p139_p2) }
   0x7   : > { %532 = vmatpush3.msk.msra.mxu0 (!%p139_p2), %vm247_vm0, %v190_v0  ;;  %558 = vmatpush3.msk.msra.mxu1 (!%p139_p2), %vm247_vm0, %v190_v0 }
   0xd   : > { %s680_s16 = smov (!%p163_p3, %s490_s16), 31 }
   0xe   : > { %s491_s17 = sshll.u32 %s680_s16, 3 }
   0xf   : > { %s166_s20 = scalar_lea.vmem %s675_s0, %s491_s17  ;;  %s638_s25 = scalar_lea.vmem %s678_s3, %s491_s17 }
  0x10   : > { %v174_v1 = vld [vmem:[%s166_s20] sm:$0xff]  ;;  %v175_v3 = vld [vmem:[%s166_s20 + $0x8] sm:$0xff]  ;;  %v176_v5 = vld [vmem:[%s166_s20 + $0x10] sm:$0xff] }
  0x11   : > { %v182_v2 = vld [vmem:[%s166_s20 + $0x40] sm:$0xff]  ;;  %533 = vmatprep.mubr.msk.f32.mxu0 %vm198_vm1, %v174_v1  ;;  %v183_v4 = vld [vmem:[%s166_s20 + $0x48] sm:$0xff]  ;;  %v184_v6 = vld [vmem:[%s166_s20 + $0x50] sm:$0xff] }
  0x12   : > { %545 = vmatprep.mubr.msk.f32.mxu1 %vm198_vm1, %v182_v2  ;;  %534 = vmatmul.mubr.msk.f32.vlgmr.msra.gmra.mrb[0].mxu0 %vm198_vm1, %v175_v3  ;;  %v177_v7 = vld [vmem:[%s166_s20 + $0x18] sm:$0xff]  ;;  %v178_v9 = vld [vmem:[%s166_s20 + $0x20] sm:$0xff]  ;;  %v179_v11 = vld [vmem:[%s166_s20 + $0x28] sm:$0xff] }
  0x13   : > { %546 = vmatmul.mubr.msk.f32.vlgmr.msra.gmra.mrb[0].mxu1 %vm198_vm1, %v183_v4  ;;  %536 = vmatprep.mubr.msk.f32.mxu0 %vm198_vm1, %v176_v5  ;;  %v185_v8 = vld [vmem:[%s166_s20 + $0x58] sm:$0xff]  ;;  %v186_v10 = vld [vmem:[%s166_s20 + $0x60] sm:$0xff]  ;;  %v187_v12 = vld [vmem:[%s166_s20 + $0x68] sm:$0xff] }
  0x14   : > { %548 = vmatprep.mubr.msk.f32.mxu1 %vm198_vm1, %v184_v6  ;;  %v180_v13 = vld [vmem:[%s166_s20 + $0x30] sm:$0xff]  ;;  %v181_v15 = vld [vmem:[%s166_s20 + $0x38] sm:$0xff] }
  0x15   : > { %v188_v14 = vld [vmem:[%s166_s20 + $0x70] sm:$0xff]  ;;  %v189_v16 = vld [vmem:[%s166_s20 + $0x78] sm:$0xff] }
  0x16   : > { %537 = vmatmul.mubr.msk.f32.gmra.mrb[2].mxu0 %vm198_vm1, %v177_v7 }
  0x17   : > { %549 = vmatmul.mubr.msk.f32.gmra.mrb[2].mxu1 %vm198_vm1, %v185_v8  ;;  %539 = vmatprep.mubr.msk.f32.mxu0 %vm198_vm1, %v178_v9 }
  0x18   : > { %551 = vmatprep.mubr.msk.f32.mxu1 %vm198_vm1, %v186_v10 }
  0x1a   : > { %540 = vmatmul.mubr.msk.f32.gmra.mrb[4].mxu0 %vm198_vm1, %v179_v11 }
  0x1b   : > { %552 = vmatmul.mubr.msk.f32.gmra.mrb[4].mxu1 %vm198_vm1, %v187_v12  ;;  %542 = vmatprep.mubr.msk.f32.mxu0 %vm198_vm1, %v180_v13 }
  0x1c   : > { %554 = vmatprep.mubr.msk.f32.mxu1 %vm198_vm1, %v188_v14 }
  0x1e   : > { %543 = vmatmul.mubr.msk.f32.gmra.mrb[6].mxu0 %vm198_vm1, %v181_v15 }
  0x1f   : > { %555 = vmatmul.mubr.msk.f32.gmra.mrb[6].mxu1 %vm198_vm1, %v189_v16 }
  0xe5   : > { %v535_v18 = vpop.f32.mrb[0].mxu0 }
  0xe6   : > { %v547_v19 = vpop.f32.mrb[0].mxu1  ;;  %v323_v20 = vadd.f32 %v535_v18, %v494_v17  ;;  %v317_v22 = vpop.f32.mrb[1].mxu0 }
  0xe7   : > { %v363_v21 = vadd.f32 %v547_v19, %v494_v17  ;;  %v357_v23 = vpop.f32.mrb[1].mxu1  ;;  %v318_v24 = vadd.f32 %v494_v17, %v317_v22 }
  0xe8   : > { %v358_v25 = vadd.f32 %v494_v17, %v357_v23  ;;  %v397_v26 = vmax.f32 %v323_v20, 0.0 }
  0xe9   : > { %v405_v27 = vmax.f32 %v363_v21, 0.0  ;;  %v396_v28 = vmax.f32 %v318_v24, 0.0  ;;  %v538_v30 = vpop.f32.mrb[2].mxu0 }
  0xea   : > { %v404_v29 = vmax.f32 %v358_v25, 0.0  ;;  %v550_v31 = vpop.f32.mrb[2].mxu1  ;;  %414 = vst.msk [vmem:[%s638_s25 + $0x8] sm:$0xff] %vm412_vm2, %v397_v26  ;;  %v333_v32 = vadd.f32 %v538_v30, %v494_v17  ;;  %v327_v34 = vpop.f32.mrb[3].mxu0 }
  0xeb   : > { %422 = vst.msk [vmem:[%s638_s25 + $0x48] sm:$0xff] %vm412_vm2, %v405_v27  ;;  %v373_v33 = vadd.f32 %v550_v31, %v494_v17  ;;  %v367_v35 = vpop.f32.mrb[3].mxu1  ;;  %413 = vst.msk [vmem:[%s638_s25] sm:$0xff] %vm412_vm2, %v396_v28  ;;  %v328_v36 = vadd.f32 %v494_v17, %v327_v34 }
  0xec   : > { %421 = vst.msk [vmem:[%s638_s25 + $0x40] sm:$0xff] %vm412_vm2, %v404_v29  ;;  %v368_v37 = vadd.f32 %v494_v17, %v367_v35  ;;  %v399_v38 = vmax.f32 %v333_v32, 0.0 }
  0xed   : > { %v407_v39 = vmax.f32 %v373_v33, 0.0  ;;  %v398_v40 = vmax.f32 %v328_v36, 0.0  ;;  %v541_v42 = vpop.f32.mrb[4].mxu0 }
  0xee   : > { %v406_v41 = vmax.f32 %v368_v37, 0.0  ;;  %v553_v43 = vpop.f32.mrb[4].mxu1  ;;  %416 = vst.msk [vmem:[%s638_s25 + $0x18] sm:$0xff] %vm412_vm2, %v399_v38  ;;  %v343_v44 = vadd.f32 %v541_v42, %v494_v17  ;;  %v337_v46 = vpop.f32.mrb[5].mxu0 }
  0xef   : > { %424 = vst.msk [vmem:[%s638_s25 + $0x58] sm:$0xff] %vm412_vm2, %v407_v39  ;;  %v383_v45 = vadd.f32 %v553_v43, %v494_v17  ;;  %v377_v47 = vpop.f32.mrb[5].mxu1  ;;  %415 = vst.msk [vmem:[%s638_s25 + $0x10] sm:$0xff] %vm412_vm2, %v398_v40  ;;  %v338_v48 = vadd.f32 %v494_v17, %v337_v46 }
  0xf0   : > { %423 = vst.msk [vmem:[%s638_s25 + $0x50] sm:$0xff] %vm412_vm2, %v406_v41  ;;  %v378_v49 = vadd.f32 %v494_v17, %v377_v47  ;;  %v401_v50 = vmax.f32 %v343_v44, 0.0 }
  0xf1   : > { %v409_v51 = vmax.f32 %v383_v45, 0.0  ;;  %v400_v52 = vmax.f32 %v338_v48, 0.0  ;;  %v544_v54 = vpop.f32.mrb[6].mxu0 }
  0xf2   : > { %v408_v53 = vmax.f32 %v378_v49, 0.0  ;;  %v556_v55 = vpop.f32.mrb[6].mxu1  ;;  %418 = vst.msk [vmem:[%s638_s25 + $0x28] sm:$0xff] %vm412_vm2, %v401_v50  ;;  %v353_v56 = vadd.f32 %v544_v54, %v494_v17  ;;  %v347_v58 = vpop.f32.mrb[7].mxu0 }
  0xf3   : > { %426 = vst.msk [vmem:[%s638_s25 + $0x68] sm:$0xff] %vm412_vm2, %v409_v51  ;;  %v393_v57 = vadd.f32 %v556_v55, %v494_v17  ;;  %v387_v59 = vpop.f32.mrb[7].mxu1  ;;  %417 = vst.msk [vmem:[%s638_s25 + $0x20] sm:$0xff] %vm412_vm2, %v400_v52  ;;  %v348_v60 = vadd.f32 %v494_v17, %v347_v58 }
  0xf4   : > { %425 = vst.msk [vmem:[%s638_s25 + $0x60] sm:$0xff] %vm412_vm2, %v408_v53  ;;  %v388_v61 = vadd.f32 %v494_v17, %v387_v59  ;;  %v403_v62 = vmax.f32 %v353_v56, 0.0 }
  0xf5   : > { %v411_v63 = vmax.f32 %v393_v57, 0.0  ;;  %v402_v0 = vmax.f32 %v348_v60, 0.0 }
  0xf6   : > { %v410_v1 = vmax.f32 %v388_v61, 0.0  ;;  %420 = vst.msk [vmem:[%s638_s25 + $0x38] sm:$0xff] %vm412_vm2, %v403_v62 }
  0xf7   : > { %428 = vst.msk [vmem:[%s638_s25 + $0x78] sm:$0xff] %vm412_vm2, %v411_v63  ;;  %419 = vst.msk [vmem:[%s638_s25 + $0x30] sm:$0xff] %vm412_vm2, %v402_v0 }
  0xf8   : > { %427 = vst.msk [vmem:[%s638_s25 + $0x70] sm:$0xff] %vm412_vm2, %v410_v1 }
  0xf9 PF: > { %s13_s12 = sadd.s32 1, %s573_s12  }
  0xfa   : > { %p10_p4 = scmp.ge.s32.totalorder %s13_s12, 4  }
  0xfc   :  { %12 = sbr.rel (!%p10_p4) target bundleno = 1 (0x1), region = 62 }

// kernel: _forward.10
= control target key start
LH: loop header
LB: loop body
LE: loop exit
PB: predicated region body
PF: predicated region fallthrough
CT: control target
= control target key end

     0   :  { %s1499_s29 = smov 0   ;;  %s1738_s0 = inlined_call_operand.vmem [shape: f32[256,64], index: 0, kind: input, shape index: {}]   ;;  %s1739_s1 = inlined_call_operand.vmem [shape: f32[256,64], index: 1, kind: input, shape index: {}]   ;;  %s1740_s2 = inlined_call_operand.vmem [shape: f32[64,64], index: 2, kind: input, shape index: {}]   ;;  %s1741_s3 = inlined_call_operand.vmem [shape: f32[1,64], index: 3, kind: input, shape index: {}]   ;;  %s1742_s4 = inlined_call_operand.vmem [shape: f32[64,64], index: 4, kind: input, shape index: {}]   ;;  %s1743_s5 = inlined_call_operand.vmem [shape: f32[1,64], index: 5, kind: input, shape index: {}]   ;;  %s1744_s6 = inlined_call_operand.vmem [shape: f32[64,1], index: 6, kind: input, shape index: {}]   ;;  %s1745_s7 = inlined_call_operand.<no memory space> [shape: f32[1,1], index: 7, kind: input, shape index: {}]   ;;  %s1746_s8 = inlined_call_operand.vmem [shape: f32[256,1], index: 8, kind: output, shape index: {}]  }
   0x1   :  { %v13_v0 = vstv %s1745_s7 }
   0x2   :  { %14 = vst [vmem:[#allocation2] sm:$0x1] %v13_v0 }
   0x3 LB: > { %s1123_s30 = sadd.s32 4294967295, %s1449_s29   ;;  %p1127_p0 = scmp.ge.s32.totalorder %s1449_s29, 1  ;;  %s1449_s29 = sphi %s1499_s29, %s20_s29  }
   0x4   : > { %p276_p1 = scmp.lt.s32.totalorder %s1449_s29, 3 }
   0x6   : > { %p277_p2 = pnand %p1127_p0, %p276_p1 }
   0x7   : > { %v349_v1 = vld [vmem:[%s1740_s2] sm:$0xff] (!%p277_p2)  ;;  %v350_v2 = vld [vmem:[%s1740_s2 + $0x8] sm:$0xff] (!%p277_p2)  ;;  %v351_v3 = vld [vmem:[%s1740_s2 + $0x10] sm:$0xff] (!%p277_p2)  ;;  %s1128_s14 = sshll.u32 (!%p277_p2), %s1123_s30, 4  ;;  %vm364_vm0 = vcmask (!%p277_p2), 523264   ;;  %vm1038_vm1 = vcmask (!%p277_p2), 7168  }
   0x8   : > { %280 = sbr.rel (%p277_p2) target bundleno = 708 (0x2c4), region = 52  ;;  %v1379_v4 = vpack.c.bf16 (!%p277_p2), %v350_v2, %v349_v1  ;;  %v352_v5 = vld [vmem:[%s1740_s2 + $0x18] sm:$0xff] (!%p277_p2)  ;;  %p316_p3 = scmp.lt.s32.totalorder (!%p277_p2), %s1128_s14, 31  ;;  %v353_v7 = vld [vmem:[%s1740_s2 + $0x20] sm:$0xff] (!%p277_p2)  ;;  %v354_v8 = vld [vmem:[%s1740_s2 + $0x28] sm:$0xff] (!%p277_p2) }
   0x9   : > { %v1383_v6 = vpack.c.bf16 (!%p277_p2), %v352_v5, %v351_v3  ;;  %v1387_v9 = vpack.c.bf16 (!%p277_p2), %v354_v8, %v353_v7  ;;  %v355_v10 = vld [vmem:[%s1740_s2 + $0x30] sm:$0xff] (!%p277_p2)  ;;  %v356_v11 = vld [vmem:[%s1740_s2 + $0x38] sm:$0xff] (!%p277_p2)  ;;  %v606_v15 = vld [vmem:[%s1742_s4] sm:$0xff] (!%p277_p2) }
   0xa   : > { %1380 = vmatprep.subr.bf16.mxu0 (!%p277_p2), %v1379_v4  ;;  %1427 = vmatprep.subr.bf16.mxu1 (!%p277_p2), %v1379_v4  ;;  %v1391_v13 = vpack.c.bf16 (!%p277_p2), %v356_v11, %v355_v10  ;;  %v607_v16 = vld [vmem:[%s1742_s4 + $0x8] sm:$0xff] (!%p277_p2)  ;;  %v608_v18 = vld [vmem:[%s1742_s4 + $0x10] sm:$0xff] (!%p277_p2)  ;;  %v609_v19 = vld [vmem:[%s1742_s4 + $0x18] sm:$0xff] (!%p277_p2) }
   0xb   : > { %1382 = vmatpush3.bf16.msra.mxu0 (!%p277_p2), %v1379_v4  ;;  %1431 = vmatpush3.bf16.msra.mxu1 (!%p277_p2), %v1379_v4  ;;  %v1395_v17 = vpack.c.bf16 (!%p277_p2), %v607_v16, %v606_v15  ;;  %v1399_v24 = vpack.c.bf16 (!%p277_p2), %v609_v19, %v608_v18  ;;  %v610_v35 = vld [vmem:[%s1742_s4 + $0x20] sm:$0xff] (!%p277_p2)  ;;  %v611_v36 = vld [vmem:[%s1742_s4 + $0x28] sm:$0xff] (!%p277_p2)  ;;  %v612_v38 = vld [vmem:[%s1742_s4 + $0x30] sm:$0xff] (!%p277_p2) }
   0xc   : > { %1384 = vmatprep.subr.bf16.mxu0 (!%p277_p2), %v1383_v6  ;;  %1428 = vmatprep.subr.bf16.mxu1 (!%p277_p2), %v1383_v6  ;;  %v1403_v37 = vpack.c.bf16 (!%p277_p2), %v611_v36, %v610_v35  ;;  %v613_v39 = vld [vmem:[%s1742_s4 + $0x38] sm:$0xff] (!%p277_p2)  ;;  %v830_v41 = vld [vmem:[%s1744_s6] sm:$0xff] (!%p277_p2)  ;;  %v831_v42 = vld [vmem:[%s1744_s6 + $0x8] sm:$0xff] (!%p277_p2) }
   0xd   : > { %v1407_v40 = vpack.c.bf16 (!%p277_p2), %v613_v39, %v612_v38  ;;  %v832_v43 = vld [vmem:[%s1744_s6 + $0x10] sm:$0xff] (!%p277_p2)  ;;  %v1411_v44 = vpack.c.bf16 (!%p277_p2), %v831_v42, %v830_v41  ;;  %v833_v45 = vld [vmem:[%s1744_s6 + $0x18] sm:$0xff] (!%p277_p2)  ;;  %v834_v47 = vld [vmem:[%s1744_s6 + $0x20] sm:$0xff] (!%p277_p2) }
   0xe   : > { %v1415_v46 = vpack.c.bf16 (!%p277_p2), %v833_v45, %v832_v43  ;;  %v835_v48 = vld [vmem:[%s1744_s6 + $0x28] sm:$0xff] (!%p277_p2)  ;;  %v1622_v50 = vld [vmem:[%s1741_s3] ss:$0 sm:$0xff] (!%p277_p2) }
   0xf   : > { %s1748_s14 = smov (!%p316_p3, %s1128_s14), 31  ;;  %1386 = vmatpush3.bf16.msra.mxu0 %v1383_v6  ;;  %1432 = vmatpush3.bf16.msra.mxu1 %v1383_v6  ;;  %v1419_v49 = vpack.c.bf16 %v835_v48, %v834_v47 }
  0x10   : > { %s1525_s21 = sshll.u32 %s1748_s14, 3  ;;  %1388 = vmatprep.subr.bf16.mxu0 %v1387_v9  ;;  %1429 = vmatprep.subr.bf16.mxu1 %v1387_v9 }
  0x11   : > { %s1537_s28 = scalar_lea.vmem %s1739_s1, %s1525_s21  ;;  %s1617_s16 = scalar_lea.vmem %s1738_s0, %s1525_s21 }
  0x12   : > { %v333_v12 = vld [vmem:[%s1537_s28] sm:$0xff]  ;;  %v334_v20 = vld [vmem:[%s1537_s28 + $0x8] sm:$0xff]  ;;  %v335_v21 = vld [vmem:[%s1537_s28 + $0x10] sm:$0xff] }
  0x13   : > { %1275 = vmatprep.mubr.msk.f32.mxu0 %vm364_vm0, %v333_v12  ;;  %v341_v14 = vld [vmem:[%s1537_s28 + $0x40] sm:$0xff]  ;;  %1390 = vmatpush3.bf16.msra.mxu0 %v1387_v9  ;;  %v342_v22 = vld [vmem:[%s1537_s28 + $0x48] sm:$0xff]  ;;  %v343_v23 = vld [vmem:[%s1537_s28 + $0x50] sm:$0xff] }
  0x14   : > { %1287 = vmatprep.mubr.msk.f32.mxu1 %vm364_vm0, %v341_v14  ;;  %1392 = vmatprep.subr.bf16.mxu0 %v1391_v13  ;;  %v336_v25 = vld [vmem:[%s1537_s28 + $0x18] sm:$0xff]  ;;  %v337_v26 = vld [vmem:[%s1537_s28 + $0x20] sm:$0xff]  ;;  %v338_v29 = vld [vmem:[%s1537_s28 + $0x28] sm:$0xff] }
  0x15   : > { %1433 = vmatpush3.bf16.msra.mxu1 %v1387_v9  ;;  %v344_v27 = vld [vmem:[%s1537_s28 + $0x58] sm:$0xff]  ;;  %v345_v28 = vld [vmem:[%s1537_s28 + $0x60] sm:$0xff]  ;;  %v339_v30 = vld [vmem:[%s1537_s28 + $0x30] sm:$0xff] }
  0x16   : > { %1430 = vmatprep.subr.bf16.mxu1 %v1391_v13  ;;  %v346_v31 = vld [vmem:[%s1537_s28 + $0x68] sm:$0xff]  ;;  %v347_v32 = vld [vmem:[%s1537_s28 + $0x70] sm:$0xff]  ;;  %v340_v33 = vld [vmem:[%s1537_s28 + $0x38] sm:$0xff] }
  0x17   : > { %1394 = vmatpush3.bf16.msra.mxu0 %v1391_v13  ;;  %v348_v34 = vld [vmem:[%s1537_s28 + $0x78] sm:$0xff]  ;;  %v559_v52 = vld [vmem:[%s1617_s16 + $0x8] sm:$0xff]  ;;  %v558_v55 = vld [vmem:[%s1617_s16] sm:$0xff]  ;;  %s1701_s28 = scalar_lea.vmem %s1746_s8, %s1525_s21 }
  0x18   : > { %1412 = vmatprep.subr.bf16.mxu0 %v1411_v44  ;;  %v561_v62 = vld [vmem:[%s1617_s16 + $0x18] sm:$0xff]  ;;  %v560_v1 = vld [vmem:[%s1617_s16 + $0x10] sm:$0xff]  ;;  %v563_v10 = vld [vmem:[%s1617_s16 + $0x28] sm:$0xff] }
  0x19   : > { %1434 = vmatpush3.bf16.msra.mxu1 %v1391_v13  ;;  %v562_v13 = vld [vmem:[%s1617_s16 + $0x20] sm:$0xff]  ;;  %v567_v39 = vld [vmem:[%s1617_s16 + $0x48] sm:$0xff]  ;;  %v569_v48 = vld [vmem:[%s1617_s16 + $0x58] sm:$0xff] }
  0x1a   : > { %1396 = vmatprep.subr.bf16.mxu1 %v1395_v17  ;;  %1276 = vmatmul.mubr.msk.f32.vlgmr.msra.gmra.mrb[0].mxu0 %vm364_vm0, %v334_v20  ;;  %v570_v47 = vld [vmem:[%s1617_s16 + $0x60] sm:$0xff] }
  0x1b   : > { %1278 = vmatprep.mubr.msk.f32.mxu0 %vm364_vm0, %v335_v21  ;;  %1414 = vmatpush3.bf16.msra.mxu0 %v1411_v44  ;;  %v566_v21 = vld [vmem:[%s1617_s16 + $0x40] sm:$0xff] }
  0x1c   : > { %1288 = vmatmul.mubr.msk.f32.vlgmr.msra.gmra.mrb[0].mxu1 %vm364_vm0, %v342_v22  ;;  %1416 = vmatprep.subr.bf16.mxu0 %v1415_v46 }
  0x1d   : > { %1290 = vmatprep.mubr.msk.f32.mxu1 %vm364_vm0, %v343_v23  ;;  %1398 = vmatpush3.bf16.msra.mxu1 %v1395_v17 }
  0x1e   : > { %1400 = vmatprep.subr.bf16.mxu1 %v1399_v24  ;;  %1279 = vmatmul.mubr.msk.f32.gmra.mrb[2].mxu0 %vm364_vm0, %v336_v25 }
  0x1f   : > { %1281 = vmatprep.mubr.msk.f32.mxu0 %vm364_vm0, %v337_v26  ;;  %1418 = vmatpush3.bf16.msra.mxu0 %v1415_v46 }
  0x20   : > { %1291 = vmatmul.mubr.msk.f32.gmra.mrb[2].mxu1 %vm364_vm0, %v344_v27  ;;  %1420 = vmatprep.subr.bf16.mxu0 %v1419_v49  ;;  %v564_v27 = vld [vmem:[%s1617_s16 + $0x30] sm:$0xff] }
  0x21   : > { %1293 = vmatprep.mubr.msk.f32.mxu1 %vm364_vm0, %v345_v28  ;;  %1402 = vmatpush3.bf16.msra.mxu1 %v1399_v24  ;;  %v565_v24 = vld [vmem:[%s1617_s16 + $0x38] sm:$0xff] }
  0x22   : > { %1282 = vmatmul.mubr.msk.f32.gmra.mrb[4].mxu0 %vm364_vm0, %v338_v29  ;;  %1404 = vmatprep.subr.bf16.mxu1 %v1403_v37 }
  0x23   : > { %1284 = vmatprep.mubr.msk.f32.mxu0 %vm364_vm0, %v339_v30  ;;  %1422 = vmatpush3.bf16.msra.mxu0 %v1419_v49 }
  0x24   : > { %1294 = vmatmul.mubr.msk.f32.gmra.mrb[4].mxu1 %vm364_vm0, %v346_v31 }
  0x25   : > { %1296 = vmatprep.mubr.msk.f32.mxu1 %vm364_vm0, %v347_v32  ;;  %1406 = vmatpush3.bf16.msra.mxu1 %v1403_v37  ;;  %v568_v37 = vld [vmem:[%s1617_s16 + $0x50] sm:$0xff] }
  0x26   : > { %1285 = vmatmul.mubr.msk.f32.gmra.mrb[6].mxu0 %vm364_vm0, %v340_v33  ;;  %1408 = vmatprep.subr.bf16.mxu1 %v1407_v40 }
  0x28   : > { %1297 = vmatmul.mubr.msk.f32.gmra.mrb[6].mxu1 %vm364_vm0, %v348_v34 }
  0x29   : > { %1410 = vmatpush3.bf16.msra.mxu1 %v1407_v40 }
  0xed   : > { %v1277_v51 = vpop.f32.mrb[0].mxu0 }
  0xee   : > { %v485_v53 = vadd.f32 %v1277_v51, %v1622_v50  ;;  %v479_v54 = vpop.f32.mrb[1].mxu0 }
  0xef   : > { %v1289_v56 = vpop.f32.mrb[0].mxu1  ;;  %v480_v57 = vadd.f32 %v1622_v50, %v479_v54 }
  0xf0   : > { %v519_v58 = vpop.f32.mrb[1].mxu1  ;;  %v575_v59 = vadd.f32 %v559_v52, %v485_v53  ;;  %v525_v36 = vadd.f32 %v1289_v56, %v1622_v50  ;;  %v572_v56 = vld [vmem:[%s1617_s16 + $0x70] sm:$0xff] }
  0xf1   : > { %v574_v60 = vadd.f32 %v558_v55, %v480_v57  ;;  %v1280_v61 = vpop.f32.mrb[2].mxu0  ;;  %v520_v17 = vadd.f32 %v1622_v50, %v519_v58  ;;  %v571_v57 = vld [vmem:[%s1617_s16 + $0x68] sm:$0xff] }
  0xf2   : > { %v495_v63 = vadd.f32 %v1280_v61, %v1622_v50  ;;  %v489_v0 = vpop.f32.mrb[3].mxu0  ;;  %v591_v6 = vmul.f32 0.70710677, %v575_v59  ;;  %v583_v45 = vadd.f32 %v567_v39, %v525_v36 }
  0xf3   : > { %v1292_v2 = vpop.f32.mrb[2].mxu1  ;;  %v590_v3 = vmul.f32 0.70710677, %v574_v60  ;;  %v490_v4 = vadd.f32 %v1622_v50, %v489_v0  ;;  %v582_v31 = vadd.f32 %v566_v21, %v520_v17 }
  0xf4   : > { %v529_v5 = vpop.f32.mrb[3].mxu1  ;;  %v577_v7 = vadd.f32 %v561_v62, %v495_v63  ;;  %v535_v46 = vadd.f32 %v1292_v2, %v1622_v50  ;;  %v599_v53 = vmul.f32 0.70710677, %v583_v45  ;;  %v573_v63 = vld [vmem:[%s1617_s16 + $0x78] sm:$0xff] }
  0xf5   : > { %v576_v8 = vadd.f32 %v560_v1, %v490_v4  ;;  %v1283_v9 = vpop.f32.mrb[4].mxu0  ;;  %1315 = vmatprep.mubr.msk.f32.mxu1 %vm364_vm0, %v590_v3  ;;  %v530_v32 = vadd.f32 %v1622_v50, %v529_v5  ;;  %v598_v41 = vmul.f32 0.70710677, %v582_v31  ;;  %v836_v4 = vld [vmem:[%s1744_s6 + $0x30] sm:$0xff] }
  0xf6   : > { %v505_v11 = vadd.f32 %v1283_v9, %v1622_v50  ;;  %v499_v12 = vpop.f32.mrb[5].mxu0  ;;  %1316 = vmatmul.mubr.msk.f32.vlgmr.msra.gmra.mrb[8].mxu1 %vm364_vm0, %v591_v6  ;;  %v593_v19 = vmul.f32 0.70710677, %v577_v7  ;;  %v585_v54 = vadd.f32 %v569_v48, %v535_v46  ;;  %v1151_v6 = vld [vmem:[%s1743_s5] ss:$0 sm:$0xff] }
  0xf7   : > { %v1295_v14 = vpop.f32.mrb[4].mxu1  ;;  %v592_v15 = vmul.f32 0.70710677, %v576_v8  ;;  %v500_v16 = vadd.f32 %v1622_v50, %v499_v12  ;;  %v584_v42 = vadd.f32 %v568_v37, %v530_v32 }
  0xf8   : > { %v539_v18 = vpop.f32.mrb[5].mxu1  ;;  %v579_v20 = vadd.f32 %v563_v10, %v505_v11  ;;  %v545_v55 = vadd.f32 %v1295_v14, %v1622_v50  ;;  %v601_v60 = vmul.f32 0.70710677, %v585_v54 }
  0xf9   : > { %v578_v22 = vadd.f32 %v562_v13, %v500_v16  ;;  %v1286_v23 = vpop.f32.mrb[6].mxu0  ;;  %1318 = vmatprep.mubr.msk.f32.mxu1 %vm364_vm0, %v592_v15  ;;  %v540_v43 = vadd.f32 %v1622_v50, %v539_v18  ;;  %v600_v49 = vmul.f32 0.70710677, %v584_v42 }
  0xfa   : > { %v515_v25 = vadd.f32 %v1286_v23, %v1622_v50  ;;  %v509_v26 = vpop.f32.mrb[7].mxu0  ;;  %1319 = vmatmul.mubr.msk.f32.gmra.mrb[10].mxu1 %vm364_vm0, %v593_v19  ;;  %v595_v34 = vmul.f32 0.70710677, %v579_v20  ;;  %v587_v61 = vadd.f32 %v571_v57, %v545_v55 }
  0xfb   : > { %v1298_v28 = vpop.f32.mrb[6].mxu1  ;;  %v594_v29 = vmul.f32 0.70710677, %v578_v22  ;;  %v510_v30 = vadd.f32 %v1622_v50, %v509_v26  ;;  %v586_v51 = vadd.f32 %v570_v47, %v540_v43 }
  0xfc   : > { %v549_v33 = vpop.f32.mrb[7].mxu1  ;;  %v581_v35 = vadd.f32 %v565_v24, %v515_v25  ;;  %v555_v62 = vadd.f32 %v1298_v28, %v1622_v50  ;;  %v603_v1 = vmul.f32 0.70710677, %v587_v61 }
  0xfd   : > { %v580_v38 = vadd.f32 %v564_v27, %v510_v30  ;;  %1321 = vmatprep.mubr.msk.f32.mxu1 %vm364_vm0, %v594_v29  ;;  %v550_v52 = vadd.f32 %v1622_v50, %v549_v33  ;;  %v602_v58 = vmul.f32 0.70710677, %v586_v51  ;;  %v837_v50 = vld [vmem:[%s1744_s6 + $0x38] sm:$0xff] }
  0xfe   : > { %1322 = vmatmul.mubr.msk.f32.gmra.mrb[12].mxu1 %vm364_vm0, %v595_v34  ;;  %v597_v44 = vmul.f32 0.70710677, %v581_v35  ;;  %v589_v2 = vadd.f32 %v573_v63, %v555_v62  ;;  %v1423_v5 = vpack.c.bf16 %v837_v50, %v836_v4 }
  0xff   : > { %v596_v40 = vmul.f32 0.70710677, %v580_v38  ;;  %v588_v59 = vadd.f32 %v572_v56, %v550_v52  ;;  %v1168_v56 = vld [vmem:[#allocation2] ss:$0 sm:$0xff] }
 0x100   : > { %v605_v3 = vmul.f32 0.70710677, %v589_v2  ;;  %1424 = vmatprep.subr.bf16.mxu0 %v1423_v5 }
 0x101   : > { %1324 = vmatprep.mubr.msk.f32.mxu1 %vm364_vm0, %v596_v40  ;;  %v604_v0 = vmul.f32 0.70710677, %v588_v59  ;;  %1426 = vmatpush3.bf16.msra.mxu0 %v1423_v5 }
 0x102   : > { %1325 = vmatmul.mubr.msk.f32.gmra.mrb[14].mxu1 %vm364_vm0, %v597_v44 }
 0x103   : > { %1327 = vmatprep.mubr.msk.f32.mxu1 %vm364_vm0, %v598_v41 }
 0x106   : > { %1328 = vmatmul.mubr.msk.f32.gmra.mrb[16].mxu1 %vm364_vm0, %v599_v53 }
 0x107   : > { %1330 = vmatprep.mubr.msk.f32.mxu1 %vm364_vm0, %v600_v49 }
 0x10a   : > { %1331 = vmatmul.mubr.msk.f32.gmra.mrb[18].mxu1 %vm364_vm0, %v601_v60 }
 0x10b   : > { %1333 = vmatprep.mubr.msk.f32.mxu1 %vm364_vm0, %v602_v58 }
 0x10e   : > { %1334 = vmatmul.mubr.msk.f32.gmra.mrb[20].mxu1 %vm364_vm0, %v603_v1 }
 0x10f   : > { %1336 = vmatprep.mubr.msk.f32.mxu1 %vm364_vm0, %v604_v0 }
 0x112   : > { %1337 = vmatmul.mubr.msk.f32.gmra.mrb[22].mxu1 %vm364_vm0, %v605_v3 }
 0x1c9   : > { %v1317_v7 = vpop.f32.mrb[8].mxu1 }
 0x1ca   : > { %v741_v8 = vadd.f32 %v1317_v7, %v1151_v6  ;;  %v735_v9 = vpop.f32.mrb[9].mxu1 }
 0x1cb   : > { %v736_v10 = vadd.f32 %v1151_v6, %v735_v9 }
 0x1cc   : > { %v815_v13 = vmax.f32 %v741_v8, 0.0 }
 0x1cd   : > { %v814_v11 = vmax.f32 %v736_v10, 0.0  ;;  %v1320_v12 = vpop.f32.mrb[10].mxu1 }
 0x1ce   : > { %v751_v14 = vadd.f32 %v1320_v12, %v1151_v6  ;;  %v745_v15 = vpop.f32.mrb[11].mxu1 }
 0x1cf   : > { %v746_v16 = vadd.f32 %v1151_v6, %v745_v15  ;;  %1355 = vmatprep.mubr.msk.f32.mxu0 %vm364_vm0, %v814_v11 }
 0x1d0   : > { %1356 = vmatmul.mubr.msk.f32.vlgmr.msra.gmra.mrb[8].mxu0 %vm364_vm0, %v815_v13  ;;  %v817_v19 = vmax.f32 %v751_v14, 0.0 }
 0x1d1   : > { %v816_v17 = vmax.f32 %v746_v16, 0.0  ;;  %v1323_v18 = vpop.f32.mrb[12].mxu1 }
 0x1d2   : > { %v761_v20 = vadd.f32 %v1323_v18, %v1151_v6  ;;  %v755_v21 = vpop.f32.mrb[13].mxu1 }
 0x1d3   : > { %v756_v22 = vadd.f32 %v1151_v6, %v755_v21  ;;  %1358 = vmatprep.mubr.msk.f32.mxu0 %vm364_vm0, %v816_v17 }
 0x1d4   : > { %1359 = vmatmul.mubr.msk.f32.gmra.mrb[10].mxu0 %vm364_vm0, %v817_v19  ;;  %v819_v25 = vmax.f32 %v761_v20, 0.0 }
 0x1d5   : > { %v818_v23 = vmax.f32 %v756_v22, 0.0  ;;  %v1326_v24 = vpop.f32.mrb[14].mxu1 }
 0x1d6   : > { %v771_v26 = vadd.f32 %v1326_v24, %v1151_v6  ;;  %v765_v27 = vpop.f32.mrb[15].mxu1 }
 0x1d7   : > { %v766_v28 = vadd.f32 %v1151_v6, %v765_v27  ;;  %1361 = vmatprep.mubr.msk.f32.mxu0 %vm364_vm0, %v818_v23 }
 0x1d8   : > { %1362 = vmatmul.mubr.msk.f32.gmra.mrb[12].mxu0 %vm364_vm0, %v819_v25  ;;  %v821_v31 = vmax.f32 %v771_v26, 0.0 }
 0x1d9   : > { %v820_v29 = vmax.f32 %v766_v28, 0.0  ;;  %v1329_v30 = vpop.f32.mrb[16].mxu1 }
 0x1da   : > { %v781_v32 = vadd.f32 %v1329_v30, %v1151_v6  ;;  %v775_v33 = vpop.f32.mrb[17].mxu1 }
 0x1db   : > { %v776_v34 = vadd.f32 %v1151_v6, %v775_v33  ;;  %1364 = vmatprep.mubr.msk.f32.mxu0 %vm364_vm0, %v820_v29 }
 0x1dc   : > { %1365 = vmatmul.mubr.msk.f32.gmra.mrb[14].mxu0 %vm364_vm0, %v821_v31  ;;  %v823_v37 = vmax.f32 %v781_v32, 0.0 }
 0x1dd   : > { %v822_v35 = vmax.f32 %v776_v34, 0.0  ;;  %v1332_v36 = vpop.f32.mrb[18].mxu1 }
 0x1de   : > { %v791_v38 = vadd.f32 %v1332_v36, %v1151_v6  ;;  %v785_v39 = vpop.f32.mrb[19].mxu1 }
 0x1df   : > { %v786_v40 = vadd.f32 %v1151_v6, %v785_v39  ;;  %1367 = vmatprep.mubr.msk.f32.mxu0 %vm364_vm0, %v822_v35 }
 0x1e0   : > { %1368 = vmatmul.mubr.msk.f32.gmra.mrb[16].mxu0 %vm364_vm0, %v823_v37  ;;  %v825_v43 = vmax.f32 %v791_v38, 0.0 }
 0x1e1   : > { %v824_v41 = vmax.f32 %v786_v40, 0.0  ;;  %v1335_v42 = vpop.f32.mrb[20].mxu1 }
 0x1e2   : > { %v801_v44 = vadd.f32 %v1335_v42, %v1151_v6  ;;  %v795_v45 = vpop.f32.mrb[21].mxu1 }
 0x1e3   : > { %v796_v46 = vadd.f32 %v1151_v6, %v795_v45  ;;  %1370 = vmatprep.mubr.msk.f32.mxu0 %vm364_vm0, %v824_v41 }
 0x1e4   : > { %1371 = vmatmul.mubr.msk.f32.gmra.mrb[18].mxu0 %vm364_vm0, %v825_v43  ;;  %v827_v49 = vmax.f32 %v801_v44, 0.0 }
 0x1e5   : > { %v826_v47 = vmax.f32 %v796_v46, 0.0  ;;  %v1338_v48 = vpop.f32.mrb[22].mxu1 }
 0x1e6   : > { %v811_v51 = vadd.f32 %v1338_v48, %v1151_v6  ;;  %v805_v52 = vpop.f32.mrb[23].mxu1 }
 0x1e7   : > { %v806_v53 = vadd.f32 %v1151_v6, %v805_v52  ;;  %1373 = vmatprep.mubr.msk.f32.mxu0 %vm364_vm0, %v826_v47 }
 0x1e8   : > { %1374 = vmatmul.mubr.msk.f32.gmra.mrb[20].mxu0 %vm364_vm0, %v827_v49  ;;  %v829_v55 = vmax.f32 %v811_v51, 0.0 }
 0x1e9   : > { %v828_v54 = vmax.f32 %v806_v53, 0.0 }
 0x1eb   : > { %1376 = vmatprep.mubr.msk.f32.mxu0 %vm364_vm0, %v828_v54 }
 0x1ec   : > { %1377 = vmatmul.mubr.msk.f32.gmra.mrb[22].mxu0 %vm364_vm0, %v829_v55 }
 0x2a3   : > { %v1357_v57 = vpop.f32.mrb[8].mxu0 }
 0x2a4   : > { %v965_v58 = vadd.f32 %v1357_v57, %v1168_v56  ;;  %v959_v59 = vpop.f32.mrb[9].mxu0 }
 0x2a5   : > { %v960_v60 = vadd.f32 %v1168_v56, %v959_v59 }
 0x2a6   : > { %1040 = vst.msk [vmem:[%s1701_s28 + $0x8] sm:$0xff] %vm1038_vm1, %v965_v58 }
 0x2a7   : > { %1039 = vst.msk [vmem:[%s1701_s28] sm:$0xff] %vm1038_vm1, %v960_v60  ;;  %v1360_v61 = vpop.f32.mrb[10].mxu0 }
 0x2a8   : > { %v975_v62 = vadd.f32 %v1360_v61, %v1168_v56  ;;  %v969_v63 = vpop.f32.mrb[11].mxu0 }
 0x2a9   : > { %v970_v0 = vadd.f32 %v1168_v56, %v969_v63 }
 0x2aa   : > { %1042 = vst.msk [vmem:[%s1701_s28 + $0x18] sm:$0xff] %vm1038_vm1, %v975_v62 }
 0x2ab   : > { %1041 = vst.msk [vmem:[%s1701_s28 + $0x10] sm:$0xff] %vm1038_vm1, %v970_v0  ;;  %v1363_v1 = vpop.f32.mrb[12].mxu0 }
 0x2ac   : > { %v985_v2 = vadd.f32 %v1363_v1, %v1168_v56  ;;  %v979_v3 = vpop.f32.mrb[13].mxu0 }
 0x2ad   : > { %v980_v4 = vadd.f32 %v1168_v56, %v979_v3 }
 0x2ae   : > { %1044 = vst.msk [vmem:[%s1701_s28 + $0x28] sm:$0xff] %vm1038_vm1, %v985_v2 }
 0x2af   : > { %1043 = vst.msk [vmem:[%s1701_s28 + $0x20] sm:$0xff] %vm1038_vm1, %v980_v4  ;;  %v1366_v50 = vpop.f32.mrb[14].mxu0 }
 0x2b0   : > { %v995_v5 = vadd.f32 %v1366_v50, %v1168_v56  ;;  %v989_v6 = vpop.f32.mrb[15].mxu0 }
 0x2b1   : > { %v990_v7 = vadd.f32 %v1168_v56, %v989_v6 }
 0x2b2   : > { %1046 = vst.msk [vmem:[%s1701_s28 + $0x38] sm:$0xff] %vm1038_vm1, %v995_v5 }
 0x2b3   : > { %1045 = vst.msk [vmem:[%s1701_s28 + $0x30] sm:$0xff] %vm1038_vm1, %v990_v7  ;;  %v1369_v8 = vpop.f32.mrb[16].mxu0 }
 0x2b4   : > { %v1005_v9 = vadd.f32 %v1369_v8, %v1168_v56  ;;  %v999_v10 = vpop.f32.mrb[17].mxu0 }
 0x2b5   : > { %v1000_v11 = vadd.f32 %v1168_v56, %v999_v10 }
 0x2b6   : > { %1048 = vst.msk [vmem:[%s1701_s28 + $0x48] sm:$0xff] %vm1038_vm1, %v1005_v9 }
 0x2b7   : > { %1047 = vst.msk [vmem:[%s1701_s28 + $0x40] sm:$0xff] %vm1038_vm1, %v1000_v11  ;;  %v1372_v12 = vpop.f32.mrb[18].mxu0 }
 0x2b8   : > { %v1015_v13 = vadd.f32 %v1372_v12, %v1168_v56  ;;  %v1009_v14 = vpop.f32.mrb[19].mxu0 }
 0x2b9   : > { %v1010_v15 = vadd.f32 %v1168_v56, %v1009_v14 }
 0x2ba   : > { %1050 = vst.msk [vmem:[%s1701_s28 + $0x58] sm:$0xff] %vm1038_vm1, %v1015_v13 }
 0x2bb   : > { %1049 = vst.msk [vmem:[%s1701_s28 + $0x50] sm:$0xff] %vm1038_vm1, %v1010_v15  ;;  %v1375_v16 = vpop.f32.mrb[20].mxu0 }
 0x2bc   : > { %v1025_v17 = vadd.f32 %v1375_v16, %v1168_v56  ;;  %v1019_v18 = vpop.f32.mrb[21].mxu0 }
 0x2bd   : > { %v1020_v19 = vadd.f32 %v1168_v56, %v1019_v18 }
 0x2be   : > { %1052 = vst.msk [vmem:[%s1701_s28 + $0x68] sm:$0xff] %vm1038_vm1, %v1025_v17 }
 0x2bf   : > { %1051 = vst.msk [vmem:[%s1701_s28 + $0x60] sm:$0xff] %vm1038_vm1, %v1020_v19  ;;  %v1378_v20 = vpop.f32.mrb[22].mxu0 }
 0x2c0   : > { %v1035_v21 = vadd.f32 %v1378_v20, %v1168_v56  ;;  %v1029_v22 = vpop.f32.mrb[23].mxu0 }
 0x2c1   : > { %v1030_v23 = vadd.f32 %v1168_v56, %v1029_v22 }
 0x2c2   : > { %1054 = vst.msk [vmem:[%s1701_s28 + $0x78] sm:$0xff] %vm1038_vm1, %v1035_v21 }
 0x2c3   : > { %1053 = vst.msk [vmem:[%s1701_s28 + $0x70] sm:$0xff] %vm1038_vm1, %v1030_v23 }
 0x2c4 PF: > { %s20_s29 = sadd.s32 1, %s1449_s29  }
 0x2c5   : > { %p17_p4 = scmp.ge.s32.totalorder %s20_s29, 4  }
 0x2c7   :  { %19 = sbr.rel (!%p17_p4) target bundleno = 3 (0x3), region = 85 }

// kernel: _forward.8
= control target key start
LH: loop header
LB: loop body
LE: loop exit
PB: predicated region body
PF: predicated region fallthrough
CT: control target
= control target key end

     0   :  { %s3794_s0 = inlined_call_operand.vmem [shape: f32[2,128,64], index: 0, kind: input, shape index: {}]   ;;  %s3795_s1 = inlined_call_operand.vmem [shape: f32[2,1,64], index: 1, kind: input, shape index: {}]   ;;  %s3796_s2 = inlined_call_operand.vmem [shape: f32[2,128,16], index: 2, kind: input, shape index: {}]   ;;  %s3797_s3 = inlined_call_operand.vmem [shape: f32[2,128,64], index: 3, kind: input, shape index: {}, may-alias: {3,15}]   ;;  %s3798_s4 = inlined_call_operand.vmem [shape: f32[64,64], index: 4, kind: input, shape index: {}]   ;;  %s3799_s5 = inlined_call_operand.vmem [shape: f32[64,64], index: 5, kind: input, shape index: {}]   ;;  %s3800_s6 = inlined_call_operand.vmem [shape: f32[16,64], index: 6, kind: input, shape index: {}]   ;;  %s3801_s7 = inlined_call_operand.vmem [shape: f32[16,64], index: 7, kind: input, shape index: {}]   ;;  %s3802_s8 = inlined_call_operand.vmem [shape: f32[1,64], index: 8, kind: input, shape index: {}]   ;;  %s3803_s9 = inlined_call_operand.vmem [shape: f32[1,64], index: 9, kind: input, shape index: {}]   ;;  %s3804_s10 = inlined_call_operand.vmem [shape: f32[64,64], index: 10, kind: input, shape index: {}]   ;;  %s3805_s11 = inlined_call_operand.vmem [shape: f32[64,64], index: 11, kind: input, shape index: {}]   ;;  %s3806_s12 = inlined_call_operand.vmem [shape: f32[1,64], index: 12, kind: input, shape index: {}]   ;;  %s3807_s13 = inlined_call_operand.vmem [shape: f32[1,64], index: 13, kind: input, shape index: {}]   ;;  %s3808_s14 = inlined_call_operand.hbm [shape: f32[2,128,64], index: 14, kind: output, shape index: {0}]   ;;  %s3809_s15 = inlined_call_operand.vmem [shape: f32[2,128,64], index: 15, kind: output, shape index: {1}, may-alias: {3,15}]  }
   0x1   :  { %3814 = sst [smem:[#allocation10_spill]] %s3796_s2 }
   0x2   :  { %21 = vsyncpa [#allocation3], 0 }
   0x3   :  { %23 = vsyncpa [#allocation3 + $0x1], 0  ;;  %s3124_s18 = smov 0   ;;  %s3126_s19 = smov 0  }
   0x4   :  { %s3128_s20 = smov 0   ;;  %s3130_s21 = smov 0  }
   0x5   :  { %s3132_s22 = smov 0   ;;  %s3134_s23 = smov 0  }
   0x6 LB: > { %3815 = sst [smem:[#allocation5_spill]] %s3019_s18  ;;  %s2215_s24 = sadd.s32 4294967295, %s3039_s23   ;;  %s3039_s23 = sphi %s3134_s23, %s29_s23   ;;  %s3035_s22 = sphi %s3132_s22, %s3827_s22   ;;  %s3031_s21 = sphi %s3130_s21, %s3826_s21   ;;  %s3027_s20 = sphi %s3128_s20, %s3825_s20   ;;  %s3023_s19 = sphi %s3126_s19, %s3829_s19   ;;  %s3019_s18 = sphi %s3124_s18, %s3828_s18  }
   0x7   : > { %3816 = sst [smem:[#allocation6_spill]] %s3027_s20  ;;  %s2216_s25 = sadd.s32 4294967294, %s3039_s23  }
   0x8   : > { %3817 = sst [smem:[#allocation7_spill]] %s3035_s22  ;;  %s41_s26 = sadd.s32 1, %s3035_s22 }
   0x9   : > { %s370_s27 = sadd.s32 1, %s3027_s20  ;;  %p43_p0 = scmp.ge.s32.totalorder %s41_s26, 2 }
   0xa   : > { %p380_p1 = scmp.ne.s32.totalorder %s3027_s20, %s3023_s19  ;;  %p381_p2 = scmp.eq.s32.totalorder %s2215_s24, 1 }
   0xb   : > { %p386_p3 = scmp.ne.s32.totalorder %s3023_s19, %s3019_s18  ;;  %s3831_s26 = smov (%p43_p0, %s41_s26), 0 }
   0xc   : > { %3818 = sst [smem:[#allocation8_spill]] %s3831_s26  ;;  %p3164_p4 = por %p381_p2, %p380_p1 }
   0xd   : > { %p387_p5 = scmp.eq.s32.totalorder %s2216_s25, 1  ;;  %s365_s29 = ssub.s32 %s3035_s22, %s3831_s26 }
   0xe   : > { %p2219_p6 = scmp.ge.s32.totalorder %s3039_s23, 1  ;;  %p368_p7 = scmp.eq.s32.totalorder %s365_s29, 0 }
   0xf   : > { %p3171_p8 = por %p387_p5, %p386_p3  ;;  %p508_p9 = scmp.lt.s32.totalorder %s3039_s23, 3 }
  0x10   : > { %s3177_s16 = scalar_select %p368_p7, %s3027_s20, %s370_s27  }
  0x11   : > { %p509_p10 = pnand %p2219_p6, %p508_p9 }
  0x12   : > { %3821 = sst [smem:[#allocation9_spill]] %s3177_s16  ;;  %v697_v0 = vld [vmem:[%s3800_s6] sm:$0xff] (!%p509_p10)  ;;  %v698_v1 = vld [vmem:[%s3800_s6 + $0x8] sm:$0xff] (!%p509_p10)  ;;  %p591_p11 = scmp.lt.s32.totalorder (!%p509_p10), %s3031_s21, 1  ;;  %v691_v10 = vld [vmem:[%s3798_s4 + $0x10] sm:$0xff] (!%p509_p10)  ;;  %vm699_vm0 = vcmask (!%p509_p10), 130048  }
  0x13   : > { %512 = sbr.rel (%p509_p10) target bundleno = 581 (0x245), region = 76  ;;  %v1118_v2 = vld [vmem:[%s3801_s7] sm:$0xff] (!%p509_p10)  ;;  %v2704_v3 = vpack.c.bf16 (!%p509_p10), %v698_v1, %v697_v0  ;;  %v1119_v4 = vld [vmem:[%s3801_s7 + $0x8] sm:$0xff] (!%p509_p10)  ;;  %v692_v11 = vld [vmem:[%s3798_s4 + $0x18] sm:$0xff] (!%p509_p10)  ;;  %s3822_s2 = sld [smem:[#allocation10_spill]] (!%p509_p10)  ;;  %vm893_vm1 = vcmask (!%p509_p10), 523264  }
  0x14   : > { %v689_v5 = vld [vmem:[%s3798_s4] sm:$0xff] (!%p509_p10)  ;;  %v690_v6 = vld [vmem:[%s3798_s4 + $0x8] sm:$0xff] (!%p509_p10)  ;;  %v2724_v7 = vpack.c.bf16 (!%p509_p10), %v1119_v4, %v1118_v2  ;;  %v2712_v17 = vpack.c.bf16 (!%p509_p10), %v692_v11, %v691_v10  ;;  %v1112_v18 = vld [vmem:[%s3799_s5 + $0x10] sm:$0xff] (!%p509_p10)  ;;  %s3041_s17 = smov (!%p509_p10), [#allocation2]  }
  0x15   : > { %v2708_v8 = vpack.c.bf16 (!%p509_p10), %v690_v6, %v689_v5  ;;  %v1110_v9 = vld [vmem:[%s3799_s5] sm:$0xff] (!%p509_p10)  ;;  %2705 = vmatprep.subr.bf16.mxu0 (!%p509_p10), %v2704_v3  ;;  %v1111_v12 = vld [vmem:[%s3799_s5 + $0x8] sm:$0xff] (!%p509_p10)  ;;  %v1113_v19 = vld [vmem:[%s3799_s5 + $0x18] sm:$0xff] (!%p509_p10) }
  0x16   : > { %2707 = vmatpush3.bf16.msra.mxu0 (!%p509_p10), %v2704_v3  ;;  %2725 = vmatprep.subr.bf16.mxu1 (!%p509_p10), %v2724_v7  ;;  %v2728_v13 = vpack.c.bf16 (!%p509_p10), %v1111_v12, %v1110_v9  ;;  %v693_v20 = vld [vmem:[%s3798_s4 + $0x20] sm:$0xff] (!%p509_p10)  ;;  %v694_v21 = vld [vmem:[%s3798_s4 + $0x28] sm:$0xff] (!%p509_p10)  ;;  %v2732_v24 = vpack.c.bf16 (!%p509_p10), %v1113_v19, %v1112_v18  ;;  %v695_v28 = vld [vmem:[%s3798_s4 + $0x30] sm:$0xff] (!%p509_p10) }
  0x17   : > { %2727 = vmatpush3.bf16.msra.mxu1 (!%p509_p10), %v2724_v7  ;;  %2709 = vmatprep.subr.bf16.mxu0 (!%p509_p10), %v2708_v8  ;;  %v2716_v25 = vpack.c.bf16 (!%p509_p10), %v694_v21, %v693_v20  ;;  %v1114_v26 = vld [vmem:[%s3799_s5 + $0x20] sm:$0xff] (!%p509_p10)  ;;  %v1115_v27 = vld [vmem:[%s3799_s5 + $0x28] sm:$0xff] (!%p509_p10)  ;;  %v696_v29 = vld [vmem:[%s3798_s4 + $0x38] sm:$0xff] (!%p509_p10) }
  0x18   : > { %2729 = vmatprep.subr.bf16.mxu1 (!%p509_p10), %v2728_v13  ;;  %v2736_v32 = vpack.c.bf16 (!%p509_p10), %v1115_v27, %v1114_v26  ;;  %v2720_v33 = vpack.c.bf16 (!%p509_p10), %v696_v29, %v695_v28  ;;  %v1116_v34 = vld [vmem:[%s3799_s5 + $0x30] sm:$0xff] (!%p509_p10)  ;;  %v1117_v35 = vld [vmem:[%s3799_s5 + $0x38] sm:$0xff] (!%p509_p10)  ;;  %v1770_v19 = vld [vmem:[%s3805_s11 + $0x8] sm:$0xff] (!%p509_p10) }
  0x19   : > { %v2740_v38 = vpack.c.bf16 (!%p509_p10), %v1117_v35, %v1116_v34  ;;  %v1563_v21 = vld [vmem:[%s3804_s10 + $0x10] sm:$0xff] (!%p509_p10)  ;;  %v1565_v27 = vld [vmem:[%s3804_s10 + $0x20] sm:$0xff] (!%p509_p10)  ;;  %v1566_v28 = vld [vmem:[%s3804_s10 + $0x28] sm:$0xff] (!%p509_p10) }
  0x1a   : > { %s3199_s18 = scalar_select %p591_p11, %s3031_s21, 1  ;;  %v2752_v29 = vpack.c.bf16 %v1566_v28, %v1565_v27  ;;  %v1568_v34 = vld [vmem:[%s3804_s10 + $0x38] sm:$0xff] }
  0x1c   : > { %s3214_s24 = sshll.u32 %s3199_s18, 7  ;;  %s602_s20 = scalar_lea.vmem %s3795_s1, %s3199_s18 }
  0x1d   : > { %s3220_s22 = scalar_lea.vmem %s3822_s2, %s3214_s24  ;;  %s3291_s26 = scalar_lea.vmem %s3794_s0, %s3214_s24  ;;  %v3306_v46 = vld [vmem:[%s602_s20] ss:$0 sm:$0xff] }
  0x1e   : > { %v673_v14 = vld [vmem:[%s3220_s22] sm:$0xff]  ;;  %v674_v15 = vld [vmem:[%s3220_s22 + $0x8] sm:$0xff]  ;;  %v675_v16 = vld [vmem:[%s3220_s22 + $0x10] sm:$0xff]  ;;  %s621_s29 = scalar_lea.vmem %s3797_s3, %s3214_s24  ;;  %s576_s20 = sand.u32 1, %s3023_s19  }
  0x1f   : > { %2492 = vmatprep.mubr.msk.f32.mxu0 %vm699_vm0, %v673_v14  ;;  %2560 = vmatprep.mubr.msk.f32.mxu1 %vm699_vm0, %v673_v14  ;;  %v676_v22 = vld [vmem:[%s3220_s22 + $0x18] sm:$0xff]  ;;  %v677_v23 = vld [vmem:[%s3220_s22 + $0x20] sm:$0xff]  ;;  %v678_v30 = vld [vmem:[%s3220_s22 + $0x28] sm:$0xff]  ;;  %s3592_s27 = sshll.u32 %s576_s20, 7  ;;  %s3606_s25 = scalar_lea.vmem %s3809_s15, %s3214_s24 }
  0x20   : > { %2493 = vmatmul.mubr.msk.f32.vlgmr.msra.gmra.mrb[0].mxu0 %vm699_vm0, %v674_v15  ;;  %2561 = vmatmul.mubr.msk.f32.vlgmr.msra.gmra.mrb[0].mxu1 %vm699_vm0, %v674_v15  ;;  %v679_v31 = vld [vmem:[%s3220_s22 + $0x30] sm:$0xff]  ;;  %v680_v36 = vld [vmem:[%s3220_s22 + $0x38] sm:$0xff]  ;;  %v681_v37 = vld [vmem:[%s3220_s22 + $0x40] sm:$0xff]  ;;  %s3627_s24 = scalar_lea.vmem [#allocation2], %s3592_s27 }
  0x21   : > { %2711 = vmatpush3.bf16.msra.mxu0 %v2708_v8  ;;  %2495 = vmatprep.mubr.msk.f32.mxu0 %vm699_vm0, %v675_v16  ;;  %v682_v39 = vld [vmem:[%s3220_s22 + $0x48] sm:$0xff]  ;;  %v683_v40 = vld [vmem:[%s3220_s22 + $0x50] sm:$0xff]  ;;  %v684_v41 = vld [vmem:[%s3220_s22 + $0x58] sm:$0xff]  ;;  %s2050_s18 = sshll.u32 %s3627_s24, 4  ;;  %s3738_s18 = int_to_ptr.vmem [resolvable:$true] %s2050_s18 }
  0x22   : > { %2563 = vmatprep.mubr.msk.f32.mxu1 %vm699_vm0, %v675_v16  ;;  %2713 = vmatprep.subr.bf16.mxu0 %v2712_v17  ;;  %v685_v42 = vld [vmem:[%s3220_s22 + $0x60] sm:$0xff]  ;;  %v686_v43 = vld [vmem:[%s3220_s22 + $0x68] sm:$0xff]  ;;  %v687_v44 = vld [vmem:[%s3220_s22 + $0x70] sm:$0xff]  ;;  %s2961_s27 = scalar_lea.vmem %s3738_s18, 2048 }
  0x23   : > { %2731 = vmatpush3.bf16.msra.mxu1 %v2728_v13  ;;  %v3304_v45 = vld [vmem:[%s3291_s26] sm:$0xff]  ;;  %v688_v47 = vld [vmem:[%s3220_s22 + $0x78] sm:$0xff]  ;;  %v3316_v49 = vld [vmem:[%s3291_s26 + $0x8] sm:$0xff]  ;;  %p2962_p12 = scmp.ne.s32.totalorder %s3738_s18, %s2961_s27 }
  0x24   : > { %2496 = vmatmul.mubr.msk.f32.gmra.mrb[2].mxu0 %vm699_vm0, %v676_v22  ;;  %2564 = vmatmul.mubr.msk.f32.gmra.mrb[2].mxu1 %vm699_vm0, %v676_v22  ;;  %v657_v48 = vadd.f32 %v3306_v46, %v3304_v45  ;;  %v3319_v50 = vld [vmem:[%s3291_s26 + $0x10] sm:$0xff]  ;;  %v658_v51 = vadd.f32 %v3306_v46, %v3316_v49  ;;  %v3330_v53 = vld [vmem:[%s3291_s26 + $0x18] sm:$0xff]  ;;  %v3333_v54 = vld [vmem:[%s3291_s26 + $0x20] sm:$0xff] }
  0x25   : > { %2498 = vmatprep.mubr.msk.f32.mxu0 %vm699_vm0, %v677_v23  ;;  %2566 = vmatprep.mubr.msk.f32.mxu1 %vm699_vm0, %v677_v23  ;;  %v659_v52 = vadd.f32 %v3306_v46, %v3319_v50  ;;  %v660_v55 = vadd.f32 %v3306_v46, %v3330_v53  ;;  %v661_v56 = vadd.f32 %v3306_v46, %v3333_v54  ;;  %v3344_v57 = vld [vmem:[%s3291_s26 + $0x28] sm:$0xff]  ;;  %v3347_v58 = vld [vmem:[%s3291_s26 + $0x30] sm:$0xff]  ;;  %v3358_v61 = vld [vmem:[%s3291_s26 + $0x38] sm:$0xff]  ;;  %p2963_p13 = pnand %p2962_p12, %p3164_p4 }
  0x26   : > { %2715 = vmatpush3.bf16.msra.mxu0 %v2712_v17  ;;  %2733 = vmatprep.subr.bf16.mxu1 %v2732_v24  ;;  %v662_v59 = vadd.f32 %v3306_v46, %v3344_v57  ;;  %v663_v60 = vadd.f32 %v3306_v46, %v3347_v58  ;;  %v3361_v62 = vld [vmem:[%s3291_s26 + $0x40] sm:$0xff]  ;;  %v664_v63 = vadd.f32 %v3306_v46, %v3358_v61  ;;  %v3372_v1 = vld [vmem:[%s3291_s26 + $0x48] sm:$0xff]  ;;  %v3375_v2 = vld [vmem:[%s3291_s26 + $0x50] sm:$0xff] }
  0x27   : > { %2717 = vmatprep.subr.bf16.mxu0 %v2716_v25  ;;  %2735 = vmatpush3.bf16.msra.mxu1 %v2732_v24  ;;  %v665_v0 = vadd.f32 %v3306_v46, %v3361_v62  ;;  %v666_v3 = vadd.f32 %v3306_v46, %v3372_v1  ;;  %v667_v4 = vadd.f32 %v3306_v46, %v3375_v2  ;;  %v3386_v5 = vld [vmem:[%s3291_s26 + $0x58] sm:$0xff]  ;;  %v3389_v6 = vld [vmem:[%s3291_s26 + $0x60] sm:$0xff]  ;;  %v3400_v9 = vld [vmem:[%s3291_s26 + $0x68] sm:$0xff]  ;;  %p2964_p0 = pneg %p2963_p13 }
  0x28   : > { %2499 = vmatmul.mubr.msk.f32.gmra.mrb[4].mxu0 %vm699_vm0, %v678_v30  ;;  %2567 = vmatmul.mubr.msk.f32.gmra.mrb[4].mxu1 %vm699_vm0, %v678_v30  ;;  %v668_v7 = vadd.f32 %v3306_v46, %v3386_v5  ;;  %v669_v8 = vadd.f32 %v3306_v46, %v3389_v6  ;;  %v3403_v10 = vld [vmem:[%s3291_s26 + $0x70] sm:$0xff]  ;;  %v670_v11 = vadd.f32 %v3306_v46, %v3400_v9  ;;  %v3414_v13 = vld [vmem:[%s3291_s26 + $0x78] sm:$0xff]  ;;  %v1561_v15 = vld [vmem:[%s3804_s10] sm:$0xff]  ;;  %s2965_s26 = sshll.u32 %s3041_s17, 4  ;;  %s2966_s26 = int_to_ptr.vmem [resolvable:$false] %s2965_s26 }
  0x29   : > { %2501 = vmatprep.mubr.msk.f32.mxu0 %vm699_vm0, %v679_v31  ;;  %2569 = vmatprep.mubr.msk.f32.mxu1 %vm699_vm0, %v679_v31  ;;  %v671_v12 = vadd.f32 %v3306_v46, %v3403_v10  ;;  %v672_v14 = vadd.f32 %v3306_v46, %v3414_v13  ;;  %v1562_v16 = vld [vmem:[%s3804_s10 + $0x8] sm:$0xff]  ;;  %v1769_v17 = vld [vmem:[%s3805_s11] sm:$0xff]  ;;  %v1564_v22 = vld [vmem:[%s3804_s10 + $0x18] sm:$0xff]  ;;  %p2968_p1 = scmp.lt.s32.totalorder %s3738_s18, %s2966_s26 }
  0x2a   : > { %2719 = vmatpush3.bf16.msra.mxu0 %v2716_v25  ;;  %2737 = vmatprep.subr.bf16.mxu1 %v2736_v32  ;;  %v2744_v18 = vpack.c.bf16 %v1562_v16, %v1561_v15  ;;  %v2760_v20 = vpack.c.bf16 %v1770_v19, %v1769_v17  ;;  %v1771_v23 = vld [vmem:[%s3805_s11 + $0x10] sm:$0xff]  ;;  %v2748_v24 = vpack.c.bf16 %v1564_v22, %v1563_v21  ;;  %v1772_v25 = vld [vmem:[%s3805_s11 + $0x18] sm:$0xff]  ;;  %v1773_v30 = vld [vmem:[%s3805_s11 + $0x20] sm:$0xff] }
  0x2b   : > { %2721 = vmatprep.subr.bf16.mxu0 %v2720_v33  ;;  %2739 = vmatpush3.bf16.msra.mxu1 %v2736_v32  ;;  %v2764_v26 = vpack.c.bf16 %v1772_v25, %v1771_v23  ;;  %v1774_v31 = vld [vmem:[%s3805_s11 + $0x28] sm:$0xff] }
  0x2c   : > { %2502 = vmatmul.mubr.msk.f32.gmra.mrb[6].mxu0 %vm699_vm0, %v680_v36  ;;  %2570 = vmatmul.mubr.msk.f32.gmra.mrb[6].mxu1 %vm699_vm0, %v680_v36  ;;  %v2768_v32 = vpack.c.bf16 %v1774_v31, %v1773_v30  ;;  %v1775_v36 = vld [vmem:[%s3805_s11 + $0x30] sm:$0xff] }
  0x2d   : > { %2504 = vmatprep.mubr.msk.f32.mxu0 %vm699_vm0, %v681_v37  ;;  %2572 = vmatprep.mubr.msk.f32.mxu1 %vm699_vm0, %v681_v37  ;;  %v1776_v37 = vld [vmem:[%s3805_s11 + $0x38] sm:$0xff] }
  0x2e   : > { %2723 = vmatpush3.bf16.msra.mxu0 %v2720_v33  ;;  %2741 = vmatprep.subr.bf16.mxu1 %v2740_v38  ;;  %v1567_v33 = vld [vmem:[%s3804_s10 + $0x30] sm:$0xff] }
  0x2f   : > { %2743 = vmatpush3.bf16.msra.mxu1 %v2740_v38  ;;  %2745 = vmatprep.subr.bf16.mxu0 %v2744_v18  ;;  %v2756_v35 = vpack.c.bf16 %v1568_v34, %v1567_v33  ;;  %v2772_v38 = vpack.c.bf16 %v1776_v37, %v1775_v36 }
  0x30   : > { %2505 = vmatmul.mubr.msk.f32.gmra.mrb[8].mxu0 %vm699_vm0, %v682_v39  ;;  %2573 = vmatmul.mubr.msk.f32.gmra.mrb[8].mxu1 %vm699_vm0, %v682_v39  ;;  %v3475_v39 = vld [vmem:[%s3802_s8] ss:$0 sm:$0xff] }
  0x31   : > { %2507 = vmatprep.mubr.msk.f32.mxu0 %vm699_vm0, %v683_v40  ;;  %2575 = vmatprep.mubr.msk.f32.mxu1 %vm699_vm0, %v683_v40 }
  0x32   : > { %2761 = vmatprep.subr.bf16.mxu1 %v2760_v20 }
  0x34   : > { %2508 = vmatmul.mubr.msk.f32.gmra.mrb[10].mxu0 %vm699_vm0, %v684_v41  ;;  %2576 = vmatmul.mubr.msk.f32.gmra.mrb[10].mxu1 %vm699_vm0, %v684_v41 }
  0x35   : > { %2510 = vmatprep.mubr.msk.f32.mxu0 %vm699_vm0, %v685_v42  ;;  %2578 = vmatprep.mubr.msk.f32.mxu1 %vm699_vm0, %v685_v42  ;;  %v3480_v42 = vld [vmem:[%s3803_s9] ss:$0 sm:$0xff] }
  0x38   : > { %2511 = vmatmul.mubr.msk.f32.gmra.mrb[12].mxu0 %vm699_vm0, %v686_v43  ;;  %2579 = vmatmul.mubr.msk.f32.gmra.mrb[12].mxu1 %vm699_vm0, %v686_v43 }
  0x39   : > { %2513 = vmatprep.mubr.msk.f32.mxu0 %vm699_vm0, %v687_v44  ;;  %2581 = vmatprep.mubr.msk.f32.mxu1 %vm699_vm0, %v687_v44 }
  0x3c   : > { %2514 = vmatmul.mubr.msk.f32.gmra.mrb[14].mxu0 %vm699_vm0, %v688_v47  ;;  %2582 = vmatmul.mubr.msk.f32.gmra.mrb[14].mxu1 %vm699_vm0, %v688_v47 }
  0x3d   : > { %2532 = vmatprep.mubr.msk.f32.mxu0 %vm893_vm1, %v657_v48  ;;  %2600 = vmatprep.mubr.msk.f32.mxu1 %vm893_vm1, %v657_v48 }
  0x40   : > { %2533 = vmatmul.mubr.msk.f32.vlgmr.msra.gmra.mrb[0].mxu0 %vm893_vm1, %v658_v51  ;;  %2601 = vmatmul.mubr.msk.f32.vlgmr.msra.gmra.mrb[0].mxu1 %vm893_vm1, %v658_v51 }
  0x41   : > { %2535 = vmatprep.mubr.msk.f32.mxu0 %vm893_vm1, %v659_v52  ;;  %2603 = vmatprep.mubr.msk.f32.mxu1 %vm893_vm1, %v659_v52 }
  0x42   : > { %2747 = vmatpush3.bf16.msra.mxu0 %v2744_v18  ;;  %2763 = vmatpush3.bf16.msra.mxu1 %v2760_v20 }
  0x43   : > { %2749 = vmatprep.subr.bf16.mxu0 %v2748_v24  ;;  %2765 = vmatprep.subr.bf16.mxu1 %v2764_v26 }
  0x44   : > { %2536 = vmatmul.mubr.msk.f32.gmra.mrb[2].mxu0 %vm893_vm1, %v660_v55  ;;  %2604 = vmatmul.mubr.msk.f32.gmra.mrb[2].mxu1 %vm893_vm1, %v660_v55 }
  0x45   : > { %2538 = vmatprep.mubr.msk.f32.mxu0 %vm893_vm1, %v661_v56  ;;  %2606 = vmatprep.mubr.msk.f32.mxu1 %vm893_vm1, %v661_v56 }
  0x46   : > { %2751 = vmatpush3.bf16.msra.mxu0 %v2748_v24  ;;  %2767 = vmatpush3.bf16.msra.mxu1 %v2764_v26 }
  0x47   : > { %2753 = vmatprep.subr.bf16.mxu0 %v2752_v29  ;;  %2769 = vmatprep.subr.bf16.mxu1 %v2768_v32 }
  0x48   : > { %2539 = vmatmul.mubr.msk.f32.gmra.mrb[4].mxu0 %vm893_vm1, %v662_v59  ;;  %2607 = vmatmul.mubr.msk.f32.gmra.mrb[4].mxu1 %vm893_vm1, %v662_v59 }
  0x49   : > { %2541 = vmatprep.mubr.msk.f32.mxu0 %vm893_vm1, %v663_v60  ;;  %2609 = vmatprep.mubr.msk.f32.mxu1 %vm893_vm1, %v663_v60 }
  0x4a   : > { %2755 = vmatpush3.bf16.msra.mxu0 %v2752_v29  ;;  %2771 = vmatpush3.bf16.msra.mxu1 %v2768_v32 }
  0x4b   : > { %2757 = vmatprep.subr.bf16.mxu0 %v2756_v35  ;;  %2773 = vmatprep.subr.bf16.mxu1 %v2772_v38 }
  0x4c   : > { %2542 = vmatmul.mubr.msk.f32.gmra.mrb[6].mxu0 %vm893_vm1, %v664_v63  ;;  %2610 = vmatmul.mubr.msk.f32.gmra.mrb[6].mxu1 %vm893_vm1, %v664_v63 }
  0x4d   : > { %2544 = vmatprep.mubr.msk.f32.mxu0 %vm893_vm1, %v665_v0  ;;  %2612 = vmatprep.mubr.msk.f32.mxu1 %vm893_vm1, %v665_v0 }
  0x4e   : > { %2759 = vmatpush3.bf16.msra.mxu0 %v2756_v35  ;;  %2775 = vmatpush3.bf16.msra.mxu1 %v2772_v38 }
  0x50   : > { %2545 = vmatmul.mubr.msk.f32.gmra.mrb[8].mxu0 %vm893_vm1, %v666_v3  ;;  %2613 = vmatmul.mubr.msk.f32.gmra.mrb[8].mxu1 %vm893_vm1, %v666_v3 }
  0x51   : > { %2547 = vmatprep.mubr.msk.f32.mxu0 %vm893_vm1, %v667_v4  ;;  %2615 = vmatprep.mubr.msk.f32.mxu1 %vm893_vm1, %v667_v4 }
  0x54   : > { %2548 = vmatmul.mubr.msk.f32.gmra.mrb[10].mxu0 %vm893_vm1, %v668_v7  ;;  %2616 = vmatmul.mubr.msk.f32.gmra.mrb[10].mxu1 %vm893_vm1, %v668_v7 }
  0x55   : > { %2550 = vmatprep.mubr.msk.f32.mxu0 %vm893_vm1, %v669_v8  ;;  %2618 = vmatprep.mubr.msk.f32.mxu1 %vm893_vm1, %v669_v8 }
  0x58   : > { %2551 = vmatmul.mubr.msk.f32.gmra.mrb[12].mxu0 %vm893_vm1, %v670_v11  ;;  %2619 = vmatmul.mubr.msk.f32.gmra.mrb[12].mxu1 %vm893_vm1, %v670_v11 }
  0x59   : > { %2553 = vmatprep.mubr.msk.f32.mxu0 %vm893_vm1, %v671_v12  ;;  %2621 = vmatprep.mubr.msk.f32.mxu1 %vm893_vm1, %v671_v12 }
  0x5c   : > { %2554 = vmatmul.mubr.msk.f32.gmra.mrb[14].mxu0 %vm893_vm1, %v672_v14  ;;  %2622 = vmatmul.mubr.msk.f32.gmra.mrb[14].mxu1 %vm893_vm1, %v672_v14 }
 0x113   : > { %v2534_v40 = vpop.f32.mrb[0].mxu0  ;;  %v2602_v41 = vpop.f32.mrb[0].mxu1 }
 0x114   : > { %v1095_v43 = vadd.f32 %v2534_v40, %v3475_v39  ;;  %v1008_v44 = vpop.f32.mrb[1].mxu0  ;;  %v1331_v46 = vpop.f32.mrb[1].mxu1  ;;  %v1418_v51 = vadd.f32 %v2602_v41, %v3480_v42 }
 0x115   : > { %v1094_v47 = vadd.f32 %v3475_v39, %v1008_v44  ;;  %v1417_v55 = vadd.f32 %v3480_v42, %v1331_v46 }
 0x116   : > { %v2297_v48 = vmul.f32 -1.442695, %v1095_v43 }
 0x117   : > { %v2296_v52 = vmul.f32 -1.442695, %v1094_v47  ;;  %v2537_v56 = vpop.f32.mrb[2].mxu0  ;;  %v2605_v59 = vpop.f32.mrb[2].mxu1 }
 0x118   : > { %2865 = vpow2.f32 %v2297_v48  ;;  %v1097_v60 = vadd.f32 %v2537_v56, %v3475_v39  ;;  %v1018_v63 = vpop.f32.mrb[3].mxu0  ;;  %v1341_v0 = vpop.f32.mrb[3].mxu1  ;;  %v1420_v7 = vadd.f32 %v2605_v59, %v3480_v42 }
 0x119   : > { %2867 = vpow2.f32 %v2296_v52  ;;  %v1096_v3 = vadd.f32 %v3475_v39, %v1018_v63  ;;  %v1419_v11 = vadd.f32 %v3480_v42, %v1341_v0 }
 0x11a   : > { %2869 = vtanh.f32 %v1418_v51  ;;  %v2299_v4 = vmul.f32 -1.442695, %v1097_v60 }
 0x11b   : > { %2871 = vtanh.f32 %v1417_v55  ;;  %v2298_v8 = vmul.f32 -1.442695, %v1096_v3  ;;  %v2540_v12 = vpop.f32.mrb[4].mxu0  ;;  %v2608_v14 = vpop.f32.mrb[4].mxu1 }
 0x11c   : > { %2873 = vpow2.f32 %v2299_v4  ;;  %v1099_v15 = vadd.f32 %v2540_v12, %v3475_v39  ;;  %v1028_v16 = vpop.f32.mrb[5].mxu0  ;;  %v1351_v17 = vpop.f32.mrb[5].mxu1  ;;  %v1422_v20 = vadd.f32 %v2608_v14, %v3480_v42 }
 0x11d   : > { %2875 = vpow2.f32 %v2298_v8  ;;  %v1098_v18 = vadd.f32 %v3475_v39, %v1028_v16  ;;  %v1421_v22 = vadd.f32 %v3480_v42, %v1351_v17 }
 0x11e   : > { %2877 = vtanh.f32 %v1420_v7  ;;  %v2301_v19 = vmul.f32 -1.442695, %v1099_v15 }
 0x11f   : > { %2879 = vtanh.f32 %v1419_v11  ;;  %v2300_v21 = vmul.f32 -1.442695, %v1098_v18  ;;  %v2543_v23 = vpop.f32.mrb[6].mxu0  ;;  %v2611_v24 = vpop.f32.mrb[6].mxu1 }
 0x120   : > { %2881 = vpow2.f32 %v2301_v19  ;;  %v1101_v25 = vadd.f32 %v2543_v23, %v3475_v39  ;;  %v1038_v26 = vpop.f32.mrb[7].mxu0  ;;  %v1361_v27 = vpop.f32.mrb[7].mxu1  ;;  %v1424_v52 = vadd.f32 %v2611_v24, %v3480_v42 }
 0x121   : > { %2883 = vpow2.f32 %v2300_v21  ;;  %v1100_v28 = vadd.f32 %v3475_v39, %v1038_v26  ;;  %v1423_v14 = vadd.f32 %v3480_v42, %v1361_v27 }
 0x122   : > { %v2866_v29 = vpop.eup %2865  ;;  %2885 = vtanh.f32 %v1422_v20  ;;  %v2303_v30 = vmul.f32 -1.442695, %v1101_v25 }
 0x123   : > { %v2868_v31 = vpop.eup %2867  ;;  %v1482_v32 = vadd.f32 1.0, %v2866_v29  ;;  %2887 = vtanh.f32 %v1421_v22  ;;  %v2302_v33 = vmul.f32 -1.442695, %v1100_v28  ;;  %v2546_v34 = vpop.f32.mrb[8].mxu0 }
 0x124   : > { %v2614_v35 = vpop.f32.mrb[8].mxu1  ;;  %v2870_v36 = vpop.eup %2869  ;;  %v1481_v37 = vadd.f32 1.0, %v2868_v31  ;;  %2889 = vpow2.f32 %v2303_v30  ;;  %v1103_v38 = vadd.f32 %v2546_v34, %v3475_v39 }
 0x125   : > { %v1048_v40 = vpop.f32.mrb[9].mxu0  ;;  %v3497_v41 = vpop.f32.mrb[9].mxu1  ;;  %2891 = vrcp.f32 %v1482_v32  ;;  %v1426_v25 = vadd.f32 %v2614_v35, %v3480_v42 }
 0x126   : > { %v2872_v43 = vpop.eup %2871  ;;  %v1102_v44 = vadd.f32 %v3475_v39, %v1048_v40  ;;  %2893 = vrcp.f32 %v1481_v37  ;;  %v2305_v47 = vmul.f32 -1.442695, %v1103_v38 }
 0x127   : > { %v2874_v46 = vpop.eup %2873  ;;  %2895 = vpow2.f32 %v2302_v33  ;;  %v2549_v55 = vpop.f32.mrb[10].mxu0 }
 0x128   : > { %v2876_v48 = vpop.eup %2875  ;;  %v1484_v51 = vadd.f32 1.0, %v2874_v46  ;;  %v3501_v56 = vpop.f32.mrb[10].mxu1  ;;  %2897 = vpow2.f32 %v2305_v47  ;;  %v2304_v63 = vmul.f32 -1.442695, %v1102_v44  ;;  %v1105_v0 = vadd.f32 %v2549_v55, %v3475_v39 }
 0x129   : > { %v2878_v59 = vpop.eup %2877  ;;  %v1483_v60 = vadd.f32 1.0, %v2876_v48  ;;  %v1058_v3 = vpop.f32.mrb[11].mxu0 }
 0x12a   : > { %v3504_v4 = vpop.f32.mrb[11].mxu1  ;;  %v2880_v7 = vpop.eup %2879  ;;  %2899 = vrcp.f32 %v1484_v51  ;;  %v1104_v15 = vadd.f32 %v3475_v39, %v1058_v3  ;;  %v2307_v20 = vmul.f32 -1.442695, %v1105_v0 }
 0x12b   : > { %v2882_v8 = vpop.eup %2881  ;;  %2901 = vrcp.f32 %v1483_v60  ;;  %v2552_v16 = vpop.f32.mrb[12].mxu0 }
 0x12c   : > { %v2884_v11 = vpop.eup %2883  ;;  %v1486_v12 = vadd.f32 1.0, %v2882_v8  ;;  %2903 = vtanh.f32 %v1424_v52  ;;  %v3508_v17 = vpop.f32.mrb[12].mxu1  ;;  %v2306_v28 = vmul.f32 -1.442695, %v1104_v15  ;;  %v1107_v29 = vadd.f32 %v2552_v16, %v3475_v39 }
 0x12d   : > { %v2886_v18 = vpop.eup %2885  ;;  %v1485_v19 = vadd.f32 1.0, %v2884_v11  ;;  %2905 = vpow2.f32 %v2304_v63  ;;  %v1068_v21 = vpop.f32.mrb[13].mxu0  ;;  %v1425_v52 = vadd.f32 %v3480_v42, %v3497_v41 }
 0x12e   : > { %v3510_v22 = vpop.f32.mrb[13].mxu1  ;;  %v2888_v23 = vpop.eup %2887  ;;  %2907 = vrcp.f32 %v1486_v12  ;;  %v1106_v46 = vadd.f32 %v3475_v39, %v1068_v21  ;;  %v2309_v51 = vmul.f32 -1.442695, %v1107_v29  ;;  %v1428_v12 = vadd.f32 %v3501_v56, %v3480_v42 }
 0x12f   : > { %v2890_v24 = vpop.eup %2889  ;;  %2909 = vrcp.f32 %v1485_v19  ;;  %v2555_v30 = vpop.f32.mrb[14].mxu0  ;;  %v1427_v56 = vadd.f32 %v3480_v42, %v3504_v4 }
 0x130   : > { %v2892_v26 = vpop.eup %2891  ;;  %v1488_v27 = vadd.f32 1.0, %v2890_v24  ;;  %2911 = vtanh.f32 %v1423_v14  ;;  %v3514_v31 = vpop.f32.mrb[14].mxu1  ;;  %v2308_v3 = vmul.f32 -1.442695, %v1106_v46 }
 0x131   : > { %v2894_v32 = vpop.eup %2893  ;;  %v1546_v33 = vmul.f32 %v2892_v26, %v2870_v36  ;;  %2913 = vpow2.f32 %v2307_v20  ;;  %v1078_v34 = vpop.f32.mrb[15].mxu0 }
 0x132   : > { %v3516_v37 = vpop.f32.mrb[15].mxu1  ;;  %v2896_v38 = vpop.eup %2895  ;;  %2915 = vrcp.f32 %v1488_v27  ;;  %v1545_v40 = vmul.f32 %v2894_v32, %v2872_v43  ;;  %v1109_v43 = vadd.f32 %v2555_v30, %v3475_v39  ;;  %v1108_v41 = vadd.f32 %v3475_v39, %v1078_v34 }
 0x133   : > { %v2898_v44 = vpop.eup %2897  ;;  %v1487_v35 = vadd.f32 1.0, %v2896_v38  ;;  %2917 = vtanh.f32 %v1426_v25  ;;  %v1430_v27 = vadd.f32 %v3508_v17, %v3480_v42  ;;  %v1429_v34 = vadd.f32 %v3480_v42, %v3510_v22 }
 0x134   : > { %v2900_v47 = vpop.eup %2899  ;;  %v1490_v48 = vadd.f32 1.0, %v2898_v44  ;;  %2919 = vpow2.f32 %v2306_v28  ;;  %2640 = vmatprep.mubr.msk.f32.mxu0 %vm893_vm1, %v1545_v40  ;;  %2680 = vmatprep.mubr.msk.f32.mxu1 %vm893_vm1, %v1545_v40  ;;  %v2310_v21 = vmul.f32 -1.442695, %v1108_v41  ;;  %v1432_v40 = vadd.f32 %v3514_v31, %v3480_v42 }
 0x135   : > { %v2902_v36 = vpop.eup %2901  ;;  %2921 = vrcp.f32 %v1487_v35  ;;  %2641 = vmatmul.mubr.msk.f32.vlgmr.msra.gmra.mrb[16].mxu0 %vm893_vm1, %v1546_v33  ;;  %2681 = vmatmul.mubr.msk.f32.vlgmr.msra.gmra.mrb[16].mxu1 %vm893_vm1, %v1546_v33  ;;  %v1548_v55 = vmul.f32 %v2900_v47, %v2878_v59  ;;  %v2311_v59 = vmul.f32 -1.442695, %v1109_v43 }
 0x136   : > { %v2904_v60 = vpop.eup %2903  ;;  %2923 = vrcp.f32 %v1490_v48  ;;  %v1547_v63 = vmul.f32 %v2902_v36, %v2880_v7 }
 0x137   : > { %v2906_v0 = vpop.eup %2905  ;;  %2925 = vpow2.f32 %v2309_v51  ;;  %v1431_v51 = vadd.f32 %v3480_v42, %v3516_v37 }
 0x138   : > { %v2908_v8 = vpop.eup %2907  ;;  %v1489_v11 = vadd.f32 1.0, %v2906_v0  ;;  %2643 = vmatprep.mubr.msk.f32.mxu0 %vm893_vm1, %v1547_v63  ;;  %2683 = vmatprep.mubr.msk.f32.mxu1 %vm893_vm1, %v1547_v63  ;;  %2927 = vtanh.f32 %v1425_v52 }
 0x139   : > { %v2910_v14 = vpop.eup %2909  ;;  %2644 = vmatmul.mubr.msk.f32.gmra.mrb[18].mxu0 %vm893_vm1, %v1548_v55  ;;  %2684 = vmatmul.mubr.msk.f32.gmra.mrb[18].mxu1 %vm893_vm1, %v1548_v55  ;;  %v1550_v7 = vmul.f32 %v2908_v8, %v2886_v18 }
 0x13a   : > { %v2912_v15 = vpop.eup %2911  ;;  %2929 = vrcp.f32 %v1489_v11  ;;  %v1549_v16 = vmul.f32 %v2910_v14, %v2888_v23 }
 0x13b   : > { %v2914_v19 = vpop.eup %2913  ;;  %2931 = vpow2.f32 %v2308_v3 }
 0x13c   : > { %v2916_v39 = vpop.eup %2915  ;;  %v1492_v20 = vadd.f32 1.0, %v2914_v19  ;;  %2933 = vtanh.f32 %v1428_v12  ;;  %2646 = vmatprep.mubr.msk.f32.mxu0 %vm893_vm1, %v1549_v16  ;;  %2686 = vmatprep.mubr.msk.f32.mxu1 %vm893_vm1, %v1549_v16  ;;  %v3580_v16 = vld [vmem:[%s3807_s13] ss:$0 sm:$0xff]  ;;  %v1978_v19 = vld [vmem:[%s621_s29 + $0x8] sm:$0xff] }
 0x13d   : > { %v2918_v24 = vpop.eup %2917  ;;  %2935 = vpow2.f32 %v2311_v59  ;;  %2647 = vmatmul.mubr.msk.f32.gmra.mrb[20].mxu0 %vm893_vm1, %v1550_v7  ;;  %2687 = vmatmul.mubr.msk.f32.gmra.mrb[20].mxu1 %vm893_vm1, %v1550_v7  ;;  %v1552_v18 = vmul.f32 %v2916_v39, %v2904_v60 }
 0x13e   : > { %v2920_v23 = vpop.eup %2919  ;;  %2937 = vrcp.f32 %v1492_v20 }
 0x13f   : > { %v2922_v25 = vpop.eup %2921  ;;  %v1491_v4 = vadd.f32 1.0, %v2920_v23  ;;  %2939 = vtanh.f32 %v1427_v56  ;;  %v1977_v56 = vld [vmem:[%s621_s29] sm:$0xff] }
 0x140   : > { %v2924_v26 = vpop.eup %2923  ;;  %2941 = vpow2.f32 %v2310_v21  ;;  %v1551_v28 = vmul.f32 %v2922_v25, %v2912_v15  ;;  %v3575_v15 = vld [vmem:[%s3806_s12] ss:$0 sm:$0xff]  ;;  %v1980_v21 = vld [vmem:[%s621_s29 + $0x18] sm:$0xff] }
 0x141   : > { %2943 = vrcp.f32 %v1491_v4  ;;  %v1554_v29 = vmul.f32 %v2924_v26, %v2918_v24  ;;  %v2926_v30 = vpop.eup %2925  ;;  %v1979_v24 = vld [vmem:[%s621_s29 + $0x10] sm:$0xff]  ;;  %v1981_v23 = vld [vmem:[%s621_s29 + $0x20] sm:$0xff]  ;;  %v3582_v25 = vld [vmem:[%s621_s29 + $0x38] sm:$0xff] }
 0x142   : > { %2649 = vmatprep.mubr.msk.f32.mxu0 %vm893_vm1, %v1551_v28  ;;  %2689 = vmatprep.mubr.msk.f32.mxu1 %vm893_vm1, %v1551_v28  ;;  %v2928_v32 = vpop.eup %2927  ;;  %v1494_v33 = vadd.f32 1.0, %v2926_v30  ;;  %2945 = vtanh.f32 %v1430_v27  ;;  %v3584_v4 = vld [vmem:[%s621_s29 + $0x30] sm:$0xff]  ;;  %v3586_v26 = vld [vmem:[%s621_s29 + $0x48] sm:$0xff]  ;;  %v3588_v27 = vld [vmem:[%s621_s29 + $0x40] sm:$0xff] }
 0x143   : > { %2650 = vmatmul.mubr.msk.f32.gmra.mrb[22].mxu0 %vm893_vm1, %v1552_v18  ;;  %2690 = vmatmul.mubr.msk.f32.gmra.mrb[22].mxu1 %vm893_vm1, %v1552_v18  ;;  %v1982_v18 = vld [vmem:[%s621_s29 + $0x28] sm:$0xff] }
 0x144   : > { %v2930_v38 = vpop.eup %2929  ;;  %2947 = vrcp.f32 %v1494_v33  ;;  %v3596_v33 = vld [vmem:[%s621_s29 + $0x58] sm:$0xff] }
 0x145   : > { %v2932_v17 = vpop.eup %2931  ;;  %v1553_v44 = vmul.f32 %v2930_v38, %v2928_v32  ;;  %2949 = vtanh.f32 %v1429_v34  ;;  %v3598_v34 = vld [vmem:[%s621_s29 + $0x50] sm:$0xff]  ;;  %v3600_v38 = vld [vmem:[%s621_s29 + $0x68] sm:$0xff] }
 0x146   : > { %v2934_v35 = vpop.eup %2933  ;;  %v1493_v46 = vadd.f32 1.0, %v2932_v17 }
 0x147   : > { %v2936_v47 = vpop.eup %2935  ;;  %2652 = vmatprep.mubr.msk.f32.mxu0 %vm893_vm1, %v1553_v44  ;;  %2692 = vmatprep.mubr.msk.f32.mxu1 %vm893_vm1, %v1553_v44  ;;  %v3610_v44 = vld [vmem:[%s621_s29 + $0x60] sm:$0xff] }
 0x148   : > { %v2938_v22 = vpop.eup %2937  ;;  %2951 = vrcp.f32 %v1493_v46  ;;  %v1496_v48 = vadd.f32 1.0, %v2936_v47  ;;  %2653 = vmatmul.mubr.msk.f32.gmra.mrb[24].mxu0 %vm893_vm1, %v1554_v29  ;;  %2693 = vmatmul.mubr.msk.f32.gmra.mrb[24].mxu1 %vm893_vm1, %v1554_v29  ;;  %v3614_v46 = vld [vmem:[%s621_s29 + $0x70] sm:$0xff] }
 0x149   : > { %v2940_v31 = vpop.eup %2939  ;;  %2953 = vtanh.f32 %v1432_v40  ;;  %v1556_v36 = vmul.f32 %v2938_v22, %v2934_v35  ;;  %v3612_v35 = vld [vmem:[%s621_s29 + $0x78] sm:$0xff]  ;;  %s2355_s29 = sshll.u32 %s3031_s21, 11  ;;  %s3748_s21 = scalar_lea.sflag [#allocation3], %s576_s20 }
 0x14a   : > { %v2942_v52 = vpop.eup %2941  ;;  %2955 = vrcp.f32 %v1496_v48  ;;  %s3736_s2 = scalar_lea.hbm %s3808_s14, %s2355_s29  ;;  %s2967_s29 = scalar_lea.vmem %s2966_s26, 4096 }
 0x14b   : > { %v2944_v43 = vpop.eup %2943  ;;  %v1495_v55 = vadd.f32 1.0, %v2942_v52  ;;  %2957 = vtanh.f32 %v1431_v51  ;;  %p2969_p2 = scmp.lt.s32.totalorder %s2967_s29, %s2961_s27 }
 0x14c   : > { %v1555_v60 = vmul.f32 %v2944_v43, %v2940_v31  ;;  %v2946_v63 = vpop.eup %2945 }
 0x14d   : > { %2959 = vrcp.f32 %v1495_v55  ;;  %p2970_p3 = por %p2969_p2, %p2968_p1 }
 0x14e   : > { %2655 = vmatprep.mubr.msk.f32.mxu0 %vm893_vm1, %v1555_v60  ;;  %2695 = vmatprep.mubr.msk.f32.mxu1 %vm893_vm1, %v1555_v60  ;;  %v2948_v42 = vpop.eup %2947 }
 0x14f   : > { %2656 = vmatmul.mubr.msk.f32.gmra.mrb[26].mxu0 %vm893_vm1, %v1556_v36  ;;  %2696 = vmatmul.mubr.msk.f32.gmra.mrb[26].mxu1 %vm893_vm1, %v1556_v36  ;;  %v1558_v37 = vmul.f32 %v2948_v42, %v2946_v63  ;;  %v2950_v0 = vpop.eup %2949  ;;  %p2971_p5 = pnand %p2970_p3, %p2964_p0 }
 0x152   : > { %v2952_v3 = vpop.eup %2951 }
 0x153   : > { %v2954_v8 = vpop.eup %2953  ;;  %v1557_v11 = vmul.f32 %v2952_v3, %v2950_v0 }
 0x154   : > { %v2956_v12 = vpop.eup %2955 }
 0x155   : > { %2658 = vmatprep.mubr.msk.f32.mxu0 %vm893_vm1, %v1557_v11  ;;  %2698 = vmatprep.mubr.msk.f32.mxu1 %vm893_vm1, %v1557_v11  ;;  %v1560_v41 = vmul.f32 %v2956_v12, %v2954_v8  ;;  %v2958_v14 = vpop.eup %2957 }
 0x156   : > { %2659 = vmatmul.mubr.msk.f32.gmra.mrb[28].mxu0 %vm893_vm1, %v1558_v37  ;;  %2699 = vmatmul.mubr.msk.f32.gmra.mrb[28].mxu1 %vm893_vm1, %v1558_v37 }
 0x157   : > { %v2960_v59 = vpop.eup %2959 }
 0x158   : > { %v1559_v7 = vmul.f32 %v2960_v59, %v2958_v14 }
 0x15a   : > { %2661 = vmatprep.mubr.msk.f32.mxu0 %vm893_vm1, %v1559_v7  ;;  %2701 = vmatprep.mubr.msk.f32.mxu1 %vm893_vm1, %v1559_v7 }
 0x15b   : > { %2662 = vmatmul.mubr.msk.f32.gmra.mrb[30].mxu0 %vm893_vm1, %v1560_v41  ;;  %2702 = vmatmul.mubr.msk.f32.gmra.mrb[30].mxu1 %vm893_vm1, %v1560_v41 }
 0x208   : > { %v2642_v39 = vpop.f32.mrb[16].mxu0  ;;  %v2682_v20 = vpop.f32.mrb[16].mxu1 }
 0x209   : > { %v1696_v28 = vadd.f32 %v2642_v39, %v3575_v15  ;;  %v1856_v29 = vadd.f32 %v2682_v20, %v3580_v16  ;;  %v1690_v30 = vpop.f32.mrb[17].mxu0  ;;  %v1850_v32 = vpop.f32.mrb[17].mxu1 }
 0x20a   : > { %v1691_v17 = vadd.f32 %v3575_v15, %v1690_v30  ;;  %v1851_v40 = vadd.f32 %v3580_v16, %v1850_v32 }
 0x20b   : > { %v1930_v47 = vadd.f32 %v1696_v28, %v3316_v49  ;;  %v1994_v22 = vadd.f32 %v1978_v19, %v1856_v29 }
 0x20c   : > { %v1929_v48 = vadd.f32 %v1691_v17, %v3304_v45  ;;  %v1993_v51 = vadd.f32 %v1977_v56, %v1851_v40  ;;  %v2645_v31 = vpop.f32.mrb[18].mxu0  ;;  %v2685_v36 = vpop.f32.mrb[18].mxu1 }
 0x20d   : > { %v1946_v52 = vmul.f32 0.70710677, %v1930_v47  ;;  %v1706_v43 = vadd.f32 %v2645_v31, %v3575_v15  ;;  %v1866_v55 = vadd.f32 %v2685_v36, %v3580_v16  ;;  %v1700_v60 = vpop.f32.mrb[19].mxu0  ;;  %v1860_v63 = vpop.f32.mrb[19].mxu1  ;;  %2010 = vst.msk [vmem:[%s3606_s25 + $0x8] sm:$0xff] %vm893_vm1, %v1994_v22 }
 0x20e   : > { %v1945_v42 = vmul.f32 0.70710677, %v1929_v48  ;;  %v1701_v37 = vadd.f32 %v3575_v15, %v1700_v60  ;;  %v1861_v49 = vadd.f32 %v3580_v16, %v1860_v63  ;;  %2009 = vst.msk [vmem:[%s3606_s25] sm:$0xff] %vm893_vm1, %v1993_v51 }
 0x20f   : > { %1962 = vst.msk [vmem:[%s3627_s24 + $0x8] sm:$0xff] %vm893_vm1, %v1946_v52  ;;  %v1932_v45 = vadd.f32 %v1706_v43, %v3330_v53  ;;  %v1996_v0 = vadd.f32 %v1980_v21, %v1866_v55 }
 0x210   : > { %1961 = vst.msk [vmem:[%s3627_s24] sm:$0xff] %vm893_vm1, %v1945_v42  ;;  %v1931_v3 = vadd.f32 %v1701_v37, %v3319_v50  ;;  %v1995_v8 = vadd.f32 %v1979_v24, %v1861_v49  ;;  %v2648_v11 = vpop.f32.mrb[20].mxu0  ;;  %v2688_v12 = vpop.f32.mrb[20].mxu1 }
 0x211   : > { %v1948_v41 = vmul.f32 0.70710677, %v1932_v45  ;;  %v1716_v14 = vadd.f32 %v2648_v11, %v3575_v15  ;;  %v1876_v59 = vadd.f32 %v2688_v12, %v3580_v16  ;;  %v1710_v7 = vpop.f32.mrb[21].mxu0  ;;  %v1870_v19 = vpop.f32.mrb[21].mxu1  ;;  %2012 = vst.msk [vmem:[%s3606_s25 + $0x18] sm:$0xff] %vm893_vm1, %v1996_v0 }
 0x212   : > { %v1947_v53 = vmul.f32 0.70710677, %v1931_v3  ;;  %v1711_v56 = vadd.f32 %v3575_v15, %v1710_v7  ;;  %v1871_v50 = vadd.f32 %v3580_v16, %v1870_v19  ;;  %2011 = vst.msk [vmem:[%s3606_s25 + $0x10] sm:$0xff] %vm893_vm1, %v1995_v8 }
 0x213   : > { %1964 = vst.msk [vmem:[%s3627_s24 + $0x18] sm:$0xff] %vm893_vm1, %v1948_v41  ;;  %v1934_v39 = vadd.f32 %v1716_v14, %v3344_v57  ;;  %v1998_v20 = vadd.f32 %v1982_v18, %v1876_v59 }
 0x214   : > { %1963 = vst.msk [vmem:[%s3627_s24 + $0x10] sm:$0xff] %vm893_vm1, %v1947_v53  ;;  %v1933_v21 = vadd.f32 %v1711_v56, %v3333_v54  ;;  %v1997_v24 = vadd.f32 %v1981_v23, %v1871_v50 }
 0x215   : > { %v1950_v28 = vmul.f32 0.70710677, %v1934_v39  ;;  %2014 = vst.msk [vmem:[%s3606_s25 + $0x28] sm:$0xff] %vm893_vm1, %v1998_v20 }
 0x216   : > { %v1949_v29 = vmul.f32 0.70710677, %v1933_v21  ;;  %v2651_v30 = vpop.f32.mrb[22].mxu0  ;;  %v2691_v32 = vpop.f32.mrb[22].mxu1  ;;  %2013 = vst.msk [vmem:[%s3606_s25 + $0x20] sm:$0xff] %vm893_vm1, %v1997_v24 }
 0x217   : > { %1966 = vst.msk [vmem:[%s3627_s24 + $0x28] sm:$0xff] %vm893_vm1, %v1950_v28  ;;  %v1726_v57 = vadd.f32 %v2651_v30, %v3575_v15  ;;  %v1886_v18 = vadd.f32 %v2691_v32, %v3580_v16  ;;  %v1720_v17 = vpop.f32.mrb[23].mxu0  ;;  %v1880_v40 = vpop.f32.mrb[23].mxu1 }
 0x218   : > { %1965 = vst.msk [vmem:[%s3627_s24 + $0x20] sm:$0xff] %vm893_vm1, %v1949_v29  ;;  %v1721_v54 = vadd.f32 %v3575_v15, %v1720_v17  ;;  %v1881_v23 = vadd.f32 %v3580_v16, %v1880_v40 }
 0x219   : > { %v1936_v47 = vadd.f32 %v1726_v57, %v3358_v61  ;;  %v2000_v22 = vadd.f32 %v3582_v25, %v1886_v18 }
 0x21a   : > { %v1935_v48 = vadd.f32 %v1721_v54, %v3347_v58  ;;  %v1999_v51 = vadd.f32 %v3584_v4, %v1881_v23 }
 0x21b   : > { %v1952_v31 = vmul.f32 0.70710677, %v1936_v47  ;;  %v2654_v36 = vpop.f32.mrb[24].mxu0  ;;  %v2694_v52 = vpop.f32.mrb[24].mxu1  ;;  %2016 = vst.msk [vmem:[%s3606_s25 + $0x38] sm:$0xff] %vm893_vm1, %v2000_v22 }
 0x21c   : > { %v1951_v43 = vmul.f32 0.70710677, %v1935_v48  ;;  %v1736_v55 = vadd.f32 %v2654_v36, %v3575_v15  ;;  %v1896_v60 = vadd.f32 %v2694_v52, %v3580_v16  ;;  %v1730_v61 = vpop.f32.mrb[25].mxu0  ;;  %v1890_v25 = vpop.f32.mrb[25].mxu1  ;;  %2015 = vst.msk [vmem:[%s3606_s25 + $0x30] sm:$0xff] %vm893_vm1, %v1999_v51 }
 0x21d   : > { %1968 = vst.msk [vmem:[%s3627_s24 + $0x38] sm:$0xff] %vm893_vm1, %v1952_v31  ;;  %v1731_v58 = vadd.f32 %v3575_v15, %v1730_v61  ;;  %v1891_v4 = vadd.f32 %v3580_v16, %v1890_v25 }
 0x21e   : > { %1967 = vst.msk [vmem:[%s3627_s24 + $0x30] sm:$0xff] %vm893_vm1, %v1951_v43  ;;  %v1938_v63 = vadd.f32 %v1736_v55, %v3372_v1  ;;  %v2002_v42 = vadd.f32 %v3586_v26, %v1896_v60 }
 0x21f   : > { %v1937_v37 = vadd.f32 %v1731_v58, %v3361_v62  ;;  %v2001_v49 = vadd.f32 %v3588_v27, %v1891_v4 }
 0x220   : > { %v1954_v45 = vmul.f32 0.70710677, %v1938_v63  ;;  %2018 = vst.msk [vmem:[%s3606_s25 + $0x48] sm:$0xff] %vm893_vm1, %v2002_v42 }
 0x221   : > { %v1953_v0 = vmul.f32 0.70710677, %v1937_v37  ;;  %2017 = vst.msk [vmem:[%s3606_s25 + $0x40] sm:$0xff] %vm893_vm1, %v2001_v49 }
 0x222   : > { %1970 = vst.msk [vmem:[%s3627_s24 + $0x48] sm:$0xff] %vm893_vm1, %v1954_v45  ;;  %v2657_v3 = vpop.f32.mrb[26].mxu0  ;;  %v2697_v8 = vpop.f32.mrb[26].mxu1 }
 0x223   : > { %1969 = vst.msk [vmem:[%s3627_s24 + $0x40] sm:$0xff] %vm893_vm1, %v1953_v0  ;;  %v1746_v1 = vadd.f32 %v2657_v3, %v3575_v15  ;;  %v1906_v62 = vadd.f32 %v2697_v8, %v3580_v16  ;;  %v1740_v26 = vpop.f32.mrb[27].mxu0  ;;  %v1900_v27 = vpop.f32.mrb[27].mxu1 }
 0x224   : > { %v1741_v11 = vadd.f32 %v3575_v15, %v1740_v26  ;;  %v1901_v12 = vadd.f32 %v3580_v16, %v1900_v27 }
 0x225   : > { %v1940_v41 = vadd.f32 %v1746_v1, %v3386_v5  ;;  %v2004_v14 = vadd.f32 %v3596_v33, %v1906_v62 }
 0x226   : > { %v1939_v59 = vadd.f32 %v1741_v11, %v3375_v2  ;;  %v2003_v7 = vadd.f32 %v3598_v34, %v1901_v12 }
 0x227   : > { %v1956_v19 = vmul.f32 0.70710677, %v1940_v41  ;;  %2020 = vst.msk [vmem:[%s3606_s25 + $0x58] sm:$0xff] %vm893_vm1, %v2004_v14 }
 0x228   : > { %v1955_v53 = vmul.f32 0.70710677, %v1939_v59  ;;  %2019 = vst.msk [vmem:[%s3606_s25 + $0x50] sm:$0xff] %vm893_vm1, %v2003_v7 }
 0x229   : > { %1972 = vst.msk [vmem:[%s3627_s24 + $0x58] sm:$0xff] %vm893_vm1, %v1956_v19  ;;  %v2660_v56 = vpop.f32.mrb[28].mxu0  ;;  %v2700_v50 = vpop.f32.mrb[28].mxu1 }
 0x22a   : > { %1971 = vst.msk [vmem:[%s3627_s24 + $0x50] sm:$0xff] %vm893_vm1, %v1955_v53  ;;  %v1756_v5 = vadd.f32 %v2660_v56, %v3575_v15  ;;  %v1916_v33 = vadd.f32 %v2700_v50, %v3580_v16  ;;  %v1750_v2 = vpop.f32.mrb[29].mxu0  ;;  %v1910_v39 = vpop.f32.mrb[29].mxu1 }
 0x22b   : > { %v1751_v34 = vadd.f32 %v3575_v15, %v1750_v2  ;;  %v1911_v20 = vadd.f32 %v3580_v16, %v1910_v39 }
 0x22c   : > { %v1942_v21 = vadd.f32 %v1756_v5, %v3400_v9  ;;  %v2006_v24 = vadd.f32 %v3600_v38, %v1916_v33 }
 0x22d   : > { %v1941_v28 = vadd.f32 %v1751_v34, %v3389_v6  ;;  %v2005_v29 = vadd.f32 %v3610_v44, %v1911_v20 }
 0x22e   : > { %v1958_v30 = vmul.f32 0.70710677, %v1942_v21  ;;  %v2663_v32 = vpop.f32.mrb[30].mxu0  ;;  %v2703_v57 = vpop.f32.mrb[30].mxu1  ;;  %2022 = vst.msk [vmem:[%s3606_s25 + $0x68] sm:$0xff] %vm893_vm1, %v2006_v24 }
 0x22f   : > { %v1957_v18 = vmul.f32 0.70710677, %v1941_v28  ;;  %v1766_v17 = vadd.f32 %v2663_v32, %v3575_v15  ;;  %v1926_v9 = vadd.f32 %v2703_v57, %v3580_v16  ;;  %v1760_v40 = vpop.f32.mrb[31].mxu0  ;;  %v1920_v38 = vpop.f32.mrb[31].mxu1  ;;  %2021 = vst.msk [vmem:[%s3606_s25 + $0x60] sm:$0xff] %vm893_vm1, %v2005_v29 }
 0x230   : > { %1974 = vst.msk [vmem:[%s3627_s24 + $0x68] sm:$0xff] %vm893_vm1, %v1958_v30  ;;  %v1761_v6 = vadd.f32 %v3575_v15, %v1760_v40  ;;  %v1921_v44 = vadd.f32 %v3580_v16, %v1920_v38 }
 0x231   : > { %1973 = vst.msk [vmem:[%s3627_s24 + $0x60] sm:$0xff] %vm893_vm1, %v1957_v18  ;;  %v1944_v54 = vadd.f32 %v1766_v17, %v3414_v13  ;;  %v2008_v23 = vadd.f32 %v3612_v35, %v1926_v9 }
 0x232   : > { %v1943_v47 = vadd.f32 %v1761_v6, %v3403_v10  ;;  %v2007_v22 = vadd.f32 %v3614_v46, %v1921_v44 }
 0x233   : > { %v1960_v48 = vmul.f32 0.70710677, %v1944_v54  ;;  %2024 = vst.msk [vmem:[%s3606_s25 + $0x78] sm:$0xff] %vm893_vm1, %v2008_v23 }
 0x234   : > { %v1959_v13 = vmul.f32 0.70710677, %v1943_v47  ;;  %2023 = vst.msk [vmem:[%s3606_s25 + $0x70] sm:$0xff] %vm893_vm1, %v2007_v22 }
 0x235   : > { %1976 = vst.msk [vmem:[%s3627_s24 + $0x78] sm:$0xff] %vm893_vm1, %v1960_v48 }
 0x236   : > { %1975 = vst.msk [vmem:[%s3627_s24 + $0x70] sm:$0xff] %vm893_vm1, %v1959_v13 }
 0x237   : > { %2974 = shalt.err (!%p2971_p5)
}
 0x238   : > { %s2975_s20 = scalar_lea.hbm %s3736_s2, 2048  ;;  %s2979_s22 = scalar_lea.hbm %s3808_s14, 4096 }
 0x239   : > { %p2976_p6 = scmp.ne.s32.totalorder %s3736_s2, %s2975_s20  ;;  %p2980_p10 = scmp.lt.u32.totalorder %s3736_s2, %s3808_s14 }
 0x23a   : > { %p2981_p11 = scmp.lt.u32.totalorder %s2979_s22, %s2975_s20  ;;  %p2983_p13 = scmp.lt.u32.totalorder %s2975_s20, %s3736_s2 }
 0x23b   : > { %p2977_p7 = pnand %p2976_p6, %p3164_p4 }
 0x23c   : > { %p2982_p12 = por %p2981_p11, %p2980_p10 }
 0x23d   : > { %p2978_p9 = pneg %p2977_p7 }
 0x23e   : > { %p2984_p0 = por %p2983_p13, %p2982_p12 }
 0x240   : > { %p2985_p1 = pnand %p2984_p0, %p2978_p9 }
 0x242   : > { %2988 = shalt.err (!%p2985_p1)
}
 0x243   : > { %s3042_s27 = smov 128   ;;  %s3043_s26 = smov 8  }
 0x244   : > { %2808 = dma.vmem_to_hbm [thread:$0]  (%p3164_p4), %s3738_s18, 2048, %s3736_s2, %s3748_s21, %s3042_s27, %s3042_s27, %s3043_s26  }
 0x245 PF: > { %s3823_s29 = sld [smem:[#allocation5_spill]]  ;;  %p2814_p2 = scmp.ge.s32.totalorder %s3039_s23, 2 }
 0x247   : > { %p2811_p3 = pnand %p2814_p2, %p3171_p8 }
 0x24b   : > { %s2069_s25 = sand.u32 1, %s3823_s29  }
 0x24c   : > { %s2070_s20 = scalar_lea.sflag [#allocation3], %s2069_s25 }
 0x24d   : > { %3014 = dma.done.wait (!%p2811_p3), %s2070_s20, 2048  }
 0x24e   : > { %3016 = vsyncadd (!%p2811_p3), %s2070_s20, 4294965248  ;;  %s29_s23 = sadd.s32 1, %s3039_s23   ;;  %s3824_s24 = sld [smem:[#allocation6_spill]] }
 0x24f   : > { %p26_p5 = scmp.ge.s32.totalorder %s29_s23, 4   ;;  %s3825_s20 = sld [smem:[#allocation9_spill]] }
 0x250   : > { %s3826_s21 = sld [smem:[#allocation7_spill]]  ;;  %s3827_s22 = sld [smem:[#allocation8_spill]] }
 0x251   : > { %s3828_s18 = smov %s3023_s19  ;;  %28 = sbr.rel (!%p26_p5) target bundleno = 6 (0x6), region = 132 }
 0x254   : > { %s3829_s19 = smov %s3824_s24 }
 0x258   :  { %2087 = vsyncpa [#allocation3], 1 }
 0x259   :  { %2089 = vsyncpa [#allocation3 + $0x1], 1 }

// kernel: _forward.7
= control target key start
LH: loop header
LB: loop body
LE: loop exit
PB: predicated region body
PF: predicated region fallthrough
CT: control target
= control target key end

     0   :  { %s3032_s18 = smov 0   ;;  %s3034_s19 = smov 0   ;;  %s3613_s0 = inlined_call_operand.vmem [shape: f32[2,128,64], index: 0, kind: input, shape index: {}]   ;;  %s3614_s1 = inlined_call_operand.vmem [shape: f32[2,1,64], index: 1, kind: input, shape index: {}]   ;;  %s3615_s2 = inlined_call_operand.vmem [shape: f32[2,128,16], index: 2, kind: input, shape index: {}]   ;;  %s3616_s3 = inlined_call_operand.vmem [shape: f32[2,128,64], index: 3, kind: input, shape index: {}, may-alias: {3,15}]   ;;  %s3617_s4 = inlined_call_operand.vmem [shape: f32[64,64], index: 4, kind: input, shape index: {}]   ;;  %s3618_s5 = inlined_call_operand.vmem [shape: f32[64,64], index: 5, kind: input, shape index: {}]   ;;  %s3619_s6 = inlined_call_operand.vmem [shape: f32[16,64], index: 6, kind: input, shape index: {}]   ;;  %s3620_s7 = inlined_call_operand.vmem [shape: f32[16,64], index: 7, kind: input, shape index: {}]   ;;  %s3621_s8 = inlined_call_operand.vmem [shape: f32[1,64], index: 8, kind: input, shape index: {}]   ;;  %s3622_s9 = inlined_call_operand.vmem [shape: f32[1,64], index: 9, kind: input, shape index: {}]   ;;  %s3623_s10 = inlined_call_operand.vmem [shape: f32[64,64], index: 10, kind: input, shape index: {}]   ;;  %s3624_s11 = inlined_call_operand.vmem [shape: f32[64,64], index: 11, kind: input, shape index: {}]   ;;  %s3625_s12 = inlined_call_operand.vmem [shape: f32[1,64], index: 12, kind: input, shape index: {}]   ;;  %s3626_s13 = inlined_call_operand.vmem [shape: f32[1,64], index: 13, kind: input, shape index: {}]   ;;  %s3627_s14 = inlined_call_operand.vmem [shape: f32[2,128,64], index: 14, kind: output, shape index: {0}]   ;;  %s3628_s15 = inlined_call_operand.vmem [shape: f32[2,128,64], index: 15, kind: output, shape index: {1}, may-alias: {3,15}]  }
   0x1   :  { %s3036_s20 = smov 0  }
   0x2 LB: > { %s38_s21 = sadd.s32 1, %s2946_s19  ;;  %p2221_p0 = scmp.ge.s32.totalorder %s2950_s20, 1  ;;  %s2950_s20 = sphi %s3036_s20, %s26_s20   ;;  %s2946_s19 = sphi %s3034_s19, %s3630_s19   ;;  %s2942_s18 = sphi %s3032_s18, %s3629_s18  }
   0x3   : > { %p40_p1 = scmp.ge.s32.totalorder %s38_s21, 2  ;;  %p505_p2 = scmp.lt.s32.totalorder %s2950_s20, 3 }
   0x5   : > { %s3632_s21 = smov (%p40_p1, %s38_s21), 0  ;;  %p506_p3 = pnand %p2221_p0, %p505_p2 }
   0x6   : > { %v707_v0 = vld [vmem:[%s3619_s6] sm:$0xff] (!%p506_p3)  ;;  %v708_v1 = vld [vmem:[%s3619_s6 + $0x8] sm:$0xff] (!%p506_p3)  ;;  %p592_p4 = scmp.lt.s32.totalorder (!%p506_p3), %s2942_s18, 1  ;;  %v701_v10 = vld [vmem:[%s3617_s4 + $0x10] sm:$0xff] (!%p506_p3)  ;;  %vm709_vm0 = vcmask (!%p506_p3), 130048   ;;  %vm903_vm1 = vcmask (!%p506_p3), 523264  }
   0x7   : > { %509 = sbr.rel (%p506_p3) target bundleno = 554 (0x22a), region = 76  ;;  %v1128_v2 = vld [vmem:[%s3620_s7] sm:$0xff] (!%p506_p3)  ;;  %v2704_v3 = vpack.c.bf16 (!%p506_p3), %v708_v1, %v707_v0  ;;  %v1129_v4 = vld [vmem:[%s3620_s7 + $0x8] sm:$0xff] (!%p506_p3)  ;;  %v702_v11 = vld [vmem:[%s3617_s4 + $0x18] sm:$0xff] (!%p506_p3) }
   0x8   : > { %v699_v5 = vld [vmem:[%s3617_s4] sm:$0xff] (!%p506_p3)  ;;  %v700_v6 = vld [vmem:[%s3617_s4 + $0x8] sm:$0xff] (!%p506_p3)  ;;  %v2724_v7 = vpack.c.bf16 (!%p506_p3), %v1129_v4, %v1128_v2  ;;  %v2712_v17 = vpack.c.bf16 (!%p506_p3), %v702_v11, %v701_v10  ;;  %v1122_v18 = vld [vmem:[%s3618_s5 + $0x10] sm:$0xff] (!%p506_p3) }
   0x9   : > { %v2708_v8 = vpack.c.bf16 (!%p506_p3), %v700_v6, %v699_v5  ;;  %v1120_v9 = vld [vmem:[%s3618_s5] sm:$0xff] (!%p506_p3)  ;;  %2705 = vmatprep.subr.bf16.mxu0 (!%p506_p3), %v2704_v3  ;;  %v1121_v12 = vld [vmem:[%s3618_s5 + $0x8] sm:$0xff] (!%p506_p3)  ;;  %v1123_v19 = vld [vmem:[%s3618_s5 + $0x18] sm:$0xff] (!%p506_p3) }
   0xa   : > { %2707 = vmatpush3.bf16.msra.mxu0 (!%p506_p3), %v2704_v3  ;;  %2725 = vmatprep.subr.bf16.mxu1 (!%p506_p3), %v2724_v7  ;;  %v2728_v13 = vpack.c.bf16 (!%p506_p3), %v1121_v12, %v1120_v9  ;;  %v703_v20 = vld [vmem:[%s3617_s4 + $0x20] sm:$0xff] (!%p506_p3)  ;;  %v704_v21 = vld [vmem:[%s3617_s4 + $0x28] sm:$0xff] (!%p506_p3)  ;;  %v2732_v24 = vpack.c.bf16 (!%p506_p3), %v1123_v19, %v1122_v18  ;;  %v705_v28 = vld [vmem:[%s3617_s4 + $0x30] sm:$0xff] (!%p506_p3) }
   0xb   : > { %2727 = vmatpush3.bf16.msra.mxu1 (!%p506_p3), %v2724_v7  ;;  %2709 = vmatprep.subr.bf16.mxu0 (!%p506_p3), %v2708_v8  ;;  %v2716_v25 = vpack.c.bf16 (!%p506_p3), %v704_v21, %v703_v20  ;;  %v1124_v26 = vld [vmem:[%s3618_s5 + $0x20] sm:$0xff] (!%p506_p3)  ;;  %v1125_v27 = vld [vmem:[%s3618_s5 + $0x28] sm:$0xff] (!%p506_p3)  ;;  %v706_v29 = vld [vmem:[%s3617_s4 + $0x38] sm:$0xff] (!%p506_p3) }
   0xc   : > { %2729 = vmatprep.subr.bf16.mxu1 (!%p506_p3), %v2728_v13  ;;  %v2736_v32 = vpack.c.bf16 (!%p506_p3), %v1125_v27, %v1124_v26  ;;  %v2720_v33 = vpack.c.bf16 (!%p506_p3), %v706_v29, %v705_v28  ;;  %v1126_v34 = vld [vmem:[%s3618_s5 + $0x30] sm:$0xff] (!%p506_p3)  ;;  %v1127_v35 = vld [vmem:[%s3618_s5 + $0x38] sm:$0xff] (!%p506_p3)  ;;  %v1780_v19 = vld [vmem:[%s3624_s11 + $0x8] sm:$0xff] (!%p506_p3) }
   0xd   : > { %v2740_v38 = vpack.c.bf16 (!%p506_p3), %v1127_v35, %v1126_v34  ;;  %v1573_v21 = vld [vmem:[%s3623_s10 + $0x10] sm:$0xff] (!%p506_p3)  ;;  %v1575_v27 = vld [vmem:[%s3623_s10 + $0x20] sm:$0xff] (!%p506_p3)  ;;  %v1576_v28 = vld [vmem:[%s3623_s10 + $0x28] sm:$0xff] (!%p506_p3) }
   0xe   : > { %s3634_s18 = smov (!%p592_p4, %s2942_s18), 1  ;;  %v2752_v29 = vpack.c.bf16 %v1576_v28, %v1575_v27  ;;  %v1578_v34 = vld [vmem:[%s3623_s10 + $0x38] sm:$0xff] }
   0xf   : > { %s3083_s16 = sshll.u32 %s3634_s18, 7  ;;  %s603_s17 = scalar_lea.vmem %s3614_s1, %s3634_s18 }
  0x10   : > { %s3089_s23 = scalar_lea.vmem %s3615_s2, %s3083_s16  ;;  %s3160_s28 = scalar_lea.vmem %s3613_s0, %s3083_s16  ;;  %v3175_v46 = vld [vmem:[%s603_s17] ss:$0 sm:$0xff] }
  0x11   : > { %v683_v14 = vld [vmem:[%s3089_s23] sm:$0xff]  ;;  %v684_v15 = vld [vmem:[%s3089_s23 + $0x8] sm:$0xff]  ;;  %v685_v16 = vld [vmem:[%s3089_s23 + $0x10] sm:$0xff]  ;;  %s622_s26 = scalar_lea.vmem %s3616_s3, %s3083_s16  ;;  %s3485_s25 = scalar_lea.vmem %s3627_s14, %s3083_s16 }
  0x12   : > { %2492 = vmatprep.mubr.msk.f32.mxu0 %vm709_vm0, %v683_v14  ;;  %2560 = vmatprep.mubr.msk.f32.mxu1 %vm709_vm0, %v683_v14  ;;  %v686_v22 = vld [vmem:[%s3089_s23 + $0x18] sm:$0xff]  ;;  %v687_v23 = vld [vmem:[%s3089_s23 + $0x20] sm:$0xff]  ;;  %v688_v30 = vld [vmem:[%s3089_s23 + $0x28] sm:$0xff] }
  0x13   : > { %2493 = vmatmul.mubr.msk.f32.vlgmr.msra.gmra.mrb[0].mxu0 %vm709_vm0, %v684_v15  ;;  %2561 = vmatmul.mubr.msk.f32.vlgmr.msra.gmra.mrb[0].mxu1 %vm709_vm0, %v684_v15  ;;  %v689_v31 = vld [vmem:[%s3089_s23 + $0x30] sm:$0xff]  ;;  %v690_v36 = vld [vmem:[%s3089_s23 + $0x38] sm:$0xff]  ;;  %v691_v37 = vld [vmem:[%s3089_s23 + $0x40] sm:$0xff] }
  0x14   : > { %2711 = vmatpush3.bf16.msra.mxu0 %v2708_v8  ;;  %2495 = vmatprep.mubr.msk.f32.mxu0 %vm709_vm0, %v685_v16  ;;  %v692_v39 = vld [vmem:[%s3089_s23 + $0x48] sm:$0xff]  ;;  %v693_v40 = vld [vmem:[%s3089_s23 + $0x50] sm:$0xff]  ;;  %v694_v41 = vld [vmem:[%s3089_s23 + $0x58] sm:$0xff] }
  0x15   : > { %2563 = vmatprep.mubr.msk.f32.mxu1 %vm709_vm0, %v685_v16  ;;  %2713 = vmatprep.subr.bf16.mxu0 %v2712_v17  ;;  %v695_v42 = vld [vmem:[%s3089_s23 + $0x60] sm:$0xff]  ;;  %v696_v43 = vld [vmem:[%s3089_s23 + $0x68] sm:$0xff]  ;;  %v697_v44 = vld [vmem:[%s3089_s23 + $0x70] sm:$0xff] }
  0x16   : > { %2731 = vmatpush3.bf16.msra.mxu1 %v2728_v13  ;;  %v3173_v45 = vld [vmem:[%s3160_s28] sm:$0xff]  ;;  %v698_v47 = vld [vmem:[%s3089_s23 + $0x78] sm:$0xff]  ;;  %v3185_v49 = vld [vmem:[%s3160_s28 + $0x8] sm:$0xff]  ;;  %s3470_s23 = scalar_lea.vmem %s3628_s15, %s3083_s16 }
  0x17   : > { %2496 = vmatmul.mubr.msk.f32.gmra.mrb[2].mxu0 %vm709_vm0, %v686_v22  ;;  %2564 = vmatmul.mubr.msk.f32.gmra.mrb[2].mxu1 %vm709_vm0, %v686_v22  ;;  %v667_v48 = vadd.f32 %v3175_v46, %v3173_v45  ;;  %v3188_v50 = vld [vmem:[%s3160_s28 + $0x10] sm:$0xff]  ;;  %v668_v51 = vadd.f32 %v3175_v46, %v3185_v49  ;;  %v3199_v53 = vld [vmem:[%s3160_s28 + $0x18] sm:$0xff]  ;;  %v3202_v54 = vld [vmem:[%s3160_s28 + $0x20] sm:$0xff] }
  0x18   : > { %2498 = vmatprep.mubr.msk.f32.mxu0 %vm709_vm0, %v687_v23  ;;  %2566 = vmatprep.mubr.msk.f32.mxu1 %vm709_vm0, %v687_v23  ;;  %v669_v52 = vadd.f32 %v3175_v46, %v3188_v50  ;;  %v670_v55 = vadd.f32 %v3175_v46, %v3199_v53  ;;  %v671_v56 = vadd.f32 %v3175_v46, %v3202_v54  ;;  %v3213_v57 = vld [vmem:[%s3160_s28 + $0x28] sm:$0xff]  ;;  %v3216_v58 = vld [vmem:[%s3160_s28 + $0x30] sm:$0xff]  ;;  %v3227_v61 = vld [vmem:[%s3160_s28 + $0x38] sm:$0xff] }
  0x19   : > { %2715 = vmatpush3.bf16.msra.mxu0 %v2712_v17  ;;  %2733 = vmatprep.subr.bf16.mxu1 %v2732_v24  ;;  %v672_v59 = vadd.f32 %v3175_v46, %v3213_v57  ;;  %v673_v60 = vadd.f32 %v3175_v46, %v3216_v58  ;;  %v3230_v62 = vld [vmem:[%s3160_s28 + $0x40] sm:$0xff]  ;;  %v674_v63 = vadd.f32 %v3175_v46, %v3227_v61  ;;  %v3241_v1 = vld [vmem:[%s3160_s28 + $0x48] sm:$0xff]  ;;  %v3244_v2 = vld [vmem:[%s3160_s28 + $0x50] sm:$0xff] }
  0x1a   : > { %2717 = vmatprep.subr.bf16.mxu0 %v2716_v25  ;;  %2735 = vmatpush3.bf16.msra.mxu1 %v2732_v24  ;;  %v675_v0 = vadd.f32 %v3175_v46, %v3230_v62  ;;  %v676_v3 = vadd.f32 %v3175_v46, %v3241_v1  ;;  %v677_v4 = vadd.f32 %v3175_v46, %v3244_v2  ;;  %v3255_v5 = vld [vmem:[%s3160_s28 + $0x58] sm:$0xff]  ;;  %v3258_v6 = vld [vmem:[%s3160_s28 + $0x60] sm:$0xff]  ;;  %v3269_v9 = vld [vmem:[%s3160_s28 + $0x68] sm:$0xff] }
  0x1b   : > { %2499 = vmatmul.mubr.msk.f32.gmra.mrb[4].mxu0 %vm709_vm0, %v688_v30  ;;  %2567 = vmatmul.mubr.msk.f32.gmra.mrb[4].mxu1 %vm709_vm0, %v688_v30  ;;  %v678_v7 = vadd.f32 %v3175_v46, %v3255_v5  ;;  %v679_v8 = vadd.f32 %v3175_v46, %v3258_v6  ;;  %v3272_v10 = vld [vmem:[%s3160_s28 + $0x70] sm:$0xff]  ;;  %v680_v11 = vadd.f32 %v3175_v46, %v3269_v9  ;;  %v3283_v13 = vld [vmem:[%s3160_s28 + $0x78] sm:$0xff]  ;;  %v1571_v15 = vld [vmem:[%s3623_s10] sm:$0xff] }
  0x1c   : > { %2501 = vmatprep.mubr.msk.f32.mxu0 %vm709_vm0, %v689_v31  ;;  %2569 = vmatprep.mubr.msk.f32.mxu1 %vm709_vm0, %v689_v31  ;;  %v681_v12 = vadd.f32 %v3175_v46, %v3272_v10  ;;  %v682_v14 = vadd.f32 %v3175_v46, %v3283_v13  ;;  %v1572_v16 = vld [vmem:[%s3623_s10 + $0x8] sm:$0xff]  ;;  %v1779_v17 = vld [vmem:[%s3624_s11] sm:$0xff]  ;;  %v1574_v22 = vld [vmem:[%s3623_s10 + $0x18] sm:$0xff] }
  0x1d   : > { %2719 = vmatpush3.bf16.msra.mxu0 %v2716_v25  ;;  %2737 = vmatprep.subr.bf16.mxu1 %v2736_v32  ;;  %v2744_v18 = vpack.c.bf16 %v1572_v16, %v1571_v15  ;;  %v2760_v20 = vpack.c.bf16 %v1780_v19, %v1779_v17  ;;  %v1781_v23 = vld [vmem:[%s3624_s11 + $0x10] sm:$0xff]  ;;  %v2748_v24 = vpack.c.bf16 %v1574_v22, %v1573_v21  ;;  %v1782_v25 = vld [vmem:[%s3624_s11 + $0x18] sm:$0xff]  ;;  %v1783_v30 = vld [vmem:[%s3624_s11 + $0x20] sm:$0xff] }
  0x1e   : > { %2721 = vmatprep.subr.bf16.mxu0 %v2720_v33  ;;  %2739 = vmatpush3.bf16.msra.mxu1 %v2736_v32  ;;  %v2764_v26 = vpack.c.bf16 %v1782_v25, %v1781_v23  ;;  %v1784_v31 = vld [vmem:[%s3624_s11 + $0x28] sm:$0xff] }
  0x1f   : > { %2502 = vmatmul.mubr.msk.f32.gmra.mrb[6].mxu0 %vm709_vm0, %v690_v36  ;;  %2570 = vmatmul.mubr.msk.f32.gmra.mrb[6].mxu1 %vm709_vm0, %v690_v36  ;;  %v2768_v32 = vpack.c.bf16 %v1784_v31, %v1783_v30  ;;  %v1785_v36 = vld [vmem:[%s3624_s11 + $0x30] sm:$0xff] }
  0x20   : > { %2504 = vmatprep.mubr.msk.f32.mxu0 %vm709_vm0, %v691_v37  ;;  %2572 = vmatprep.mubr.msk.f32.mxu1 %vm709_vm0, %v691_v37  ;;  %v1786_v37 = vld [vmem:[%s3624_s11 + $0x38] sm:$0xff] }
  0x21   : > { %2723 = vmatpush3.bf16.msra.mxu0 %v2720_v33  ;;  %2741 = vmatprep.subr.bf16.mxu1 %v2740_v38  ;;  %v1577_v33 = vld [vmem:[%s3623_s10 + $0x30] sm:$0xff] }
  0x22   : > { %2743 = vmatpush3.bf16.msra.mxu1 %v2740_v38  ;;  %2745 = vmatprep.subr.bf16.mxu0 %v2744_v18  ;;  %v2756_v35 = vpack.c.bf16 %v1578_v34, %v1577_v33  ;;  %v2772_v38 = vpack.c.bf16 %v1786_v37, %v1785_v36 }
  0x23   : > { %2505 = vmatmul.mubr.msk.f32.gmra.mrb[8].mxu0 %vm709_vm0, %v692_v39  ;;  %2573 = vmatmul.mubr.msk.f32.gmra.mrb[8].mxu1 %vm709_vm0, %v692_v39  ;;  %v3344_v39 = vld [vmem:[%s3621_s8] ss:$0 sm:$0xff] }
  0x24   : > { %2507 = vmatprep.mubr.msk.f32.mxu0 %vm709_vm0, %v693_v40  ;;  %2575 = vmatprep.mubr.msk.f32.mxu1 %vm709_vm0, %v693_v40 }
  0x25   : > { %2761 = vmatprep.subr.bf16.mxu1 %v2760_v20 }
  0x27   : > { %2508 = vmatmul.mubr.msk.f32.gmra.mrb[10].mxu0 %vm709_vm0, %v694_v41  ;;  %2576 = vmatmul.mubr.msk.f32.gmra.mrb[10].mxu1 %vm709_vm0, %v694_v41 }
  0x28   : > { %2510 = vmatprep.mubr.msk.f32.mxu0 %vm709_vm0, %v695_v42  ;;  %2578 = vmatprep.mubr.msk.f32.mxu1 %vm709_vm0, %v695_v42  ;;  %v3349_v42 = vld [vmem:[%s3622_s9] ss:$0 sm:$0xff] }
  0x2b   : > { %2511 = vmatmul.mubr.msk.f32.gmra.mrb[12].mxu0 %vm709_vm0, %v696_v43  ;;  %2579 = vmatmul.mubr.msk.f32.gmra.mrb[12].mxu1 %vm709_vm0, %v696_v43 }
  0x2c   : > { %2513 = vmatprep.mubr.msk.f32.mxu0 %vm709_vm0, %v697_v44  ;;  %2581 = vmatprep.mubr.msk.f32.mxu1 %vm709_vm0, %v697_v44 }
  0x2f   : > { %2514 = vmatmul.mubr.msk.f32.gmra.mrb[14].mxu0 %vm709_vm0, %v698_v47  ;;  %2582 = vmatmul.mubr.msk.f32.gmra.mrb[14].mxu1 %vm709_vm0, %v698_v47 }
  0x30   : > { %2532 = vmatprep.mubr.msk.f32.mxu0 %vm903_vm1, %v667_v48  ;;  %2600 = vmatprep.mubr.msk.f32.mxu1 %vm903_vm1, %v667_v48 }
  0x33   : > { %2533 = vmatmul.mubr.msk.f32.vlgmr.msra.gmra.mrb[0].mxu0 %vm903_vm1, %v668_v51  ;;  %2601 = vmatmul.mubr.msk.f32.vlgmr.msra.gmra.mrb[0].mxu1 %vm903_vm1, %v668_v51 }
  0x34   : > { %2535 = vmatprep.mubr.msk.f32.mxu0 %vm903_vm1, %v669_v52  ;;  %2603 = vmatprep.mubr.msk.f32.mxu1 %vm903_vm1, %v669_v52 }
  0x35   : > { %2747 = vmatpush3.bf16.msra.mxu0 %v2744_v18  ;;  %2763 = vmatpush3.bf16.msra.mxu1 %v2760_v20 }
  0x36   : > { %2749 = vmatprep.subr.bf16.mxu0 %v2748_v24  ;;  %2765 = vmatprep.subr.bf16.mxu1 %v2764_v26 }
  0x37   : > { %2536 = vmatmul.mubr.msk.f32.gmra.mrb[2].mxu0 %vm903_vm1, %v670_v55  ;;  %2604 = vmatmul.mubr.msk.f32.gmra.mrb[2].mxu1 %vm903_vm1, %v670_v55 }
  0x38   : > { %2538 = vmatprep.mubr.msk.f32.mxu0 %vm903_vm1, %v671_v56  ;;  %2606 = vmatprep.mubr.msk.f32.mxu1 %vm903_vm1, %v671_v56 }
  0x39   : > { %2751 = vmatpush3.bf16.msra.mxu0 %v2748_v24  ;;  %2767 = vmatpush3.bf16.msra.mxu1 %v2764_v26 }
  0x3a   : > { %2753 = vmatprep.subr.bf16.mxu0 %v2752_v29  ;;  %2769 = vmatprep.subr.bf16.mxu1 %v2768_v32 }
  0x3b   : > { %2539 = vmatmul.mubr.msk.f32.gmra.mrb[4].mxu0 %vm903_vm1, %v672_v59  ;;  %2607 = vmatmul.mubr.msk.f32.gmra.mrb[4].mxu1 %vm903_vm1, %v672_v59 }
  0x3c   : > { %2541 = vmatprep.mubr.msk.f32.mxu0 %vm903_vm1, %v673_v60  ;;  %2609 = vmatprep.mubr.msk.f32.mxu1 %vm903_vm1, %v673_v60 }
  0x3d   : > { %2755 = vmatpush3.bf16.msra.mxu0 %v2752_v29  ;;  %2771 = vmatpush3.bf16.msra.mxu1 %v2768_v32 }
  0x3e   : > { %2757 = vmatprep.subr.bf16.mxu0 %v2756_v35  ;;  %2773 = vmatprep.subr.bf16.mxu1 %v2772_v38 }
  0x3f   : > { %2542 = vmatmul.mubr.msk.f32.gmra.mrb[6].mxu0 %vm903_vm1, %v674_v63  ;;  %2610 = vmatmul.mubr.msk.f32.gmra.mrb[6].mxu1 %vm903_vm1, %v674_v63 }
  0x40   : > { %2544 = vmatprep.mubr.msk.f32.mxu0 %vm903_vm1, %v675_v0  ;;  %2612 = vmatprep.mubr.msk.f32.mxu1 %vm903_vm1, %v675_v0 }
  0x41   : > { %2759 = vmatpush3.bf16.msra.mxu0 %v2756_v35  ;;  %2775 = vmatpush3.bf16.msra.mxu1 %v2772_v38 }
  0x43   : > { %2545 = vmatmul.mubr.msk.f32.gmra.mrb[8].mxu0 %vm903_vm1, %v676_v3  ;;  %2613 = vmatmul.mubr.msk.f32.gmra.mrb[8].mxu1 %vm903_vm1, %v676_v3 }
  0x44   : > { %2547 = vmatprep.mubr.msk.f32.mxu0 %vm903_vm1, %v677_v4  ;;  %2615 = vmatprep.mubr.msk.f32.mxu1 %vm903_vm1, %v677_v4 }
  0x47   : > { %2548 = vmatmul.mubr.msk.f32.gmra.mrb[10].mxu0 %vm903_vm1, %v678_v7  ;;  %2616 = vmatmul.mubr.msk.f32.gmra.mrb[10].mxu1 %vm903_vm1, %v678_v7 }
  0x48   : > { %2550 = vmatprep.mubr.msk.f32.mxu0 %vm903_vm1, %v679_v8  ;;  %2618 = vmatprep.mubr.msk.f32.mxu1 %vm903_vm1, %v679_v8 }
  0x4b   : > { %2551 = vmatmul.mubr.msk.f32.gmra.mrb[12].mxu0 %vm903_vm1, %v680_v11  ;;  %2619 = vmatmul.mubr.msk.f32.gmra.mrb[12].mxu1 %vm903_vm1, %v680_v11 }
  0x4c   : > { %2553 = vmatprep.mubr.msk.f32.mxu0 %vm903_vm1, %v681_v12  ;;  %2621 = vmatprep.mubr.msk.f32.mxu1 %vm903_vm1, %v681_v12 }
  0x4f   : > { %2554 = vmatmul.mubr.msk.f32.gmra.mrb[14].mxu0 %vm903_vm1, %v682_v14  ;;  %2622 = vmatmul.mubr.msk.f32.gmra.mrb[14].mxu1 %vm903_vm1, %v682_v14 }
 0x106   : > { %v2534_v40 = vpop.f32.mrb[0].mxu0  ;;  %v2602_v41 = vpop.f32.mrb[0].mxu1 }
 0x107   : > { %v1105_v43 = vadd.f32 %v2534_v40, %v3344_v39  ;;  %v1018_v44 = vpop.f32.mrb[1].mxu0  ;;  %v1341_v46 = vpop.f32.mrb[1].mxu1  ;;  %v1428_v51 = vadd.f32 %v2602_v41, %v3349_v42 }
 0x108   : > { %v1104_v47 = vadd.f32 %v3344_v39, %v1018_v44  ;;  %v1427_v55 = vadd.f32 %v3349_v42, %v1341_v46 }
 0x109   : > { %v2300_v48 = vmul.f32 -1.442695, %v1105_v43 }
 0x10a   : > { %v2299_v52 = vmul.f32 -1.442695, %v1104_v47  ;;  %v2537_v56 = vpop.f32.mrb[2].mxu0  ;;  %v2605_v59 = vpop.f32.mrb[2].mxu1 }
 0x10b   : > { %2832 = vpow2.f32 %v2300_v48  ;;  %v1107_v60 = vadd.f32 %v2537_v56, %v3344_v39  ;;  %v1028_v63 = vpop.f32.mrb[3].mxu0  ;;  %v1351_v0 = vpop.f32.mrb[3].mxu1  ;;  %v1430_v7 = vadd.f32 %v2605_v59, %v3349_v42 }
 0x10c   : > { %2834 = vpow2.f32 %v2299_v52  ;;  %v1106_v3 = vadd.f32 %v3344_v39, %v1028_v63  ;;  %v1429_v11 = vadd.f32 %v3349_v42, %v1351_v0 }
 0x10d   : > { %2836 = vtanh.f32 %v1428_v51  ;;  %v2302_v4 = vmul.f32 -1.442695, %v1107_v60 }
 0x10e   : > { %2838 = vtanh.f32 %v1427_v55  ;;  %v2301_v8 = vmul.f32 -1.442695, %v1106_v3  ;;  %v2540_v12 = vpop.f32.mrb[4].mxu0  ;;  %v2608_v14 = vpop.f32.mrb[4].mxu1 }
 0x10f   : > { %2840 = vpow2.f32 %v2302_v4  ;;  %v1109_v15 = vadd.f32 %v2540_v12, %v3344_v39  ;;  %v1038_v16 = vpop.f32.mrb[5].mxu0  ;;  %v1361_v17 = vpop.f32.mrb[5].mxu1  ;;  %v1432_v20 = vadd.f32 %v2608_v14, %v3349_v42 }
 0x110   : > { %2842 = vpow2.f32 %v2301_v8  ;;  %v1108_v18 = vadd.f32 %v3344_v39, %v1038_v16  ;;  %v1431_v22 = vadd.f32 %v3349_v42, %v1361_v17 }
 0x111   : > { %2844 = vtanh.f32 %v1430_v7  ;;  %v2304_v19 = vmul.f32 -1.442695, %v1109_v15 }
 0x112   : > { %2846 = vtanh.f32 %v1429_v11  ;;  %v2303_v21 = vmul.f32 -1.442695, %v1108_v18  ;;  %v2543_v23 = vpop.f32.mrb[6].mxu0  ;;  %v2611_v24 = vpop.f32.mrb[6].mxu1 }
 0x113   : > { %2848 = vpow2.f32 %v2304_v19  ;;  %v1111_v25 = vadd.f32 %v2543_v23, %v3344_v39  ;;  %v1048_v26 = vpop.f32.mrb[7].mxu0  ;;  %v1371_v27 = vpop.f32.mrb[7].mxu1  ;;  %v1434_v52 = vadd.f32 %v2611_v24, %v3349_v42 }
 0x114   : > { %2850 = vpow2.f32 %v2303_v21  ;;  %v1110_v28 = vadd.f32 %v3344_v39, %v1048_v26  ;;  %v1433_v14 = vadd.f32 %v3349_v42, %v1371_v27 }
 0x115   : > { %v2833_v29 = vpop.eup %2832  ;;  %2852 = vtanh.f32 %v1432_v20  ;;  %v2306_v30 = vmul.f32 -1.442695, %v1111_v25 }
 0x116   : > { %v2835_v31 = vpop.eup %2834  ;;  %v1492_v32 = vadd.f32 1.0, %v2833_v29  ;;  %2854 = vtanh.f32 %v1431_v22  ;;  %v2305_v33 = vmul.f32 -1.442695, %v1110_v28  ;;  %v2546_v34 = vpop.f32.mrb[8].mxu0 }
 0x117   : > { %v2614_v35 = vpop.f32.mrb[8].mxu1  ;;  %v2837_v36 = vpop.eup %2836  ;;  %v1491_v37 = vadd.f32 1.0, %v2835_v31  ;;  %2856 = vpow2.f32 %v2306_v30  ;;  %v1113_v38 = vadd.f32 %v2546_v34, %v3344_v39 }
 0x118   : > { %v1058_v40 = vpop.f32.mrb[9].mxu0  ;;  %v3366_v41 = vpop.f32.mrb[9].mxu1  ;;  %2858 = vrcp.f32 %v1492_v32  ;;  %v1436_v25 = vadd.f32 %v2614_v35, %v3349_v42 }
 0x119   : > { %v2839_v43 = vpop.eup %2838  ;;  %v1112_v44 = vadd.f32 %v3344_v39, %v1058_v40  ;;  %2860 = vrcp.f32 %v1491_v37  ;;  %v2308_v47 = vmul.f32 -1.442695, %v1113_v38 }
 0x11a   : > { %v2841_v46 = vpop.eup %2840  ;;  %2862 = vpow2.f32 %v2305_v33  ;;  %v2549_v55 = vpop.f32.mrb[10].mxu0 }
 0x11b   : > { %v2843_v48 = vpop.eup %2842  ;;  %v1494_v51 = vadd.f32 1.0, %v2841_v46  ;;  %v3370_v56 = vpop.f32.mrb[10].mxu1  ;;  %2864 = vpow2.f32 %v2308_v47  ;;  %v2307_v63 = vmul.f32 -1.442695, %v1112_v44  ;;  %v1115_v0 = vadd.f32 %v2549_v55, %v3344_v39 }
 0x11c   : > { %v2845_v59 = vpop.eup %2844  ;;  %v1493_v60 = vadd.f32 1.0, %v2843_v48  ;;  %v1068_v3 = vpop.f32.mrb[11].mxu0 }
 0x11d   : > { %v3373_v4 = vpop.f32.mrb[11].mxu1  ;;  %v2847_v7 = vpop.eup %2846  ;;  %2866 = vrcp.f32 %v1494_v51  ;;  %v1114_v15 = vadd.f32 %v3344_v39, %v1068_v3  ;;  %v2310_v20 = vmul.f32 -1.442695, %v1115_v0 }
 0x11e   : > { %v2849_v8 = vpop.eup %2848  ;;  %2868 = vrcp.f32 %v1493_v60  ;;  %v2552_v16 = vpop.f32.mrb[12].mxu0 }
 0x11f   : > { %v2851_v11 = vpop.eup %2850  ;;  %v1496_v12 = vadd.f32 1.0, %v2849_v8  ;;  %2870 = vtanh.f32 %v1434_v52  ;;  %v3377_v17 = vpop.f32.mrb[12].mxu1  ;;  %v2309_v28 = vmul.f32 -1.442695, %v1114_v15  ;;  %v1117_v29 = vadd.f32 %v2552_v16, %v3344_v39 }
 0x120   : > { %v2853_v18 = vpop.eup %2852  ;;  %v1495_v19 = vadd.f32 1.0, %v2851_v11  ;;  %2872 = vpow2.f32 %v2307_v63  ;;  %v1078_v21 = vpop.f32.mrb[13].mxu0  ;;  %v1435_v52 = vadd.f32 %v3349_v42, %v3366_v41 }
 0x121   : > { %v3379_v22 = vpop.f32.mrb[13].mxu1  ;;  %v2855_v23 = vpop.eup %2854  ;;  %2874 = vrcp.f32 %v1496_v12  ;;  %v1116_v46 = vadd.f32 %v3344_v39, %v1078_v21  ;;  %v2312_v51 = vmul.f32 -1.442695, %v1117_v29  ;;  %v1438_v12 = vadd.f32 %v3370_v56, %v3349_v42 }
 0x122   : > { %v2857_v24 = vpop.eup %2856  ;;  %2876 = vrcp.f32 %v1495_v19  ;;  %v2555_v30 = vpop.f32.mrb[14].mxu0  ;;  %v1437_v56 = vadd.f32 %v3349_v42, %v3373_v4 }
 0x123   : > { %v2859_v26 = vpop.eup %2858  ;;  %v1498_v27 = vadd.f32 1.0, %v2857_v24  ;;  %2878 = vtanh.f32 %v1433_v14  ;;  %v3383_v31 = vpop.f32.mrb[14].mxu1  ;;  %v2311_v3 = vmul.f32 -1.442695, %v1116_v46 }
 0x124   : > { %v2861_v32 = vpop.eup %2860  ;;  %v1556_v33 = vmul.f32 %v2859_v26, %v2837_v36  ;;  %2880 = vpow2.f32 %v2310_v20  ;;  %v1088_v34 = vpop.f32.mrb[15].mxu0 }
 0x125   : > { %v3385_v37 = vpop.f32.mrb[15].mxu1  ;;  %v2863_v38 = vpop.eup %2862  ;;  %2882 = vrcp.f32 %v1498_v27  ;;  %v1555_v40 = vmul.f32 %v2861_v32, %v2839_v43  ;;  %v1119_v43 = vadd.f32 %v2555_v30, %v3344_v39  ;;  %v1118_v41 = vadd.f32 %v3344_v39, %v1088_v34 }
 0x126   : > { %v2865_v44 = vpop.eup %2864  ;;  %v1497_v35 = vadd.f32 1.0, %v2863_v38  ;;  %2884 = vtanh.f32 %v1436_v25  ;;  %v1440_v27 = vadd.f32 %v3377_v17, %v3349_v42  ;;  %v1439_v34 = vadd.f32 %v3349_v42, %v3379_v22 }
 0x127   : > { %v2867_v47 = vpop.eup %2866  ;;  %v1500_v48 = vadd.f32 1.0, %v2865_v44  ;;  %2886 = vpow2.f32 %v2309_v28  ;;  %2640 = vmatprep.mubr.msk.f32.mxu0 %vm903_vm1, %v1555_v40  ;;  %2680 = vmatprep.mubr.msk.f32.mxu1 %vm903_vm1, %v1555_v40  ;;  %v2313_v21 = vmul.f32 -1.442695, %v1118_v41  ;;  %v1442_v40 = vadd.f32 %v3383_v31, %v3349_v42 }
 0x128   : > { %v2869_v36 = vpop.eup %2868  ;;  %2888 = vrcp.f32 %v1497_v35  ;;  %2641 = vmatmul.mubr.msk.f32.vlgmr.msra.gmra.mrb[16].mxu0 %vm903_vm1, %v1556_v33  ;;  %2681 = vmatmul.mubr.msk.f32.vlgmr.msra.gmra.mrb[16].mxu1 %vm903_vm1, %v1556_v33  ;;  %v1558_v55 = vmul.f32 %v2867_v47, %v2845_v59  ;;  %v2314_v59 = vmul.f32 -1.442695, %v1119_v43 }
 0x129   : > { %v2871_v60 = vpop.eup %2870  ;;  %2890 = vrcp.f32 %v1500_v48  ;;  %v1557_v63 = vmul.f32 %v2869_v36, %v2847_v7 }
 0x12a   : > { %v2873_v0 = vpop.eup %2872  ;;  %2892 = vpow2.f32 %v2312_v51  ;;  %v1441_v51 = vadd.f32 %v3349_v42, %v3385_v37 }
 0x12b   : > { %v2875_v8 = vpop.eup %2874  ;;  %v1499_v11 = vadd.f32 1.0, %v2873_v0  ;;  %2643 = vmatprep.mubr.msk.f32.mxu0 %vm903_vm1, %v1557_v63  ;;  %2683 = vmatprep.mubr.msk.f32.mxu1 %vm903_vm1, %v1557_v63  ;;  %2894 = vtanh.f32 %v1435_v52 }
 0x12c   : > { %v2877_v14 = vpop.eup %2876  ;;  %2644 = vmatmul.mubr.msk.f32.gmra.mrb[18].mxu0 %vm903_vm1, %v1558_v55  ;;  %2684 = vmatmul.mubr.msk.f32.gmra.mrb[18].mxu1 %vm903_vm1, %v1558_v55  ;;  %v1560_v7 = vmul.f32 %v2875_v8, %v2853_v18 }
 0x12d   : > { %v2879_v15 = vpop.eup %2878  ;;  %2896 = vrcp.f32 %v1499_v11  ;;  %v1559_v16 = vmul.f32 %v2877_v14, %v2855_v23 }
 0x12e   : > { %v2881_v19 = vpop.eup %2880  ;;  %2898 = vpow2.f32 %v2311_v3 }
 0x12f   : > { %v2883_v39 = vpop.eup %2882  ;;  %v1502_v20 = vadd.f32 1.0, %v2881_v19  ;;  %2900 = vtanh.f32 %v1438_v12  ;;  %2646 = vmatprep.mubr.msk.f32.mxu0 %vm903_vm1, %v1559_v16  ;;  %2686 = vmatprep.mubr.msk.f32.mxu1 %vm903_vm1, %v1559_v16  ;;  %v3448_v16 = vld [vmem:[%s3626_s13] ss:$0 sm:$0xff]  ;;  %v1988_v19 = vld [vmem:[%s622_s26 + $0x8] sm:$0xff] }
 0x130   : > { %v2885_v24 = vpop.eup %2884  ;;  %2902 = vpow2.f32 %v2314_v59  ;;  %2647 = vmatmul.mubr.msk.f32.gmra.mrb[20].mxu0 %vm903_vm1, %v1560_v7  ;;  %2687 = vmatmul.mubr.msk.f32.gmra.mrb[20].mxu1 %vm903_vm1, %v1560_v7  ;;  %v1562_v18 = vmul.f32 %v2883_v39, %v2871_v60 }
 0x131   : > { %v2887_v23 = vpop.eup %2886  ;;  %2904 = vrcp.f32 %v1502_v20 }
 0x132   : > { %v2889_v25 = vpop.eup %2888  ;;  %v1501_v4 = vadd.f32 1.0, %v2887_v23  ;;  %2906 = vtanh.f32 %v1437_v56  ;;  %v1987_v56 = vld [vmem:[%s622_s26] sm:$0xff] }
 0x133   : > { %v2891_v26 = vpop.eup %2890  ;;  %2908 = vpow2.f32 %v2313_v21  ;;  %v1561_v28 = vmul.f32 %v2889_v25, %v2879_v15  ;;  %v3443_v15 = vld [vmem:[%s3625_s12] ss:$0 sm:$0xff]  ;;  %v1990_v21 = vld [vmem:[%s622_s26 + $0x18] sm:$0xff] }
 0x134   : > { %2910 = vrcp.f32 %v1501_v4  ;;  %v1564_v29 = vmul.f32 %v2891_v26, %v2885_v24  ;;  %v2893_v30 = vpop.eup %2892  ;;  %v1989_v24 = vld [vmem:[%s622_s26 + $0x10] sm:$0xff]  ;;  %v1991_v23 = vld [vmem:[%s622_s26 + $0x20] sm:$0xff]  ;;  %v3450_v25 = vld [vmem:[%s622_s26 + $0x38] sm:$0xff] }
 0x135   : > { %2649 = vmatprep.mubr.msk.f32.mxu0 %vm903_vm1, %v1561_v28  ;;  %2689 = vmatprep.mubr.msk.f32.mxu1 %vm903_vm1, %v1561_v28  ;;  %v2895_v32 = vpop.eup %2894  ;;  %v1504_v33 = vadd.f32 1.0, %v2893_v30  ;;  %2912 = vtanh.f32 %v1440_v27  ;;  %v3452_v4 = vld [vmem:[%s622_s26 + $0x30] sm:$0xff]  ;;  %v3454_v26 = vld [vmem:[%s622_s26 + $0x48] sm:$0xff]  ;;  %v3456_v27 = vld [vmem:[%s622_s26 + $0x40] sm:$0xff] }
 0x136   : > { %2650 = vmatmul.mubr.msk.f32.gmra.mrb[22].mxu0 %vm903_vm1, %v1562_v18  ;;  %2690 = vmatmul.mubr.msk.f32.gmra.mrb[22].mxu1 %vm903_vm1, %v1562_v18  ;;  %v1992_v18 = vld [vmem:[%s622_s26 + $0x28] sm:$0xff] }
 0x137   : > { %v2897_v38 = vpop.eup %2896  ;;  %2914 = vrcp.f32 %v1504_v33  ;;  %v3460_v33 = vld [vmem:[%s622_s26 + $0x58] sm:$0xff] }
 0x138   : > { %v2899_v17 = vpop.eup %2898  ;;  %v1563_v44 = vmul.f32 %v2897_v38, %v2895_v32  ;;  %2916 = vtanh.f32 %v1439_v34  ;;  %v3462_v34 = vld [vmem:[%s622_s26 + $0x50] sm:$0xff]  ;;  %v3464_v38 = vld [vmem:[%s622_s26 + $0x68] sm:$0xff] }
 0x139   : > { %v2901_v35 = vpop.eup %2900  ;;  %v1503_v46 = vadd.f32 1.0, %v2899_v17 }
 0x13a   : > { %v2903_v47 = vpop.eup %2902  ;;  %2652 = vmatprep.mubr.msk.f32.mxu0 %vm903_vm1, %v1563_v44  ;;  %2692 = vmatprep.mubr.msk.f32.mxu1 %vm903_vm1, %v1563_v44  ;;  %v3474_v44 = vld [vmem:[%s622_s26 + $0x60] sm:$0xff] }
 0x13b   : > { %v2905_v22 = vpop.eup %2904  ;;  %2918 = vrcp.f32 %v1503_v46  ;;  %v1506_v48 = vadd.f32 1.0, %v2903_v47  ;;  %2653 = vmatmul.mubr.msk.f32.gmra.mrb[24].mxu0 %vm903_vm1, %v1564_v29  ;;  %2693 = vmatmul.mubr.msk.f32.gmra.mrb[24].mxu1 %vm903_vm1, %v1564_v29  ;;  %v3478_v46 = vld [vmem:[%s622_s26 + $0x70] sm:$0xff] }
 0x13c   : > { %v2907_v31 = vpop.eup %2906  ;;  %2920 = vtanh.f32 %v1442_v40  ;;  %v1566_v36 = vmul.f32 %v2905_v22, %v2901_v35  ;;  %v3476_v35 = vld [vmem:[%s622_s26 + $0x78] sm:$0xff] }
 0x13d   : > { %v2909_v52 = vpop.eup %2908  ;;  %2922 = vrcp.f32 %v1506_v48 }
 0x13e   : > { %v2911_v43 = vpop.eup %2910  ;;  %v1505_v55 = vadd.f32 1.0, %v2909_v52  ;;  %2924 = vtanh.f32 %v1441_v51 }
 0x13f   : > { %v1565_v60 = vmul.f32 %v2911_v43, %v2907_v31  ;;  %v2913_v63 = vpop.eup %2912 }
 0x140   : > { %2926 = vrcp.f32 %v1505_v55 }
 0x141   : > { %2655 = vmatprep.mubr.msk.f32.mxu0 %vm903_vm1, %v1565_v60  ;;  %2695 = vmatprep.mubr.msk.f32.mxu1 %vm903_vm1, %v1565_v60  ;;  %v2915_v42 = vpop.eup %2914 }
 0x142   : > { %2656 = vmatmul.mubr.msk.f32.gmra.mrb[26].mxu0 %vm903_vm1, %v1566_v36  ;;  %2696 = vmatmul.mubr.msk.f32.gmra.mrb[26].mxu1 %vm903_vm1, %v1566_v36  ;;  %v1568_v37 = vmul.f32 %v2915_v42, %v2913_v63  ;;  %v2917_v0 = vpop.eup %2916 }
 0x145   : > { %v2919_v3 = vpop.eup %2918 }
 0x146   : > { %v2921_v8 = vpop.eup %2920  ;;  %v1567_v11 = vmul.f32 %v2919_v3, %v2917_v0 }
 0x147   : > { %v2923_v12 = vpop.eup %2922 }
 0x148   : > { %2658 = vmatprep.mubr.msk.f32.mxu0 %vm903_vm1, %v1567_v11  ;;  %2698 = vmatprep.mubr.msk.f32.mxu1 %vm903_vm1, %v1567_v11  ;;  %v1570_v41 = vmul.f32 %v2923_v12, %v2921_v8  ;;  %v2925_v14 = vpop.eup %2924 }
 0x149   : > { %2659 = vmatmul.mubr.msk.f32.gmra.mrb[28].mxu0 %vm903_vm1, %v1568_v37  ;;  %2699 = vmatmul.mubr.msk.f32.gmra.mrb[28].mxu1 %vm903_vm1, %v1568_v37 }
 0x14a   : > { %v2927_v59 = vpop.eup %2926 }
 0x14b   : > { %v1569_v7 = vmul.f32 %v2927_v59, %v2925_v14 }
 0x14d   : > { %2661 = vmatprep.mubr.msk.f32.mxu0 %vm903_vm1, %v1569_v7  ;;  %2701 = vmatprep.mubr.msk.f32.mxu1 %vm903_vm1, %v1569_v7 }
 0x14e   : > { %2662 = vmatmul.mubr.msk.f32.gmra.mrb[30].mxu0 %vm903_vm1, %v1570_v41  ;;  %2702 = vmatmul.mubr.msk.f32.gmra.mrb[30].mxu1 %vm903_vm1, %v1570_v41 }
 0x1fb   : > { %v2642_v39 = vpop.f32.mrb[16].mxu0  ;;  %v2682_v20 = vpop.f32.mrb[16].mxu1 }
 0x1fc   : > { %v1706_v28 = vadd.f32 %v2642_v39, %v3443_v15  ;;  %v1866_v29 = vadd.f32 %v2682_v20, %v3448_v16  ;;  %v1700_v30 = vpop.f32.mrb[17].mxu0  ;;  %v1860_v32 = vpop.f32.mrb[17].mxu1 }
 0x1fd   : > { %v1701_v17 = vadd.f32 %v3443_v15, %v1700_v30  ;;  %v1861_v40 = vadd.f32 %v3448_v16, %v1860_v32 }
 0x1fe   : > { %v1940_v47 = vadd.f32 %v1706_v28, %v3185_v49  ;;  %v2004_v22 = vadd.f32 %v1988_v19, %v1866_v29 }
 0x1ff   : > { %v1939_v48 = vadd.f32 %v1701_v17, %v3173_v45  ;;  %v2003_v51 = vadd.f32 %v1987_v56, %v1861_v40  ;;  %v2645_v31 = vpop.f32.mrb[18].mxu0  ;;  %v2685_v36 = vpop.f32.mrb[18].mxu1 }
 0x200   : > { %v1956_v52 = vmul.f32 0.70710677, %v1940_v47  ;;  %v1716_v43 = vadd.f32 %v2645_v31, %v3443_v15  ;;  %v1876_v55 = vadd.f32 %v2685_v36, %v3448_v16  ;;  %v1710_v49 = vpop.f32.mrb[19].mxu0  ;;  %v1870_v60 = vpop.f32.mrb[19].mxu1  ;;  %2020 = vst.msk [vmem:[%s3470_s23 + $0x8] sm:$0xff] %vm903_vm1, %v2004_v22 }
 0x201   : > { %v1955_v63 = vmul.f32 0.70710677, %v1939_v48  ;;  %v1711_v42 = vadd.f32 %v3443_v15, %v1710_v49  ;;  %v1871_v37 = vadd.f32 %v3448_v16, %v1870_v60  ;;  %2019 = vst.msk [vmem:[%s3470_s23] sm:$0xff] %vm903_vm1, %v2003_v51 }
 0x202   : > { %1972 = vst.msk [vmem:[%s3485_s25 + $0x8] sm:$0xff] %vm903_vm1, %v1956_v52  ;;  %v1942_v45 = vadd.f32 %v1716_v43, %v3199_v53  ;;  %v2006_v0 = vadd.f32 %v1990_v21, %v1876_v55 }
 0x203   : > { %1971 = vst.msk [vmem:[%s3485_s25] sm:$0xff] %vm903_vm1, %v1955_v63  ;;  %v1941_v3 = vadd.f32 %v1711_v42, %v3188_v50  ;;  %v2005_v8 = vadd.f32 %v1989_v24, %v1871_v37  ;;  %v2648_v11 = vpop.f32.mrb[20].mxu0  ;;  %v2688_v12 = vpop.f32.mrb[20].mxu1 }
 0x204   : > { %v1958_v41 = vmul.f32 0.70710677, %v1942_v45  ;;  %v1726_v14 = vadd.f32 %v2648_v11, %v3443_v15  ;;  %v1886_v59 = vadd.f32 %v2688_v12, %v3448_v16  ;;  %v1720_v7 = vpop.f32.mrb[21].mxu0  ;;  %v1880_v19 = vpop.f32.mrb[21].mxu1  ;;  %2022 = vst.msk [vmem:[%s3470_s23 + $0x18] sm:$0xff] %vm903_vm1, %v2006_v0 }
 0x205   : > { %v1957_v53 = vmul.f32 0.70710677, %v1941_v3  ;;  %v1721_v56 = vadd.f32 %v3443_v15, %v1720_v7  ;;  %v1881_v50 = vadd.f32 %v3448_v16, %v1880_v19  ;;  %2021 = vst.msk [vmem:[%s3470_s23 + $0x10] sm:$0xff] %vm903_vm1, %v2005_v8 }
 0x206   : > { %1974 = vst.msk [vmem:[%s3485_s25 + $0x18] sm:$0xff] %vm903_vm1, %v1958_v41  ;;  %v1944_v39 = vadd.f32 %v1726_v14, %v3213_v57  ;;  %v2008_v20 = vadd.f32 %v1992_v18, %v1886_v59 }
 0x207   : > { %1973 = vst.msk [vmem:[%s3485_s25 + $0x10] sm:$0xff] %vm903_vm1, %v1957_v53  ;;  %v1943_v21 = vadd.f32 %v1721_v56, %v3202_v54  ;;  %v2007_v24 = vadd.f32 %v1991_v23, %v1881_v50 }
 0x208   : > { %v1960_v28 = vmul.f32 0.70710677, %v1944_v39  ;;  %2024 = vst.msk [vmem:[%s3470_s23 + $0x28] sm:$0xff] %vm903_vm1, %v2008_v20 }
 0x209   : > { %v1959_v29 = vmul.f32 0.70710677, %v1943_v21  ;;  %v2651_v30 = vpop.f32.mrb[22].mxu0  ;;  %v2691_v32 = vpop.f32.mrb[22].mxu1  ;;  %2023 = vst.msk [vmem:[%s3470_s23 + $0x20] sm:$0xff] %vm903_vm1, %v2007_v24 }
 0x20a   : > { %1976 = vst.msk [vmem:[%s3485_s25 + $0x28] sm:$0xff] %vm903_vm1, %v1960_v28  ;;  %v1736_v57 = vadd.f32 %v2651_v30, %v3443_v15  ;;  %v1896_v18 = vadd.f32 %v2691_v32, %v3448_v16  ;;  %v1730_v17 = vpop.f32.mrb[23].mxu0  ;;  %v1890_v40 = vpop.f32.mrb[23].mxu1 }
 0x20b   : > { %1975 = vst.msk [vmem:[%s3485_s25 + $0x20] sm:$0xff] %vm903_vm1, %v1959_v29  ;;  %v1731_v54 = vadd.f32 %v3443_v15, %v1730_v17  ;;  %v1891_v23 = vadd.f32 %v3448_v16, %v1890_v40 }
 0x20c   : > { %v1946_v47 = vadd.f32 %v1736_v57, %v3227_v61  ;;  %v2010_v22 = vadd.f32 %v3450_v25, %v1896_v18 }
 0x20d   : > { %v1945_v48 = vadd.f32 %v1731_v54, %v3216_v58  ;;  %v2009_v51 = vadd.f32 %v3452_v4, %v1891_v23 }
 0x20e   : > { %v1962_v31 = vmul.f32 0.70710677, %v1946_v47  ;;  %v2654_v36 = vpop.f32.mrb[24].mxu0  ;;  %v2694_v52 = vpop.f32.mrb[24].mxu1  ;;  %2026 = vst.msk [vmem:[%s3470_s23 + $0x38] sm:$0xff] %vm903_vm1, %v2010_v22 }
 0x20f   : > { %v1961_v43 = vmul.f32 0.70710677, %v1945_v48  ;;  %v1746_v55 = vadd.f32 %v2654_v36, %v3443_v15  ;;  %v1906_v49 = vadd.f32 %v2694_v52, %v3448_v16  ;;  %v1740_v61 = vpop.f32.mrb[25].mxu0  ;;  %v1900_v25 = vpop.f32.mrb[25].mxu1  ;;  %2025 = vst.msk [vmem:[%s3470_s23 + $0x30] sm:$0xff] %vm903_vm1, %v2009_v51 }
 0x210   : > { %1978 = vst.msk [vmem:[%s3485_s25 + $0x38] sm:$0xff] %vm903_vm1, %v1962_v31  ;;  %v1741_v58 = vadd.f32 %v3443_v15, %v1740_v61  ;;  %v1901_v4 = vadd.f32 %v3448_v16, %v1900_v25 }
 0x211   : > { %1977 = vst.msk [vmem:[%s3485_s25 + $0x30] sm:$0xff] %vm903_vm1, %v1961_v43  ;;  %v1948_v60 = vadd.f32 %v1746_v55, %v3241_v1  ;;  %v2012_v63 = vadd.f32 %v3454_v26, %v1906_v49 }
 0x212   : > { %v1947_v42 = vadd.f32 %v1741_v58, %v3230_v62  ;;  %v2011_v37 = vadd.f32 %v3456_v27, %v1901_v4 }
 0x213   : > { %v1964_v45 = vmul.f32 0.70710677, %v1948_v60  ;;  %2028 = vst.msk [vmem:[%s3470_s23 + $0x48] sm:$0xff] %vm903_vm1, %v2012_v63 }
 0x214   : > { %v1963_v0 = vmul.f32 0.70710677, %v1947_v42  ;;  %2027 = vst.msk [vmem:[%s3470_s23 + $0x40] sm:$0xff] %vm903_vm1, %v2011_v37 }
 0x215   : > { %1980 = vst.msk [vmem:[%s3485_s25 + $0x48] sm:$0xff] %vm903_vm1, %v1964_v45  ;;  %v2657_v3 = vpop.f32.mrb[26].mxu0  ;;  %v2697_v8 = vpop.f32.mrb[26].mxu1 }
 0x216   : > { %1979 = vst.msk [vmem:[%s3485_s25 + $0x40] sm:$0xff] %vm903_vm1, %v1963_v0  ;;  %v1756_v1 = vadd.f32 %v2657_v3, %v3443_v15  ;;  %v1916_v62 = vadd.f32 %v2697_v8, %v3448_v16  ;;  %v1750_v26 = vpop.f32.mrb[27].mxu0  ;;  %v1910_v27 = vpop.f32.mrb[27].mxu1 }
 0x217   : > { %v1751_v11 = vadd.f32 %v3443_v15, %v1750_v26  ;;  %v1911_v12 = vadd.f32 %v3448_v16, %v1910_v27 }
 0x218   : > { %v1950_v41 = vadd.f32 %v1756_v1, %v3255_v5  ;;  %v2014_v14 = vadd.f32 %v3460_v33, %v1916_v62 }
 0x219   : > { %v1949_v59 = vadd.f32 %v1751_v11, %v3244_v2  ;;  %v2013_v7 = vadd.f32 %v3462_v34, %v1911_v12 }
 0x21a   : > { %v1966_v19 = vmul.f32 0.70710677, %v1950_v41  ;;  %2030 = vst.msk [vmem:[%s3470_s23 + $0x58] sm:$0xff] %vm903_vm1, %v2014_v14 }
 0x21b   : > { %v1965_v53 = vmul.f32 0.70710677, %v1949_v59  ;;  %2029 = vst.msk [vmem:[%s3470_s23 + $0x50] sm:$0xff] %vm903_vm1, %v2013_v7 }
 0x21c   : > { %1982 = vst.msk [vmem:[%s3485_s25 + $0x58] sm:$0xff] %vm903_vm1, %v1966_v19  ;;  %v2660_v56 = vpop.f32.mrb[28].mxu0  ;;  %v2700_v50 = vpop.f32.mrb[28].mxu1 }
 0x21d   : > { %1981 = vst.msk [vmem:[%s3485_s25 + $0x50] sm:$0xff] %vm903_vm1, %v1965_v53  ;;  %v1766_v5 = vadd.f32 %v2660_v56, %v3443_v15  ;;  %v1926_v33 = vadd.f32 %v2700_v50, %v3448_v16  ;;  %v1760_v2 = vpop.f32.mrb[29].mxu0  ;;  %v1920_v39 = vpop.f32.mrb[29].mxu1 }
 0x21e   : > { %v1761_v34 = vadd.f32 %v3443_v15, %v1760_v2  ;;  %v1921_v20 = vadd.f32 %v3448_v16, %v1920_v39 }
 0x21f   : > { %v1952_v21 = vadd.f32 %v1766_v5, %v3269_v9  ;;  %v2016_v24 = vadd.f32 %v3464_v38, %v1926_v33 }
 0x220   : > { %v1951_v28 = vadd.f32 %v1761_v34, %v3258_v6  ;;  %v2015_v29 = vadd.f32 %v3474_v44, %v1921_v20 }
 0x221   : > { %v1968_v30 = vmul.f32 0.70710677, %v1952_v21  ;;  %v2663_v32 = vpop.f32.mrb[30].mxu0  ;;  %v2703_v57 = vpop.f32.mrb[30].mxu1  ;;  %2032 = vst.msk [vmem:[%s3470_s23 + $0x68] sm:$0xff] %vm903_vm1, %v2016_v24 }
 0x222   : > { %v1967_v18 = vmul.f32 0.70710677, %v1951_v28  ;;  %v1776_v17 = vadd.f32 %v2663_v32, %v3443_v15  ;;  %v1936_v40 = vadd.f32 %v2703_v57, %v3448_v16  ;;  %v1770_v9 = vpop.f32.mrb[31].mxu0  ;;  %v1930_v38 = vpop.f32.mrb[31].mxu1  ;;  %2031 = vst.msk [vmem:[%s3470_s23 + $0x60] sm:$0xff] %vm903_vm1, %v2015_v29 }
 0x223   : > { %1984 = vst.msk [vmem:[%s3485_s25 + $0x68] sm:$0xff] %vm903_vm1, %v1968_v30  ;;  %v1771_v6 = vadd.f32 %v3443_v15, %v1770_v9  ;;  %v1931_v44 = vadd.f32 %v3448_v16, %v1930_v38 }
 0x224   : > { %1983 = vst.msk [vmem:[%s3485_s25 + $0x60] sm:$0xff] %vm903_vm1, %v1967_v18  ;;  %v1954_v54 = vadd.f32 %v1776_v17, %v3283_v13  ;;  %v2018_v23 = vadd.f32 %v3476_v35, %v1936_v40 }
 0x225   : > { %v1953_v47 = vadd.f32 %v1771_v6, %v3272_v10  ;;  %v2017_v22 = vadd.f32 %v3478_v46, %v1931_v44 }
 0x226   : > { %v1970_v48 = vmul.f32 0.70710677, %v1954_v54  ;;  %2034 = vst.msk [vmem:[%s3470_s23 + $0x78] sm:$0xff] %vm903_vm1, %v2018_v23 }
 0x227   : > { %v1969_v51 = vmul.f32 0.70710677, %v1953_v47  ;;  %2033 = vst.msk [vmem:[%s3470_s23 + $0x70] sm:$0xff] %vm903_vm1, %v2017_v22 }
 0x228   : > { %1986 = vst.msk [vmem:[%s3485_s25 + $0x78] sm:$0xff] %vm903_vm1, %v1970_v48 }
 0x229   : > { %1985 = vst.msk [vmem:[%s3485_s25 + $0x70] sm:$0xff] %vm903_vm1, %v1969_v51 }
 0x22a PF: > { %s26_s20 = sadd.s32 1, %s2950_s20   ;;  %s3629_s18 = smov %s2946_s19 }
 0x22b   : > { %p23_p5 = scmp.ge.s32.totalorder %s26_s20, 4   ;;  %s3630_s19 = smov %s3632_s21 }
 0x22d   :  { %25 = sbr.rel (!%p23_p5) target bundleno = 2 (0x2), region = 127 }

</bundles_post_ra>
